<compile_context>
chip_gen: v7x
topology: tpu7x:2x2x1
jax: 0.10.0
libtpu: 0.0.40
codegen_flags: <defaults>
</compile_context>

<pallas_src>
import functools

import jax
import jax.numpy as jnp
from jax.experimental import pallas as pl
from jax.experimental.pallas import tpu as pltpu


_LANES = 128
_K1_PAD = 1024                 # 7*7*19 = 931 -> padded K for the conv1 im2col matmul
_K2 = 9 * _LANES               # conv2 / conv3 im2col K (3*3 taps x 128 padded channels)
_FC1_PAD = 384                 # 300 -> 384
_FC2_PAD = 256                 # 150 -> 256
_VMEM_LIMIT = 32 * 1024 * 1024


# ---------------------------------------------------------------------------
# Fused kernel: conv1 + BN1 + ReLU + conv2 + BN2 + ReLU + conv3 + avgpool + FC head
# ---------------------------------------------------------------------------
def _disc_kernel(p1_ref, w1_ref, sh1_ref, w2_ref, sh2_ref, w3_ref, b3_ref,
                 wfc1_ref, bfc1_ref, wfc2_ref, bfc2_ref, wfc3_ref, bfc3_ref,
                 o_ref,
                 a1_ref, p2_ref, c2s_ref, s3_ref,
                 *, b_tile, oh2, ow2, oh3, ow3):
    """One tile of `b_tile` images per grid program; everything stays in VMEM.

    p1_ref : (b_tile, oh1*16, 1024) bf16  conv1 im2col patches, phase-ordered W
    w1/w2/w3: (K, 128) bf16 weights (BN scale folded into w1/w2)
    sh1/sh2/b3: (1, 128) f32 shifts / bias
    wfc1 (128,384) bf16, wfc2 (384,256) bf16, wfc3 (1,256) f32, biases f32
    o_ref  : (1, 8, 128) f32 — row b = output scalar for image b (lane-broadcast)
    a1_ref : (oh1*16, 128) f32   conv1 output, row = h*16 + (w%2)*8 + w//2
    p2_ref : (oh2*8, 1152) f32   conv2 im2col patches, row = r2*8 + c2
    c2s_ref: (oh2*8, 128) f32    conv2 output
    s3_ref : (8, 1152) f32       per-image pooled conv2 windows per tap
    """
    pool_inv = 1.0 / float(oh3 * ow3)

    # Zero scratch rows that are read but never written (pad rows of p2, unused
    # batch rows of s3 when b_tile < 8).
    p2_ref[...] = jnp.zeros_like(p2_ref)
    s3_ref[...] = jnp.zeros_like(s3_ref)

    for b in range(b_tile):
        # ---- conv1 (+BN1 folded, ReLU): one (176,1024)x(1024,128) matmul ----
        y1 = jnp.dot(p1_ref[b], w1_ref[...], preferred_element_type=jnp.float32)
        y1 = jnp.maximum(y1 + sh1_ref[...], 0.0)
        a1_ref[...] = y1                                     # phase-ordered W layout

        # ---- conv2 im2col from VMEM (contiguous, unit-stride sublane reads) --
        for r2 in range(oh2):
            for i in range(3):
                for j in range(3):
                    t = i * 3 + j
                    src = (2 * r2 + i) * 16 + (j % 2) * 8 + j // 2
                    p2_ref[pl.ds(r2 * 8, ow2), pl.ds(t * _LANES, _LANES)] = (
                        a1_ref[pl.ds(src, ow2), :])

        # ---- conv2 (+BN2 folded, ReLU): single (oh2*8,1152)x(1152,128) matmul
        y2 = jnp.dot(p2_ref[...].astype(jnp.bfloat16), w2_ref[...],
                     preferred_element_type=jnp.float32)
        c2s_ref[...] = jnp.maximum(y2 + sh2_ref[...], 0.0)

        # ---- conv3 + AdaptiveAvgPool2d(1): pool the conv2 windows per tap ----
        # pooled = (1/(oh3*ow3)) * sum_taps pooled_window_ij @ W3[ij] + b3
        for i in range(3):
            for j in range(3):
                t = i * 3 + j
                acc = jnp.zeros((1, _LANES), jnp.float32)
                for r3 in range(oh3):
                    for c3 in range(ow3):
                        acc = acc + c2s_ref[pl.ds((2 * r3 + i) * 8 + (2 * c3 + j), 1), :]
                s3_ref[pl.ds(b, 1), pl.ds(t * _LANES, _LANES)] = acc * pool_inv

    # ---- conv3 matmul over the whole tile (M = 8 pooled rows, real = b_tile) --
    pooled = jnp.dot(s3_ref[...].astype(jnp.bfloat16), w3_ref[...],
                     preferred_element_type=jnp.float32) + b3_ref[...]   # (8, 128)

    # ---- FC head, batched over the tile (bf16 weights / f32 accumulation) -----
    h = jnp.dot(pooled.astype(jnp.bfloat16), wfc1_ref[...],
                preferred_element_type=jnp.float32) + bfc1_ref[...]       # (8, 384)
    h = jnp.where(h > 0.0, h, 0.2 * h)
    h = jnp.dot(h.astype(jnp.bfloat16), wfc2_ref[...],
                preferred_element_type=jnp.float32) + bfc2_ref[...]       # (8, 256)
    h = jnp.where(h > 0.0, h, 0.2 * h)
    # fc3 (out_features == 1) as multiply + lane reduction (avoids an N=1 matmul).
    out = jnp.sum(h * wfc3_ref[...], axis=1, keepdims=True) + bfc3_ref[...]  # (8, 1)
    o_ref[0] = jnp.broadcast_to(out, (8, _LANES))            # lane-dense store


# ---------------------------------------------------------------------------
# Wrapper helpers
# ---------------------------------------------------------------------------
def _pick_b_tile(n):
    # Batch several images per grid step, but keep the grid >= 2 (v7x dual-TC).
    if n >= 16:
        return 8
    if n >= 8:
        return 4
    if n >= 4:
        return 2
    return 1


def _conv1_patches(x, oh1, ow1):
    """NHWC bf16 -> phase-ordered conv1 im2col patches (N, oh1*16, 1024).

    Row index = r1*16 + (c1%2)*8 + c1//2, so conv2's stride-2 window reads become
    contiguous 5-row sublane slices inside the kernel. K order = (kh, kw, cin).
    """
    n = x.shape[0]
    cols = [x[:, i:i + 2 * oh1 - 1:2, j:j + 2 * ow1 - 1:2, :]
            for i in range(7) for j in range(7)]
    p = jnp.concatenate(cols, axis=-1)                       # (N, oh1, ow1, 931)
    ne, no = (ow1 + 1) // 2, ow1 // 2
    even = jnp.pad(p[:, :, 0::2, :], ((0, 0), (0, 0), (0, 8 - ne), (0, 0)))
    odd = jnp.pad(p[:, :, 1::2, :], ((0, 0), (0, 0), (0, 8 - no), (0, 0)))
    p = jnp.concatenate([even, odd], axis=2)                 # (N, oh1, 16, 931)
    p = jnp.pad(p, ((0, 0), (0, 0), (0, 0), (0, _K1_PAD - p.shape[-1])))
    return p.reshape(n, oh1 * 16, _K1_PAD)


def _fold_bn(conv_b, gamma, beta, mean, var, eps=1e-5):
    scale = gamma / jnp.sqrt(var + eps)
    shift = (conv_b - mean) * scale + beta
    return scale, shift


def _prep_conv_w(w, scale, cin_pad, cout_pad=_LANES):
    """(Cout,Cin,KH,KW) torch layout -> (KH*KW*cin_pad, cout_pad) bf16, BN scale folded."""
    cout, cin, kh, kw = w.shape
    wt = (w * scale[:, None, None, None]).transpose(2, 3, 1, 0)      # (kh,kw,cin,cout)
    wt = jnp.pad(wt, ((0, 0), (0, 0), (0, cin_pad - cin), (0, cout_pad - cout)))
    return wt.reshape(kh * kw * cin_pad, cout_pad).astype(jnp.bfloat16)


def _pad_row(v, n):
    return jnp.pad(v, (0, n - v.shape[0])).reshape(1, n).astype(jnp.float32)


def _const_spec(shape):
    zeros = (0,) * len(shape)
    return pl.BlockSpec(shape, lambda t, z=zeros: z)


# ---------------------------------------------------------------------------
# Forward pass
# ---------------------------------------------------------------------------
def discriminator_forward(img, p):
    n = img.shape[0]
    x = jnp.transpose(img, (0, 2, 3, 1)).astype(jnp.bfloat16)        # NCHW -> NHWC
    _, h_in, w_in, c_in = x.shape
    assert c_in == 19
    oh1, ow1 = (h_in - 7) // 2 + 1, (w_in - 7) // 2 + 1
    oh2, ow2 = (oh1 - 3) // 2 + 1, (ow1 - 3) // 2 + 1
    oh3, ow3 = (oh2 - 3) // 2 + 1, (ow2 - 3) // 2 + 1
    assert ow1 <= 16 and (ow1 + 1) // 2 <= 8 and ow2 <= 8 and oh3 >= 1 and ow3 >= 1

    b_tile = _pick_b_tile(n)
    n_pad = -(-n // b_tile) * b_tile
    if n_pad != n:
        x = jnp.pad(x, ((0, n_pad - n), (0, 0), (0, 0), (0, 0)))
    num_tiles = n_pad // b_tile

    patches = _conv1_patches(x, oh1, ow1)                            # (n_pad, oh1*16, 1024)

    # BN folded from running statistics (eval/inference semantics).
    s1, sh1 = _fold_bn(p["conv1_b"], p["bn1_gamma"], p["bn1_beta"],
                       p["bn1_mean"], p["bn1_var"])
    s2, sh2 = _fold_bn(p["conv2_b"], p["bn2_gamma"], p["bn2_beta"],
                       p["bn2_mean"], p["bn2_var"])
    w1 = _prep_conv_w(p["conv1_w"], s1, cin_pad=19)                  # (931, 128)
    w1 = jnp.pad(w1, ((0, _K1_PAD - w1.shape[0]), (0, 0)))           # (1024, 128)
    w2 = _prep_conv_w(p["conv2_w"], s2, cin_pad=_LANES)              # (1152, 128)
    w3 = _prep_conv_w(p["conv3_w"], jnp.ones((120,), jnp.float32), cin_pad=_LANES)

    wfc1 = jnp.pad(p["fc1_w"].T, ((0, _LANES - 120), (0, _FC1_PAD - 300))
                   ).astype(jnp.bfloat16)                            # (128, 384)
    wfc2 = jnp.pad(p["fc2_w"].T, ((0, _FC1_PAD - 300), (0, _FC2_PAD - 150))
                   ).astype(jnp.bfloat16)                            # (384, 256)
    wfc3 = jnp.pad(p["fc3_w"], ((0, 0), (0, _FC2_PAD - 150))).astype(jnp.float32)

    m1 = oh1 * 16
    kernel = functools.partial(_disc_kernel, b_tile=b_tile,
                               oh2=oh2, ow2=ow2, oh3=oh3, ow3=ow3)

    out = pl.pallas_call(
        kernel,
        out_shape=jax.ShapeDtypeStruct((num_tiles, 8, _LANES), jnp.float32),
        grid=(num_tiles,),
        in_specs=[
            pl.BlockSpec((b_tile, m1, _K1_PAD), lambda t: (t, 0, 0)),
            _const_spec((_K1_PAD, _LANES)),
            _const_spec((1, _LANES)),
            _const_spec((_K2, _LANES)),
            _const_spec((1, _LANES)),
            _const_spec((_K2, _LANES)),
            _const_spec((1, _LANES)),
            _const_spec((_LANES, _FC1_PAD)),
            _const_spec((1, _FC1_PAD)),
            _const_spec((_FC1_PAD, _FC2_PAD)),
            _const_spec((1, _FC2_PAD)),
            _const_spec((1, _FC2_PAD)),
            _const_spec((1, 1)),
        ],
        out_specs=pl.BlockSpec((1, 8, _LANES), lambda t: (t, 0, 0)),
        scratch_shapes=[
            pltpu.VMEM((m1, _LANES), jnp.float32),          # conv1 output (phase-ordered)
            pltpu.VMEM((oh2 * 8, _K2), jnp.float32),        # conv2 im2col patches
            pltpu.VMEM((oh2 * 8, _LANES), jnp.float32),     # conv2 output
            pltpu.VMEM((8, _K2), jnp.float32),              # pooled conv3 patch rows
        ],
        compiler_params=pltpu.CompilerParams(
            dimension_semantics=("parallel",),
            vmem_limit_bytes=_VMEM_LIMIT),
    )(patches, w1, _pad_row(sh1, _LANES), w2, _pad_row(sh2, _LANES),
      w3, _pad_row(p["conv3_b"], _LANES),
      wfc1, _pad_row(p["fc1_b"], _FC1_PAD),
      wfc2, _pad_row(p["fc2_b"], _FC2_PAD),
      wfc3, p["fc3_b"].reshape(1, 1).astype(jnp.float32))

    validity = out[:, :b_tile, 0].reshape(num_tiles * b_tile, 1)
    return validity[:n]                                              # (N, 1) f32


# ---------------------------------------------------------------------------
# Parameter init (same layout as the PyTorch module)
# ---------------------------------------------------------------------------
def init_params(key):
    ks = iter(jax.random.split(key, 32))
    nrm = lambda shape, s=0.05: jax.random.normal(next(ks), shape, jnp.float32) * s
    uni = lambda shape, lo, hi: jax.random.uniform(next(ks), shape, jnp.float32, lo, hi)
    p = {}
    p["conv1_w"], p["conv1_b"] = nrm((30, 19, 7, 7)), nrm((30,))
    p["conv2_w"], p["conv2_b"] = nrm((60, 30, 3, 3)), nrm((60,))
    p["conv3_w"], p["conv3_b"] = nrm((120, 60, 3, 3)), nrm((120,))
    for name, c in (("bn1", 30), ("bn2", 60)):
        p[f"{name}_gamma"] = uni((c,), 0.5, 1.5)
        p[f"{name}_beta"] = nrm((c,), 0.1)
        p[f"{name}_mean"] = nrm((c,), 0.1)
        p[f"{name}_var"] = uni((c,), 0.5, 1.5)
    p["fc1_w"], p["fc1_b"] = nrm((300, 120)), nrm((300,))
    p["fc2_w"], p["fc2_b"] = nrm((150, 300)), nrm((150,))
    p["fc3_w"], p["fc3_b"] = nrm((1, 150)), nrm((1,))
    return p


# ---------------------------------------------------------------------------
if __name__ == "__main__":
    key = jax.random.PRNGKey(0)
    k_img, k_params = jax.random.split(key)

    # Smallest reasonable spatial size that survives the 3 strided convs:
    # 27 -> 11 -> 5 -> 2 (then 2x2 adaptive avg pool).
    img = jax.random.normal(k_img, (2, 19, 27, 27), jnp.float32)
    params = init_params(k_params)

    validity = jax.jit(discriminator_forward)(img, params)
    validity = jax.block_until_ready(validity)
    assert validity.shape == (2, 1) and validity.dtype == jnp.float32
    print("KERNEL_OK")
</pallas_src>

<mosaic_0001>
module attributes {stable_mosaic.version = 11 : i64} {
  func.func @_disc_kernel(%arg0: i32, %arg1: memref<1x176x1024xbf16, #tpu.memory_space<vmem>>, %arg2: memref<1024x128xbf16, #tpu.memory_space<vmem>>, %arg3: memref<1x128xf32, #tpu.memory_space<vmem>>, %arg4: memref<1152x128xbf16, #tpu.memory_space<vmem>>, %arg5: memref<1x128xf32, #tpu.memory_space<vmem>>, %arg6: memref<1152x128xbf16, #tpu.memory_space<vmem>>, %arg7: memref<1x128xf32, #tpu.memory_space<vmem>>, %arg8: memref<128x384xbf16, #tpu.memory_space<vmem>>, %arg9: memref<1x384xf32, #tpu.memory_space<vmem>>, %arg10: memref<384x256xbf16, #tpu.memory_space<vmem>>, %arg11: memref<1x256xf32, #tpu.memory_space<vmem>>, %arg12: memref<1x256xf32, #tpu.memory_space<vmem>>, %arg13: memref<1x1xf32, #tpu.memory_space<vmem>>, %arg14: memref<1x8x128xf32, #tpu.memory_space<vmem>>, %arg15: memref<176x128xf32, #tpu.memory_space<vmem>>, %arg16: memref<40x1152xf32, #tpu.memory_space<vmem>>, %arg17: memref<40x128xf32, #tpu.memory_space<vmem>>, %arg18: memref<8x1152xf32, #tpu.memory_space<vmem>>) attributes {dimension_semantics = [#tpu.dimension_semantics<parallel>], iteration_bounds = array<i64: 2>, scalar_prefetch = 0 : i64, scratch_operands = 4 : i64, tpu.core_type = #tpu.core_type<tc>, window_params = [{transform_indices = @transform_0, window_bounds = array<i64: 1, 176, 1024>}, {pipeline_mode = #tpu.pipeline_mode<synchronous>, transform_indices = @transform_1, window_bounds = array<i64: 1024, 128>}, {pipeline_mode = #tpu.pipeline_mode<synchronous>, transform_indices = @transform_2, window_bounds = array<i64: 1, 128>}, {pipeline_mode = #tpu.pipeline_mode<synchronous>, transform_indices = @transform_3, window_bounds = array<i64: 1152, 128>}, {pipeline_mode = #tpu.pipeline_mode<synchronous>, transform_indices = @transform_4, window_bounds = array<i64: 1, 128>}, {pipeline_mode = #tpu.pipeline_mode<synchronous>, transform_indices = @transform_5, window_bounds = array<i64: 1152, 128>}, {pipeline_mode = #tpu.pipeline_mode<synchronous>, transform_indices = @transform_6, window_bounds = array<i64: 1, 128>}, {pipeline_mode = #tpu.pipeline_mode<synchronous>, transform_indices = @transform_7, window_bounds = array<i64: 128, 384>}, {pipeline_mode = #tpu.pipeline_mode<synchronous>, transform_indices = @transform_8, window_bounds = array<i64: 1, 384>}, {pipeline_mode = #tpu.pipeline_mode<synchronous>, transform_indices = @transform_9, window_bounds = array<i64: 384, 256>}, {pipeline_mode = #tpu.pipeline_mode<synchronous>, transform_indices = @transform_10, window_bounds = array<i64: 1, 256>}, {pipeline_mode = #tpu.pipeline_mode<synchronous>, transform_indices = @transform_11, window_bounds = array<i64: 1, 256>}, {pipeline_mode = #tpu.pipeline_mode<synchronous>, transform_indices = @transform_12, window_bounds = array<i64: 1, 1>}, {transform_indices = @transform_13, window_bounds = array<i64: 1, 8, 128>}]} {
    %cst = arith.constant 0.000000e+00 : f32
    %0 = vector.broadcast %cst : f32 to vector<40x1152xf32>
    %c0 = arith.constant 0 : index
    %c0_0 = arith.constant 0 : index
    %1 = vector.load %arg16[%c0, %c0_0] : memref<40x1152xf32, #tpu.memory_space<vmem>>, vector<40x1152xf32>
    tpu.vector_store %arg16[%c0, %c0_0], %0 {strides = array<i32>} : memref<40x1152xf32, #tpu.memory_space<vmem>>, vector<40x1152xf32>,
    %cst_1 = arith.constant 0.000000e+00 : f32
    %2 = vector.broadcast %cst_1 : f32 to vector<8x1152xf32>
    %c0_2 = arith.constant 0 : index
    %c0_3 = arith.constant 0 : index
    %3 = vector.load %arg18[%c0_2, %c0_3] : memref<8x1152xf32, #tpu.memory_space<vmem>>, vector<8x1152xf32>
    tpu.vector_store %arg18[%c0_2, %c0_3], %2 {strides = array<i32>} : memref<8x1152xf32, #tpu.memory_space<vmem>>, vector<8x1152xf32>,
    %c0_4 = arith.constant 0 : index
    %c0_5 = arith.constant 0 : index
    %c0_6 = arith.constant 0 : index
    %4 = vector.load %arg1[%c0_4, %c0_5, %c0_6] : memref<1x176x1024xbf16, #tpu.memory_space<vmem>>, vector<1x176x1024xbf16>
    %5 = vector.shape_cast %4 : vector<1x176x1024xbf16> to vector<176x1024xbf16>
    %c0_7 = arith.constant 0 : index
    %c0_8 = arith.constant 0 : index
    %6 = vector.load %arg2[%c0_7, %c0_8] : memref<1024x128xbf16, #tpu.memory_space<vmem>>, vector<1024x128xbf16>
    %cst_9 = arith.constant dense<0.000000e+00> : vector<176x128xf32>
    %7 = tpu.matmul %5, %6, %cst_9 {dimension_numbers = #tpu.dot_dimension_numbers<[1], [0], [0], [1], [0, 0, 1, 1], [], []>} : vector<176x1024xbf16>, vector<1024x128xbf16>, vector<176x128xf32> -> vector<176x128xf32>
    %c0_10 = arith.constant 0 : index
    %c0_11 = arith.constant 0 : index
    %8 = vector.load %arg3[%c0_10, %c0_11] : memref<1x128xf32, #tpu.memory_space<vmem>>, vector<1x128xf32>
    %9 = vector.broadcast %8 : vector<1x128xf32> to vector<176x128xf32>
    %10 = arith.addf %7, %9 : vector<176x128xf32>
    %cst_12 = arith.constant 0.000000e+00 : f32
    %11 = vector.broadcast %cst_12 : f32 to vector<176x128xf32>
    %12 = arith.maximumf %10, %11 : vector<176x128xf32>
    %c0_13 = arith.constant 0 : index
    %c0_14 = arith.constant 0 : index
    %13 = vector.load %arg15[%c0_13, %c0_14] : memref<176x128xf32, #tpu.memory_space<vmem>>, vector<176x128xf32>
    tpu.vector_store %arg15[%c0_13, %c0_14], %12 {strides = array<i32>} : memref<176x128xf32, #tpu.memory_space<vmem>>, vector<176x128xf32>,
    %c0_15 = arith.constant 0 : index
    %c0_16 = arith.constant 0 : index
    %14 = vector.load %arg15[%c0_15, %c0_16] : memref<176x128xf32, #tpu.memory_space<vmem>>, vector<5x128xf32>
    %c0_17 = arith.constant 0 : index
    %c0_18 = arith.constant 0 : index
    %15 = vector.load %arg16[%c0_17, %c0_18] : memref<40x1152xf32, #tpu.memory_space<vmem>>, vector<5x128xf32>
    tpu.vector_store %arg16[%c0_17, %c0_18], %14 {strides = array<i32>} : memref<40x1152xf32, #tpu.memory_space<vmem>>, vector<5x128xf32>,
    %c8 = arith.constant 8 : index
    %c0_19 = arith.constant 0 : index
    %16 = vector.load %arg15[%c8, %c0_19] : memref<176x128xf32, #tpu.memory_space<vmem>>, vector<5x128xf32>
    %c0_20 = arith.constant 0 : index
    %c128 = arith.constant 128 : index
    %17 = vector.load %arg16[%c0_20, %c128] : memref<40x1152xf32, #tpu.memory_space<vmem>>, vector<5x128xf32>
    tpu.vector_store %arg16[%c0_20, %c128], %16 {strides = array<i32>} : memref<40x1152xf32, #tpu.memory_space<vmem>>, vector<5x128xf32>,
    %c1 = arith.constant 1 : index
    %c0_21 = arith.constant 0 : index
    %18 = vector.load %arg15[%c1, %c0_21] : memref<176x128xf32, #tpu.memory_space<vmem>>, vector<5x128xf32>
    %c0_22 = arith.constant 0 : index
    %c256 = arith.constant 256 : index
    %19 = vector.load %arg16[%c0_22, %c256] : memref<40x1152xf32, #tpu.memory_space<vmem>>, vector<5x128xf32>
    tpu.vector_store %arg16[%c0_22, %c256], %18 {strides = array<i32>} : memref<40x1152xf32, #tpu.memory_space<vmem>>, vector<5x128xf32>,
    %c16 = arith.constant 16 : index
    %c0_23 = arith.constant 0 : index
    %20 = vector.load %arg15[%c16, %c0_23] : memref<176x128xf32, #tpu.memory_space<vmem>>, vector<5x128xf32>
    %c0_24 = arith.constant 0 : index
    %c384 = arith.constant 384 : index
    %21 = vector.load %arg16[%c0_24, %c384] : memref<40x1152xf32, #tpu.memory_space<vmem>>, vector<5x128xf32>
    tpu.vector_store %arg16[%c0_24, %c384], %20 {strides = array<i32>} : memref<40x1152xf32, #tpu.memory_space<vmem>>, vector<5x128xf32>,
    %c24 = arith.constant 24 : index
    %c0_25 = arith.constant 0 : index
    %22 = vector.load %arg15[%c24, %c0_25] : memref<176x128xf32, #tpu.memory_space<vmem>>, vector<5x128xf32>
    %c0_26 = arith.constant 0 : index
    %c512 = arith.constant 512 : index
    %23 = vector.load %arg16[%c0_26, %c512] : memref<40x1152xf32, #tpu.memory_space<vmem>>, vector<5x128xf32>
    tpu.vector_store %arg16[%c0_26, %c512], %22 {strides = array<i32>} : memref<40x1152xf32, #tpu.memory_space<vmem>>, vector<5x128xf32>,
    %c17 = arith.constant 17 : index
    %c0_27 = arith.constant 0 : index
    %24 = vector.load %arg15[%c17, %c0_27] : memref<176x128xf32, #tpu.memory_space<vmem>>, vector<5x128xf32>
    %c0_28 = arith.constant 0 : index
    %c640 = arith.constant 640 : index
    %25 = vector.load %arg16[%c0_28, %c640] : memref<40x1152xf32, #tpu.memory_space<vmem>>, vector<5x128xf32>
    tpu.vector_store %arg16[%c0_28, %c640], %24 {strides = array<i32>} : memref<40x1152xf32, #tpu.memory_space<vmem>>, vector<5x128xf32>,
    %c32 = arith.constant 32 : index
    %c0_29 = arith.constant 0 : index
    %26 = vector.load %arg15[%c32, %c0_29] : memref<176x128xf32, #tpu.memory_space<vmem>>, vector<5x128xf32>
    %c0_30 = arith.constant 0 : index
    %c768 = arith.constant 768 : index
    %27 = vector.load %arg16[%c0_30, %c768] : memref<40x1152xf32, #tpu.memory_space<vmem>>, vector<5x128xf32>
    tpu.vector_store %arg16[%c0_30, %c768], %26 {strides = array<i32>} : memref<40x1152xf32, #tpu.memory_space<vmem>>, vector<5x128xf32>,
    %c40 = arith.constant 40 : index
    %c0_31 = arith.constant 0 : index
    %28 = vector.load %arg15[%c40, %c0_31] : memref<176x128xf32, #tpu.memory_space<vmem>>, vector<5x128xf32>
    %c0_32 = arith.constant 0 : index
    %c896 = arith.constant 896 : index
    %29 = vector.load %arg16[%c0_32, %c896] : memref<40x1152xf32, #tpu.memory_space<vmem>>, vector<5x128xf32>
    tpu.vector_store %arg16[%c0_32, %c896], %28 {strides = array<i32>} : memref<40x1152xf32, #tpu.memory_space<vmem>>, vector<5x128xf32>,
    %c33 = arith.constant 33 : index
    %c0_33 = arith.constant 0 : index
    %30 = vector.load %arg15[%c33, %c0_33] : memref<176x128xf32, #tpu.memory_space<vmem>>, vector<5x128xf32>
    %c0_34 = arith.constant 0 : index
    %c1024 = arith.constant 1024 : index
    %31 = vector.load %arg16[%c0_34, %c1024] : memref<40x1152xf32, #tpu.memory_space<vmem>>, vector<5x128xf32>
    tpu.vector_store %arg16[%c0_34, %c1024], %30 {strides = array<i32>} : memref<40x1152xf32, #tpu.memory_space<vmem>>, vector<5x128xf32>,
    %c32_35 = arith.constant 32 : index
    %c0_36 = arith.constant 0 : index
    %32 = vector.load %arg15[%c32_35, %c0_36] : memref<176x128xf32, #tpu.memory_space<vmem>>, vector<5x128xf32>
    %c8_37 = arith.constant 8 : index
    %c0_38 = arith.constant 0 : index
    %33 = vector.load %arg16[%c8_37, %c0_38] : memref<40x1152xf32, #tpu.memory_space<vmem>>, vector<5x128xf32>
    tpu.vector_store %arg16[%c8_37, %c0_38], %32 {strides = array<i32>} : memref<40x1152xf32, #tpu.memory_space<vmem>>, vector<5x128xf32>,
    %c40_39 = arith.constant 40 : index
    %c0_40 = arith.constant 0 : index
    %34 = vector.load %arg15[%c40_39, %c0_40] : memref<176x128xf32, #tpu.memory_space<vmem>>, vector<5x128xf32>
    %c8_41 = arith.constant 8 : index
    %c128_42 = arith.constant 128 : index
    %35 = vector.load %arg16[%c8_41, %c128_42] : memref<40x1152xf32, #tpu.memory_space<vmem>>, vector<5x128xf32>
    tpu.vector_store %arg16[%c8_41, %c128_42], %34 {strides = array<i32>} : memref<40x1152xf32, #tpu.memory_space<vmem>>, vector<5x128xf32>,
    %c33_43 = arith.constant 33 : index
    %c0_44 = arith.constant 0 : index
    %36 = vector.load %arg15[%c33_43, %c0_44] : memref<176x128xf32, #tpu.memory_space<vmem>>, vector<5x128xf32>
    %c8_45 = arith.constant 8 : index
    %c256_46 = arith.constant 256 : index
    %37 = vector.load %arg16[%c8_45, %c256_46] : memref<40x1152xf32, #tpu.memory_space<vmem>>, vector<5x128xf32>
    tpu.vector_store %arg16[%c8_45, %c256_46], %36 {strides = array<i32>} : memref<40x1152xf32, #tpu.memory_space<vmem>>, vector<5x128xf32>,
    %c48 = arith.constant 48 : index
    %c0_47 = arith.constant 0 : index
    %38 = vector.load %arg15[%c48, %c0_47] : memref<176x128xf32, #tpu.memory_space<vmem>>, vector<5x128xf32>
    %c8_48 = arith.constant 8 : index
    %c384_49 = arith.constant 384 : index
    %39 = vector.load %arg16[%c8_48, %c384_49] : memref<40x1152xf32, #tpu.memory_space<vmem>>, vector<5x128xf32>
    tpu.vector_store %arg16[%c8_48, %c384_49], %38 {strides = array<i32>} : memref<40x1152xf32, #tpu.memory_space<vmem>>, vector<5x128xf32>,
    %c56 = arith.constant 56 : index
    %c0_50 = arith.constant 0 : index
    %40 = vector.load %arg15[%c56, %c0_50] : memref<176x128xf32, #tpu.memory_space<vmem>>, vector<5x128xf32>
    %c8_51 = arith.constant 8 : index
    %c512_52 = arith.constant 512 : index
    %41 = vector.load %arg16[%c8_51, %c512_52] : memref<40x1152xf32, #tpu.memory_space<vmem>>, vector<5x128xf32>
    tpu.vector_store %arg16[%c8_51, %c512_52], %40 {strides = array<i32>} : memref<40x1152xf32, #tpu.memory_space<vmem>>, vector<5x128xf32>,
    %c49 = arith.constant 49 : index
    %c0_53 = arith.constant 0 : index
    %42 = vector.load %arg15[%c49, %c0_53] : memref<176x128xf32, #tpu.memory_space<vmem>>, vector<5x128xf32>
    %c8_54 = arith.constant 8 : index
    %c640_55 = arith.constant 640 : index
    %43 = vector.load %arg16[%c8_54, %c640_55] : memref<40x1152xf32, #tpu.memory_space<vmem>>, vector<5x128xf32>
    tpu.vector_store %arg16[%c8_54, %c640_55], %42 {strides = array<i32>} : memref<40x1152xf32, #tpu.memory_space<vmem>>, vector<5x128xf32>,
    %c64 = arith.constant 64 : index
    %c0_56 = arith.constant 0 : index
    %44 = vector.load %arg15[%c64, %c0_56] : memref<176x128xf32, #tpu.memory_space<vmem>>, vector<5x128xf32>
    %c8_57 = arith.constant 8 : index
    %c768_58 = arith.constant 768 : index
    %45 = vector.load %arg16[%c8_57, %c768_58] : memref<40x1152xf32, #tpu.memory_space<vmem>>, vector<5x128xf32>
    tpu.vector_store %arg16[%c8_57, %c768_58], %44 {strides = array<i32>} : memref<40x1152xf32, #tpu.memory_space<vmem>>, vector<5x128xf32>,
    %c72 = arith.constant 72 : index
    %c0_59 = arith.constant 0 : index
    %46 = vector.load %arg15[%c72, %c0_59] : memref<176x128xf32, #tpu.memory_space<vmem>>, vector<5x128xf32>
    %c8_60 = arith.constant 8 : index
    %c896_61 = arith.constant 896 : index
    %47 = vector.load %arg16[%c8_60, %c896_61] : memref<40x1152xf32, #tpu.memory_space<vmem>>, vector<5x128xf32>
    tpu.vector_store %arg16[%c8_60, %c896_61], %46 {strides = array<i32>} : memref<40x1152xf32, #tpu.memory_space<vmem>>, vector<5x128xf32>,
    %c65 = arith.constant 65 : index
    %c0_62 = arith.constant 0 : index
    %48 = vector.load %arg15[%c65, %c0_62] : memref<176x128xf32, #tpu.memory_space<vmem>>, vector<5x128xf32>
    %c8_63 = arith.constant 8 : index
    %c1024_64 = arith.constant 1024 : index
    %49 = vector.load %arg16[%c8_63, %c1024_64] : memref<40x1152xf32, #tpu.memory_space<vmem>>, vector<5x128xf32>
    tpu.vector_store %arg16[%c8_63, %c1024_64], %48 {strides = array<i32>} : memref<40x1152xf32, #tpu.memory_space<vmem>>, vector<5x128xf32>,
    %c64_65 = arith.constant 64 : index
    %c0_66 = arith.constant 0 : index
    %50 = vector.load %arg15[%c64_65, %c0_66] : memref<176x128xf32, #tpu.memory_space<vmem>>, vector<5x128xf32>
    %c16_67 = arith.constant 16 : index
    %c0_68 = arith.constant 0 : index
    %51 = vector.load %arg16[%c16_67, %c0_68] : memref<40x1152xf32, #tpu.memory_space<vmem>>, vector<5x128xf32>
    tpu.vector_store %arg16[%c16_67, %c0_68], %50 {strides = array<i32>} : memref<40x1152xf32, #tpu.memory_space<vmem>>, vector<5x128xf32>,
    %c72_69 = arith.constant 72 : index
    %c0_70 = arith.constant 0 : index
    %52 = vector.load %arg15[%c72_69, %c0_70] : memref<176x128xf32, #tpu.memory_space<vmem>>, vector<5x128xf32>
    %c16_71 = arith.constant 16 : index
    %c128_72 = arith.constant 128 : index
    %53 = vector.load %arg16[%c16_71, %c128_72] : memref<40x1152xf32, #tpu.memory_space<vmem>>, vector<5x128xf32>
    tpu.vector_store %arg16[%c16_71, %c128_72], %52 {strides = array<i32>} : memref<40x1152xf32, #tpu.memory_space<vmem>>, vector<5x128xf32>,
    %c65_73 = arith.constant 65 : index
    %c0_74 = arith.constant 0 : index
    %54 = vector.load %arg15[%c65_73, %c0_74] : memref<176x128xf32, #tpu.memory_space<vmem>>, vector<5x128xf32>
    %c16_75 = arith.constant 16 : index
    %c256_76 = arith.constant 256 : index
    %55 = vector.load %arg16[%c16_75, %c256_76] : memref<40x1152xf32, #tpu.memory_space<vmem>>, vector<5x128xf32>
    tpu.vector_store %arg16[%c16_75, %c256_76], %54 {strides = array<i32>} : memref<40x1152xf32, #tpu.memory_space<vmem>>, vector<5x128xf32>,
    %c80 = arith.constant 80 : index
    %c0_77 = arith.constant 0 : index
    %56 = vector.load %arg15[%c80, %c0_77] : memref<176x128xf32, #tpu.memory_space<vmem>>, vector<5x128xf32>
    %c16_78 = arith.constant 16 : index
    %c384_79 = arith.constant 384 : index
    %57 = vector.load %arg16[%c16_78, %c384_79] : memref<40x1152xf32, #tpu.memory_space<vmem>>, vector<5x128xf32>
    tpu.vector_store %arg16[%c16_78, %c384_79], %56 {strides = array<i32>} : memref<40x1152xf32, #tpu.memory_space<vmem>>, vector<5x128xf32>,
    %c88 = arith.constant 88 : index
    %c0_80 = arith.constant 0 : index
    %58 = vector.load %arg15[%c88, %c0_80] : memref<176x128xf32, #tpu.memory_space<vmem>>, vector<5x128xf32>
    %c16_81 = arith.constant 16 : index
    %c512_82 = arith.constant 512 : index
    %59 = vector.load %arg16[%c16_81, %c512_82] : memref<40x1152xf32, #tpu.memory_space<vmem>>, vector<5x128xf32>
    tpu.vector_store %arg16[%c16_81, %c512_82], %58 {strides = array<i32>} : memref<40x1152xf32, #tpu.memory_space<vmem>>, vector<5x128xf32>,
    %c81 = arith.constant 81 : index
    %c0_83 = arith.constant 0 : index
    %60 = vector.load %arg15[%c81, %c0_83] : memref<176x128xf32, #tpu.memory_space<vmem>>, vector<5x128xf32>
    %c16_84 = arith.constant 16 : index
    %c640_85 = arith.constant 640 : index
    %61 = vector.load %arg16[%c16_84, %c640_85] : memref<40x1152xf32, #tpu.memory_space<vmem>>, vector<5x128xf32>
    tpu.vector_store %arg16[%c16_84, %c640_85], %60 {strides = array<i32>} : memref<40x1152xf32, #tpu.memory_space<vmem>>, vector<5x128xf32>,
    %c96 = arith.constant 96 : index
    %c0_86 = arith.constant 0 : index
    %62 = vector.load %arg15[%c96, %c0_86] : memref<176x128xf32, #tpu.memory_space<vmem>>, vector<5x128xf32>
    %c16_87 = arith.constant 16 : index
    %c768_88 = arith.constant 768 : index
    %63 = vector.load %arg16[%c16_87, %c768_88] : memref<40x1152xf32, #tpu.memory_space<vmem>>, vector<5x128xf32>
    tpu.vector_store %arg16[%c16_87, %c768_88], %62 {strides = array<i32>} : memref<40x1152xf32, #tpu.memory_space<vmem>>, vector<5x128xf32>,
    %c104 = arith.constant 104 : index
    %c0_89 = arith.constant 0 : index
    %64 = vector.load %arg15[%c104, %c0_89] : memref<176x128xf32, #tpu.memory_space<vmem>>, vector<5x128xf32>
    %c16_90 = arith.constant 16 : index
    %c896_91 = arith.constant 896 : index
    %65 = vector.load %arg16[%c16_90, %c896_91] : memref<40x1152xf32, #tpu.memory_space<vmem>>, vector<5x128xf32>
    tpu.vector_store %arg16[%c16_90, %c896_91], %64 {strides = array<i32>} : memref<40x1152xf32, #tpu.memory_space<vmem>>, vector<5x128xf32>,
    %c97 = arith.constant 97 : index
    %c0_92 = arith.constant 0 : index
    %66 = vector.load %arg15[%c97, %c0_92] : memref<176x128xf32, #tpu.memory_space<vmem>>, vector<5x128xf32>
    %c16_93 = arith.constant 16 : index
    %c1024_94 = arith.constant 1024 : index
    %67 = vector.load %arg16[%c16_93, %c1024_94] : memref<40x1152xf32, #tpu.memory_space<vmem>>, vector<5x128xf32>
    tpu.vector_store %arg16[%c16_93, %c1024_94], %66 {strides = array<i32>} : memref<40x1152xf32, #tpu.memory_space<vmem>>, vector<5x128xf32>,
    %c96_95 = arith.constant 96 : index
    %c0_96 = arith.constant 0 : index
    %68 = vector.load %arg15[%c96_95, %c0_96] : memref<176x128xf32, #tpu.memory_space<vmem>>, vector<5x128xf32>
    %c24_97 = arith.constant 24 : index
    %c0_98 = arith.constant 0 : index
    %69 = vector.load %arg16[%c24_97, %c0_98] : memref<40x1152xf32, #tpu.memory_space<vmem>>, vector<5x128xf32>
    tpu.vector_store %arg16[%c24_97, %c0_98], %68 {strides = array<i32>} : memref<40x1152xf32, #tpu.memory_space<vmem>>, vector<5x128xf32>,
    %c104_99 = arith.constant 104 : index
    %c0_100 = arith.constant 0 : index
    %70 = vector.load %arg15[%c104_99, %c0_100] : memref<176x128xf32, #tpu.memory_space<vmem>>, vector<5x128xf32>
    %c24_101 = arith.constant 24 : index
    %c128_102 = arith.constant 128 : index
    %71 = vector.load %arg16[%c24_101, %c128_102] : memref<40x1152xf32, #tpu.memory_space<vmem>>, vector<5x128xf32>
    tpu.vector_store %arg16[%c24_101, %c128_102], %70 {strides = array<i32>} : memref<40x1152xf32, #tpu.memory_space<vmem>>, vector<5x128xf32>,
    %c97_103 = arith.constant 97 : index
    %c0_104 = arith.constant 0 : index
    %72 = vector.load %arg15[%c97_103, %c0_104] : memref<176x128xf32, #tpu.memory_space<vmem>>, vector<5x128xf32>
    %c24_105 = arith.constant 24 : index
    %c256_106 = arith.constant 256 : index
    %73 = vector.load %arg16[%c24_105, %c256_106] : memref<40x1152xf32, #tpu.memory_space<vmem>>, vector<5x128xf32>
    tpu.vector_store %arg16[%c24_105, %c256_106], %72 {strides = array<i32>} : memref<40x1152xf32, #tpu.memory_space<vmem>>, vector<5x128xf32>,
    %c112 = arith.constant 112 : index
    %c0_107 = arith.constant 0 : index
    %74 = vector.load %arg15[%c112, %c0_107] : memref<176x128xf32, #tpu.memory_space<vmem>>, vector<5x128xf32>
    %c24_108 = arith.constant 24 : index
    %c384_109 = arith.constant 384 : index
    %75 = vector.load %arg16[%c24_108, %c384_109] : memref<40x1152xf32, #tpu.memory_space<vmem>>, vector<5x128xf32>
    tpu.vector_store %arg16[%c24_108, %c384_109], %74 {strides = array<i32>} : memref<40x1152xf32, #tpu.memory_space<vmem>>, vector<5x128xf32>,
    %c120 = arith.constant 120 : index
    %c0_110 = arith.constant 0 : index
    %76 = vector.load %arg15[%c120, %c0_110] : memref<176x128xf32, #tpu.memory_space<vmem>>, vector<5x128xf32>
    %c24_111 = arith.constant 24 : index
    %c512_112 = arith.constant 512 : index
    %77 = vector.load %arg16[%c24_111, %c512_112] : memref<40x1152xf32, #tpu.memory_space<vmem>>, vector<5x128xf32>
    tpu.vector_store %arg16[%c24_111, %c512_112], %76 {strides = array<i32>} : memref<40x1152xf32, #tpu.memory_space<vmem>>, vector<5x128xf32>,
    %c113 = arith.constant 113 : index
    %c0_113 = arith.constant 0 : index
    %78 = vector.load %arg15[%c113, %c0_113] : memref<176x128xf32, #tpu.memory_space<vmem>>, vector<5x128xf32>
    %c24_114 = arith.constant 24 : index
    %c640_115 = arith.constant 640 : index
    %79 = vector.load %arg16[%c24_114, %c640_115] : memref<40x1152xf32, #tpu.memory_space<vmem>>, vector<5x128xf32>
    tpu.vector_store %arg16[%c24_114, %c640_115], %78 {strides = array<i32>} : memref<40x1152xf32, #tpu.memory_space<vmem>>, vector<5x128xf32>,
    %c128_116 = arith.constant 128 : index
    %c0_117 = arith.constant 0 : index
    %80 = vector.load %arg15[%c128_116, %c0_117] : memref<176x128xf32, #tpu.memory_space<vmem>>, vector<5x128xf32>
    %c24_118 = arith.constant 24 : index
    %c768_119 = arith.constant 768 : index
    %81 = vector.load %arg16[%c24_118, %c768_119] : memref<40x1152xf32, #tpu.memory_space<vmem>>, vector<5x128xf32>
    tpu.vector_store %arg16[%c24_118, %c768_119], %80 {strides = array<i32>} : memref<40x1152xf32, #tpu.memory_space<vmem>>, vector<5x128xf32>,
    %c136 = arith.constant 136 : index
    %c0_120 = arith.constant 0 : index
    %82 = vector.load %arg15[%c136, %c0_120] : memref<176x128xf32, #tpu.memory_space<vmem>>, vector<5x128xf32>
    %c24_121 = arith.constant 24 : index
    %c896_122 = arith.constant 896 : index
    %83 = vector.load %arg16[%c24_121, %c896_122] : memref<40x1152xf32, #tpu.memory_space<vmem>>, vector<5x128xf32>
    tpu.vector_store %arg16[%c24_121, %c896_122], %82 {strides = array<i32>} : memref<40x1152xf32, #tpu.memory_space<vmem>>, vector<5x128xf32>,
    %c129 = arith.constant 129 : index
    %c0_123 = arith.constant 0 : index
    %84 = vector.load %arg15[%c129, %c0_123] : memref<176x128xf32, #tpu.memory_space<vmem>>, vector<5x128xf32>
    %c24_124 = arith.constant 24 : index
    %c1024_125 = arith.constant 1024 : index
    %85 = vector.load %arg16[%c24_124, %c1024_125] : memref<40x1152xf32, #tpu.memory_space<vmem>>, vector<5x128xf32>
    tpu.vector_store %arg16[%c24_124, %c1024_125], %84 {strides = array<i32>} : memref<40x1152xf32, #tpu.memory_space<vmem>>, vector<5x128xf32>,
    %c128_126 = arith.constant 128 : index
    %c0_127 = arith.constant 0 : index
    %86 = vector.load %arg15[%c128_126, %c0_127] : memref<176x128xf32, #tpu.memory_space<vmem>>, vector<5x128xf32>
    %c32_128 = arith.constant 32 : index
    %c0_129 = arith.constant 0 : index
    %87 = vector.load %arg16[%c32_128, %c0_129] : memref<40x1152xf32, #tpu.memory_space<vmem>>, vector<5x128xf32>
    tpu.vector_store %arg16[%c32_128, %c0_129], %86 {strides = array<i32>} : memref<40x1152xf32, #tpu.memory_space<vmem>>, vector<5x128xf32>,
    %c136_130 = arith.constant 136 : index
    %c0_131 = arith.constant 0 : index
    %88 = vector.load %arg15[%c136_130, %c0_131] : memref<176x128xf32, #tpu.memory_space<vmem>>, vector<5x128xf32>
    %c32_132 = arith.constant 32 : index
    %c128_133 = arith.constant 128 : index
    %89 = vector.load %arg16[%c32_132, %c128_133] : memref<40x1152xf32, #tpu.memory_space<vmem>>, vector<5x128xf32>
    tpu.vector_store %arg16[%c32_132, %c128_133], %88 {strides = array<i32>} : memref<40x1152xf32, #tpu.memory_space<vmem>>, vector<5x128xf32>,
    %c129_134 = arith.constant 129 : index
    %c0_135 = arith.constant 0 : index
    %90 = vector.load %arg15[%c129_134, %c0_135] : memref<176x128xf32, #tpu.memory_space<vmem>>, vector<5x128xf32>
    %c32_136 = arith.constant 32 : index
    %c256_137 = arith.constant 256 : index
    %91 = vector.load %arg16[%c32_136, %c256_137] : memref<40x1152xf32, #tpu.memory_space<vmem>>, vector<5x128xf32>
    tpu.vector_store %arg16[%c32_136, %c256_137], %90 {strides = array<i32>} : memref<40x1152xf32, #tpu.memory_space<vmem>>, vector<5x128xf32>,
    %c144 = arith.constant 144 : index
    %c0_138 = arith.constant 0 : index
    %92 = vector.load %arg15[%c144, %c0_138] : memref<176x128xf32, #tpu.memory_space<vmem>>, vector<5x128xf32>
    %c32_139 = arith.constant 32 : index
    %c384_140 = arith.constant 384 : index
    %93 = vector.load %arg16[%c32_139, %c384_140] : memref<40x1152xf32, #tpu.memory_space<vmem>>, vector<5x128xf32>
    tpu.vector_store %arg16[%c32_139, %c384_140], %92 {strides = array<i32>} : memref<40x1152xf32, #tpu.memory_space<vmem>>, vector<5x128xf32>,
    %c152 = arith.constant 152 : index
    %c0_141 = arith.constant 0 : index
    %94 = vector.load %arg15[%c152, %c0_141] : memref<176x128xf32, #tpu.memory_space<vmem>>, vector<5x128xf32>
    %c32_142 = arith.constant 32 : index
    %c512_143 = arith.constant 512 : index
    %95 = vector.load %arg16[%c32_142, %c512_143] : memref<40x1152xf32, #tpu.memory_space<vmem>>, vector<5x128xf32>
    tpu.vector_store %arg16[%c32_142, %c512_143], %94 {strides = array<i32>} : memref<40x1152xf32, #tpu.memory_space<vmem>>, vector<5x128xf32>,
    %c145 = arith.constant 145 : index
    %c0_144 = arith.constant 0 : index
    %96 = vector.load %arg15[%c145, %c0_144] : memref<176x128xf32, #tpu.memory_space<vmem>>, vector<5x128xf32>
    %c32_145 = arith.constant 32 : index
    %c640_146 = arith.constant 640 : index
    %97 = vector.load %arg16[%c32_145, %c640_146] : memref<40x1152xf32, #tpu.memory_space<vmem>>, vector<5x128xf32>
    tpu.vector_store %arg16[%c32_145, %c640_146], %96 {strides = array<i32>} : memref<40x1152xf32, #tpu.memory_space<vmem>>, vector<5x128xf32>,
    %c160 = arith.constant 160 : index
    %c0_147 = arith.constant 0 : index
    %98 = vector.load %arg15[%c160, %c0_147] : memref<176x128xf32, #tpu.memory_space<vmem>>, vector<5x128xf32>
    %c32_148 = arith.constant 32 : index
    %c768_149 = arith.constant 768 : index
    %99 = vector.load %arg16[%c32_148, %c768_149] : memref<40x1152xf32, #tpu.memory_space<vmem>>, vector<5x128xf32>
    tpu.vector_store %arg16[%c32_148, %c768_149], %98 {strides = array<i32>} : memref<40x1152xf32, #tpu.memory_space<vmem>>, vector<5x128xf32>,
    %c168 = arith.constant 168 : index
    %c0_150 = arith.constant 0 : index
    %100 = vector.load %arg15[%c168, %c0_150] : memref<176x128xf32, #tpu.memory_space<vmem>>, vector<5x128xf32>
    %c32_151 = arith.constant 32 : index
    %c896_152 = arith.constant 896 : index
    %101 = vector.load %arg16[%c32_151, %c896_152] : memref<40x1152xf32, #tpu.memory_space<vmem>>, vector<5x128xf32>
    tpu.vector_store %arg16[%c32_151, %c896_152], %100 {strides = array<i32>} : memref<40x1152xf32, #tpu.memory_space<vmem>>, vector<5x128xf32>,
    %c161 = arith.constant 161 : index
    %c0_153 = arith.constant 0 : index
    %102 = vector.load %arg15[%c161, %c0_153] : memref<176x128xf32, #tpu.memory_space<vmem>>, vector<5x128xf32>
    %c32_154 = arith.constant 32 : index
    %c1024_155 = arith.constant 1024 : index
    %103 = vector.load %arg16[%c32_154, %c1024_155] : memref<40x1152xf32, #tpu.memory_space<vmem>>, vector<5x128xf32>
    tpu.vector_store %arg16[%c32_154, %c1024_155], %102 {strides = array<i32>} : memref<40x1152xf32, #tpu.memory_space<vmem>>, vector<5x128xf32>,
    %c0_156 = arith.constant 0 : index
    %c0_157 = arith.constant 0 : index
    %104 = vector.load %arg16[%c0_156, %c0_157] : memref<40x1152xf32, #tpu.memory_space<vmem>>, vector<40x1152xf32>
    %105 = arith.truncf %104 : vector<40x1152xf32> to vector<40x1152xbf16>
    %c0_158 = arith.constant 0 : index
    %c0_159 = arith.constant 0 : index
    %106 = vector.load %arg4[%c0_158, %c0_159] : memref<1152x128xbf16, #tpu.memory_space<vmem>>, vector<1152x128xbf16>
    %cst_160 = arith.constant dense<0.000000e+00> : vector<40x128xf32>
    %107 = tpu.matmul %105, %106, %cst_160 {dimension_numbers = #tpu.dot_dimension_numbers<[1], [0], [0], [1], [0, 0, 1, 1], [], []>} : vector<40x1152xbf16>, vector<1152x128xbf16>, vector<40x128xf32> -> vector<40x128xf32>
    %c0_161 = arith.constant 0 : index
    %c0_162 = arith.constant 0 : index
    %108 = vector.load %arg5[%c0_161, %c0_162] : memref<1x128xf32, #tpu.memory_space<vmem>>, vector<1x128xf32>
    %109 = vector.broadcast %108 : vector<1x128xf32> to vector<40x128xf32>
    %110 = arith.addf %107, %109 : vector<40x128xf32>
    %cst_163 = arith.constant 0.000000e+00 : f32
    %111 = vector.broadcast %cst_163 : f32 to vector<40x128xf32>
    %112 = arith.maximumf %110, %111 : vector<40x128xf32>
    %c0_164 = arith.constant 0 : index
    %c0_165 = arith.constant 0 : index
    %113 = vector.load %arg17[%c0_164, %c0_165] : memref<40x128xf32, #tpu.memory_space<vmem>>, vector<40x128xf32>
    tpu.vector_store %arg17[%c0_164, %c0_165], %112 {strides = array<i32>} : memref<40x128xf32, #tpu.memory_space<vmem>>, vector<40x128xf32>,
    %cst_166 = arith.constant 0.000000e+00 : f32
    %114 = vector.broadcast %cst_166 : f32 to vector<1x128xf32>
    %c0_167 = arith.constant 0 : index
    %c0_168 = arith.constant 0 : index
    %115 = vector.load %arg17[%c0_167, %c0_168] : memref<40x128xf32, #tpu.memory_space<vmem>>, vector<1x128xf32>
    %116 = arith.addf %114, %115 : vector<1x128xf32>
    %c2 = arith.constant 2 : index
    %c0_169 = arith.constant 0 : index
    %117 = vector.load %arg17[%c2, %c0_169] : memref<40x128xf32, #tpu.memory_space<vmem>>, vector<1x128xf32>
    %118 = arith.addf %116, %117 : vector<1x128xf32>
    %c16_170 = arith.constant 16 : index
    %c0_171 = arith.constant 0 : index
    %119 = vector.load %arg17[%c16_170, %c0_171] : memref<40x128xf32, #tpu.memory_space<vmem>>, vector<1x128xf32>
    %120 = arith.addf %118, %119 : vector<1x128xf32>
    %c18 = arith.constant 18 : index
    %c0_172 = arith.constant 0 : index
    %121 = vector.load %arg17[%c18, %c0_172] : memref<40x128xf32, #tpu.memory_space<vmem>>, vector<1x128xf32>
    %122 = arith.addf %120, %121 : vector<1x128xf32>
    %cst_173 = arith.constant 2.500000e-01 : f32
    %123 = vector.broadcast %cst_173 : f32 to vector<1x128xf32>
    %124 = arith.mulf %122, %123 : vector<1x128xf32>
    %c0_174 = arith.constant 0 : index
    %c0_175 = arith.constant 0 : index
    %125 = vector.load %arg18[%c0_174, %c0_175] : memref<8x1152xf32, #tpu.memory_space<vmem>>, vector<1x128xf32>
    tpu.vector_store %arg18[%c0_174, %c0_175], %124 {strides = array<i32>} : memref<8x1152xf32, #tpu.memory_space<vmem>>, vector<1x128xf32>,
    %cst_176 = arith.constant 0.000000e+00 : f32
    %126 = vector.broadcast %cst_176 : f32 to vector<1x128xf32>
    %c1_177 = arith.constant 1 : index
    %c0_178 = arith.constant 0 : index
    %127 = vector.load %arg17[%c1_177, %c0_178] : memref<40x128xf32, #tpu.memory_space<vmem>>, vector<1x128xf32>
    %128 = arith.addf %126, %127 : vector<1x128xf32>
    %c3 = arith.constant 3 : index
    %c0_179 = arith.constant 0 : index
    %129 = vector.load %arg17[%c3, %c0_179] : memref<40x128xf32, #tpu.memory_space<vmem>>, vector<1x128xf32>
    %130 = arith.addf %128, %129 : vector<1x128xf32>
    %c17_180 = arith.constant 17 : index
    %c0_181 = arith.constant 0 : index
    %131 = vector.load %arg17[%c17_180, %c0_181] : memref<40x128xf32, #tpu.memory_space<vmem>>, vector<1x128xf32>
    %132 = arith.addf %130, %131 : vector<1x128xf32>
    %c19 = arith.constant 19 : index
    %c0_182 = arith.constant 0 : index
    %133 = vector.load %arg17[%c19, %c0_182] : memref<40x128xf32, #tpu.memory_space<vmem>>, vector<1x128xf32>
    %134 = arith.addf %132, %133 : vector<1x128xf32>
    %cst_183 = arith.constant 2.500000e-01 : f32
    %135 = vector.broadcast %cst_183 : f32 to vector<1x128xf32>
    %136 = arith.mulf %134, %135 : vector<1x128xf32>
    %c0_184 = arith.constant 0 : index
    %c128_185 = arith.constant 128 : index
    %137 = vector.load %arg18[%c0_184, %c128_185] : memref<8x1152xf32, #tpu.memory_space<vmem>>, vector<1x128xf32>
    tpu.vector_store %arg18[%c0_184, %c128_185], %136 {strides = array<i32>} : memref<8x1152xf32, #tpu.memory_space<vmem>>, vector<1x128xf32>,
    %cst_186 = arith.constant 0.000000e+00 : f32
    %138 = vector.broadcast %cst_186 : f32 to vector<1x128xf32>
    %c2_187 = arith.constant 2 : index
    %c0_188 = arith.constant 0 : index
    %139 = vector.load %arg17[%c2_187, %c0_188] : memref<40x128xf32, #tpu.memory_space<vmem>>, vector<1x128xf32>
    %140 = arith.addf %138, %139 : vector<1x128xf32>
    %c4 = arith.constant 4 : index
    %c0_189 = arith.constant 0 : index
    %141 = vector.load %arg17[%c4, %c0_189] : memref<40x128xf32, #tpu.memory_space<vmem>>, vector<1x128xf32>
    %142 = arith.addf %140, %141 : vector<1x128xf32>
    %c18_190 = arith.constant 18 : index
    %c0_191 = arith.constant 0 : index
    %143 = vector.load %arg17[%c18_190, %c0_191] : memref<40x128xf32, #tpu.memory_space<vmem>>, vector<1x128xf32>
    %144 = arith.addf %142, %143 : vector<1x128xf32>
    %c20 = arith.constant 20 : index
    %c0_192 = arith.constant 0 : index
    %145 = vector.load %arg17[%c20, %c0_192] : memref<40x128xf32, #tpu.memory_space<vmem>>, vector<1x128xf32>
    %146 = arith.addf %144, %145 : vector<1x128xf32>
    %cst_193 = arith.constant 2.500000e-01 : f32
    %147 = vector.broadcast %cst_193 : f32 to vector<1x128xf32>
    %148 = arith.mulf %146, %147 : vector<1x128xf32>
    %c0_194 = arith.constant 0 : index
    %c256_195 = arith.constant 256 : index
    %149 = vector.load %arg18[%c0_194, %c256_195] : memref<8x1152xf32, #tpu.memory_space<vmem>>, vector<1x128xf32>
    tpu.vector_store %arg18[%c0_194, %c256_195], %148 {strides = array<i32>} : memref<8x1152xf32, #tpu.memory_space<vmem>>, vector<1x128xf32>,
    %cst_196 = arith.constant 0.000000e+00 : f32
    %150 = vector.broadcast %cst_196 : f32 to vector<1x128xf32>
    %c8_197 = arith.constant 8 : index
    %c0_198 = arith.constant 0 : index
    %151 = vector.load %arg17[%c8_197, %c0_198] : memref<40x128xf32, #tpu.memory_space<vmem>>, vector<1x128xf32>
    %152 = arith.addf %150, %151 : vector<1x128xf32>
    %c10 = arith.constant 10 : index
    %c0_199 = arith.constant 0 : index
    %153 = vector.load %arg17[%c10, %c0_199] : memref<40x128xf32, #tpu.memory_space<vmem>>, vector<1x128xf32>
    %154 = arith.addf %152, %153 : vector<1x128xf32>
    %c24_200 = arith.constant 24 : index
    %c0_201 = arith.constant 0 : index
    %155 = vector.load %arg17[%c24_200, %c0_201] : memref<40x128xf32, #tpu.memory_space<vmem>>, vector<1x128xf32>
    %156 = arith.addf %154, %155 : vector<1x128xf32>
    %c26 = arith.constant 26 : index
    %c0_202 = arith.constant 0 : index
    %157 = vector.load %arg17[%c26, %c0_202] : memref<40x128xf32, #tpu.memory_space<vmem>>, vector<1x128xf32>
    %158 = arith.addf %156, %157 : vector<1x128xf32>
    %cst_203 = arith.constant 2.500000e-01 : f32
    %159 = vector.broadcast %cst_203 : f32 to vector<1x128xf32>
    %160 = arith.mulf %158, %159 : vector<1x128xf32>
    %c0_204 = arith.constant 0 : index
    %c384_205 = arith.constant 384 : index
    %161 = vector.load %arg18[%c0_204, %c384_205] : memref<8x1152xf32, #tpu.memory_space<vmem>>, vector<1x128xf32>
    tpu.vector_store %arg18[%c0_204, %c384_205], %160 {strides = array<i32>} : memref<8x1152xf32, #tpu.memory_space<vmem>>, vector<1x128xf32>,
    %cst_206 = arith.constant 0.000000e+00 : f32
    %162 = vector.broadcast %cst_206 : f32 to vector<1x128xf32>
    %c9 = arith.constant 9 : index
    %c0_207 = arith.constant 0 : index
    %163 = vector.load %arg17[%c9, %c0_207] : memref<40x128xf32, #tpu.memory_space<vmem>>, vector<1x128xf32>
    %164 = arith.addf %162, %163 : vector<1x128xf32>
    %c11 = arith.constant 11 : index
    %c0_208 = arith.constant 0 : index
    %165 = vector.load %arg17[%c11, %c0_208] : memref<40x128xf32, #tpu.memory_space<vmem>>, vector<1x128xf32>
    %166 = arith.addf %164, %165 : vector<1x128xf32>
    %c25 = arith.constant 25 : index
    %c0_209 = arith.constant 0 : index
    %167 = vector.load %arg17[%c25, %c0_209] : memref<40x128xf32, #tpu.memory_space<vmem>>, vector<1x128xf32>
    %168 = arith.addf %166, %167 : vector<1x128xf32>
    %c27 = arith.constant 27 : index
    %c0_210 = arith.constant 0 : index
    %169 = vector.load %arg17[%c27, %c0_210] : memref<40x128xf32, #tpu.memory_space<vmem>>, vector<1x128xf32>
    %170 = arith.addf %168, %169 : vector<1x128xf32>
    %cst_211 = arith.constant 2.500000e-01 : f32
    %171 = vector.broadcast %cst_211 : f32 to vector<1x128xf32>
    %172 = arith.mulf %170, %171 : vector<1x128xf32>
    %c0_212 = arith.constant 0 : index
    %c512_213 = arith.constant 512 : index
    %173 = vector.load %arg18[%c0_212, %c512_213] : memref<8x1152xf32, #tpu.memory_space<vmem>>, vector<1x128xf32>
    tpu.vector_store %arg18[%c0_212, %c512_213], %172 {strides = array<i32>} : memref<8x1152xf32, #tpu.memory_space<vmem>>, vector<1x128xf32>,
    %cst_214 = arith.constant 0.000000e+00 : f32
    %174 = vector.broadcast %cst_214 : f32 to vector<1x128xf32>
    %c10_215 = arith.constant 10 : index
    %c0_216 = arith.constant 0 : index
    %175 = vector.load %arg17[%c10_215, %c0_216] : memref<40x128xf32, #tpu.memory_space<vmem>>, vector<1x128xf32>
    %176 = arith.addf %174, %175 : vector<1x128xf32>
    %c12 = arith.constant 12 : index
    %c0_217 = arith.constant 0 : index
    %177 = vector.load %arg17[%c12, %c0_217] : memref<40x128xf32, #tpu.memory_space<vmem>>, vector<1x128xf32>
    %178 = arith.addf %176, %177 : vector<1x128xf32>
    %c26_218 = arith.constant 26 : index
    %c0_219 = arith.constant 0 : index
    %179 = vector.load %arg17[%c26_218, %c0_219] : memref<40x128xf32, #tpu.memory_space<vmem>>, vector<1x128xf32>
    %180 = arith.addf %178, %179 : vector<1x128xf32>
    %c28 = arith.constant 28 : index
    %c0_220 = arith.constant 0 : index
    %181 = vector.load %arg17[%c28, %c0_220] : memref<40x128xf32, #tpu.memory_space<vmem>>, vector<1x128xf32>
    %182 = arith.addf %180, %181 : vector<1x128xf32>
    %cst_221 = arith.constant 2.500000e-01 : f32
    %183 = vector.broadcast %cst_221 : f32 to vector<1x128xf32>
    %184 = arith.mulf %182, %183 : vector<1x128xf32>
    %c0_222 = arith.constant 0 : index
    %c640_223 = arith.constant 640 : index
    %185 = vector.load %arg18[%c0_222, %c640_223] : memref<8x1152xf32, #tpu.memory_space<vmem>>, vector<1x128xf32>
    tpu.vector_store %arg18[%c0_222, %c640_223], %184 {strides = array<i32>} : memref<8x1152xf32, #tpu.memory_space<vmem>>, vector<1x128xf32>,
    %cst_224 = arith.constant 0.000000e+00 : f32
    %186 = vector.broadcast %cst_224 : f32 to vector<1x128xf32>
    %c16_225 = arith.constant 16 : index
    %c0_226 = arith.constant 0 : index
    %187 = vector.load %arg17[%c16_225, %c0_226] : memref<40x128xf32, #tpu.memory_space<vmem>>, vector<1x128xf32>
    %188 = arith.addf %186, %187 : vector<1x128xf32>
    %c18_227 = arith.constant 18 : index
    %c0_228 = arith.constant 0 : index
    %189 = vector.load %arg17[%c18_227, %c0_228] : memref<40x128xf32, #tpu.memory_space<vmem>>, vector<1x128xf32>
    %190 = arith.addf %188, %189 : vector<1x128xf32>
    %c32_229 = arith.constant 32 : index
    %c0_230 = arith.constant 0 : index
    %191 = vector.load %arg17[%c32_229, %c0_230] : memref<40x128xf32, #tpu.memory_space<vmem>>, vector<1x128xf32>
    %192 = arith.addf %190, %191 : vector<1x128xf32>
    %c34 = arith.constant 34 : index
    %c0_231 = arith.constant 0 : index
    %193 = vector.load %arg17[%c34, %c0_231] : memref<40x128xf32, #tpu.memory_space<vmem>>, vector<1x128xf32>
    %194 = arith.addf %192, %193 : vector<1x128xf32>
    %cst_232 = arith.constant 2.500000e-01 : f32
    %195 = vector.broadcast %cst_232 : f32 to vector<1x128xf32>
    %196 = arith.mulf %194, %195 : vector<1x128xf32>
    %c0_233 = arith.constant 0 : index
    %c768_234 = arith.constant 768 : index
    %197 = vector.load %arg18[%c0_233, %c768_234] : memref<8x1152xf32, #tpu.memory_space<vmem>>, vector<1x128xf32>
    tpu.vector_store %arg18[%c0_233, %c768_234], %196 {strides = array<i32>} : memref<8x1152xf32, #tpu.memory_space<vmem>>, vector<1x128xf32>,
    %cst_235 = arith.constant 0.000000e+00 : f32
    %198 = vector.broadcast %cst_235 : f32 to vector<1x128xf32>
    %c17_236 = arith.constant 17 : index
    %c0_237 = arith.constant 0 : index
    %199 = vector.load %arg17[%c17_236, %c0_237] : memref<40x128xf32, #tpu.memory_space<vmem>>, vector<1x128xf32>
    %200 = arith.addf %198, %199 : vector<1x128xf32>
    %c19_238 = arith.constant 19 : index
    %c0_239 = arith.constant 0 : index
    %201 = vector.load %arg17[%c19_238, %c0_239] : memref<40x128xf32, #tpu.memory_space<vmem>>, vector<1x128xf32>
    %202 = arith.addf %200, %201 : vector<1x128xf32>
    %c33_240 = arith.constant 33 : index
    %c0_241 = arith.constant 0 : index
    %203 = vector.load %arg17[%c33_240, %c0_241] : memref<40x128xf32, #tpu.memory_space<vmem>>, vector<1x128xf32>
    %204 = arith.addf %202, %203 : vector<1x128xf32>
    %c35 = arith.constant 35 : index
    %c0_242 = arith.constant 0 : index
    %205 = vector.load %arg17[%c35, %c0_242] : memref<40x128xf32, #tpu.memory_space<vmem>>, vector<1x128xf32>
    %206 = arith.addf %204, %205 : vector<1x128xf32>
    %cst_243 = arith.constant 2.500000e-01 : f32
    %207 = vector.broadcast %cst_243 : f32 to vector<1x128xf32>
    %208 = arith.mulf %206, %207 : vector<1x128xf32>
    %c0_244 = arith.constant 0 : index
    %c896_245 = arith.constant 896 : index
    %209 = vector.load %arg18[%c0_244, %c896_245] : memref<8x1152xf32, #tpu.memory_space<vmem>>, vector<1x128xf32>
    tpu.vector_store %arg18[%c0_244, %c896_245], %208 {strides = array<i32>} : memref<8x1152xf32, #tpu.memory_space<vmem>>, vector<1x128xf32>,
    %cst_246 = arith.constant 0.000000e+00 : f32
    %210 = vector.broadcast %cst_246 : f32 to vector<1x128xf32>
    %c18_247 = arith.constant 18 : index
    %c0_248 = arith.constant 0 : index
    %211 = vector.load %arg17[%c18_247, %c0_248] : memref<40x128xf32, #tpu.memory_space<vmem>>, vector<1x128xf32>
    %212 = arith.addf %210, %211 : vector<1x128xf32>
    %c20_249 = arith.constant 20 : index
    %c0_250 = arith.constant 0 : index
    %213 = vector.load %arg17[%c20_249, %c0_250] : memref<40x128xf32, #tpu.memory_space<vmem>>, vector<1x128xf32>
    %214 = arith.addf %212, %213 : vector<1x128xf32>
    %c34_251 = arith.constant 34 : index
    %c0_252 = arith.constant 0 : index
    %215 = vector.load %arg17[%c34_251, %c0_252] : memref<40x128xf32, #tpu.memory_space<vmem>>, vector<1x128xf32>
    %216 = arith.addf %214, %215 : vector<1x128xf32>
    %c36 = arith.constant 36 : index
    %c0_253 = arith.constant 0 : index
    %217 = vector.load %arg17[%c36, %c0_253] : memref<40x128xf32, #tpu.memory_space<vmem>>, vector<1x128xf32>
    %218 = arith.addf %216, %217 : vector<1x128xf32>
    %cst_254 = arith.constant 2.500000e-01 : f32
    %219 = vector.broadcast %cst_254 : f32 to vector<1x128xf32>
    %220 = arith.mulf %218, %219 : vector<1x128xf32>
    %c0_255 = arith.constant 0 : index
    %c1024_256 = arith.constant 1024 : index
    %221 = vector.load %arg18[%c0_255, %c1024_256] : memref<8x1152xf32, #tpu.memory_space<vmem>>, vector<1x128xf32>
    tpu.vector_store %arg18[%c0_255, %c1024_256], %220 {strides = array<i32>} : memref<8x1152xf32, #tpu.memory_space<vmem>>, vector<1x128xf32>,
    %c0_257 = arith.constant 0 : index
    %c0_258 = arith.constant 0 : index
    %222 = vector.load %arg18[%c0_257, %c0_258] : memref<8x1152xf32, #tpu.memory_space<vmem>>, vector<8x1152xf32>
    %223 = arith.truncf %222 : vector<8x1152xf32> to vector<8x1152xbf16>
    %c0_259 = arith.constant 0 : index
    %c0_260 = arith.constant 0 : index
    %224 = vector.load %arg6[%c0_259, %c0_260] : memref<1152x128xbf16, #tpu.memory_space<vmem>>, vector<1152x128xbf16>
    %cst_261 = arith.constant dense<0.000000e+00> : vector<8x128xf32>
    %225 = tpu.matmul %223, %224, %cst_261 {dimension_numbers = #tpu.dot_dimension_numbers<[1], [0], [0], [1], [0, 0, 1, 1], [], []>} : vector<8x1152xbf16>, vector<1152x128xbf16>, vector<8x128xf32> -> vector<8x128xf32>
    %c0_262 = arith.constant 0 : index
    %c0_263 = arith.constant 0 : index
    %226 = vector.load %arg7[%c0_262, %c0_263] : memref<1x128xf32, #tpu.memory_space<vmem>>, vector<1x128xf32>
    %227 = vector.broadcast %226 : vector<1x128xf32> to vector<8x128xf32>
    %228 = arith.addf %225, %227 : vector<8x128xf32>
    %229 = arith.truncf %228 : vector<8x128xf32> to vector<8x128xbf16>
    %c0_264 = arith.constant 0 : index
    %c0_265 = arith.constant 0 : index
    %230 = vector.load %arg8[%c0_264, %c0_265] : memref<128x384xbf16, #tpu.memory_space<vmem>>, vector<128x384xbf16>
    %cst_266 = arith.constant dense<0.000000e+00> : vector<8x384xf32>
    %231 = tpu.matmul %229, %230, %cst_266 {dimension_numbers = #tpu.dot_dimension_numbers<[1], [0], [0], [1], [0, 0, 1, 1], [], []>} : vector<8x128xbf16>, vector<128x384xbf16>, vector<8x384xf32> -> vector<8x384xf32>
    %c0_267 = arith.constant 0 : index
    %c0_268 = arith.constant 0 : index
    %232 = vector.load %arg9[%c0_267, %c0_268] : memref<1x384xf32, #tpu.memory_space<vmem>>, vector<1x384xf32>
    %233 = vector.broadcast %232 : vector<1x384xf32> to vector<8x384xf32>
    %234 = arith.addf %231, %233 : vector<8x384xf32>
    %cst_269 = arith.constant 0.000000e+00 : f32
    %235 = vector.broadcast %cst_269 : f32 to vector<8x384xf32>
    %236 = arith.cmpf ogt, %234, %235 : vector<8x384xf32>
    %cst_270 = arith.constant 2.000000e-01 : f32
    %237 = vector.broadcast %cst_270 : f32 to vector<8x384xf32>
    %238 = arith.mulf %237, %234 : vector<8x384xf32>
    %239 = arith.select %236, %234, %238 : vector<8x384xi1>, vector<8x384xf32>
    %240 = arith.truncf %239 : vector<8x384xf32> to vector<8x384xbf16>
    %c0_271 = arith.constant 0 : index
    %c0_272 = arith.constant 0 : index
    %241 = vector.load %arg10[%c0_271, %c0_272] : memref<384x256xbf16, #tpu.memory_space<vmem>>, vector<384x256xbf16>
    %cst_273 = arith.constant dense<0.000000e+00> : vector<8x256xf32>
    %242 = tpu.matmul %240, %241, %cst_273 {dimension_numbers = #tpu.dot_dimension_numbers<[1], [0], [0], [1], [0, 0, 1, 1], [], []>} : vector<8x384xbf16>, vector<384x256xbf16>, vector<8x256xf32> -> vector<8x256xf32>
    %c0_274 = arith.constant 0 : index
    %c0_275 = arith.constant 0 : index
    %243 = vector.load %arg11[%c0_274, %c0_275] : memref<1x256xf32, #tpu.memory_space<vmem>>, vector<1x256xf32>
    %244 = vector.broadcast %243 : vector<1x256xf32> to vector<8x256xf32>
    %245 = arith.addf %242, %244 : vector<8x256xf32>
    %cst_276 = arith.constant 0.000000e+00 : f32
    %246 = vector.broadcast %cst_276 : f32 to vector<8x256xf32>
    %247 = arith.cmpf ogt, %245, %246 : vector<8x256xf32>
    %cst_277 = arith.constant 2.000000e-01 : f32
    %248 = vector.broadcast %cst_277 : f32 to vector<8x256xf32>
    %249 = arith.mulf %248, %245 : vector<8x256xf32>
    %250 = arith.select %247, %245, %249 : vector<8x256xi1>, vector<8x256xf32>
    %c0_278 = arith.constant 0 : index
    %c0_279 = arith.constant 0 : index
    %251 = vector.load %arg12[%c0_278, %c0_279] : memref<1x256xf32, #tpu.memory_space<vmem>>, vector<1x256xf32>
    %252 = vector.broadcast %251 : vector<1x256xf32> to vector<8x256xf32>
    %253 = arith.mulf %250, %252 : vector<8x256xf32>
    %cst_280 = arith.constant dense<0.000000e+00> : vector<8xf32>
    %254 = vector.multi_reduction <add>, %253, %cst_280 [1] : vector<8x256xf32> to vector<8xf32>
    %255 = vector.shape_cast %254 : vector<8xf32> to vector<8x1xf32>
    %c0_281 = arith.constant 0 : index
    %c0_282 = arith.constant 0 : index
    %256 = vector.load %arg13[%c0_281, %c0_282] : memref<1x1xf32, #tpu.memory_space<vmem>>, vector<1x1xf32>
    %257 = vector.broadcast %256 : vector<1x1xf32> to vector<8x1xf32>
    %258 = arith.addf %255, %257 : vector<8x1xf32>
    %259 = vector.shape_cast %258 : vector<8x1xf32> to vector<8x1xf32>
    %260 = vector.broadcast %259 : vector<8x1xf32> to vector<8x128xf32>
    %c0_283 = arith.constant 0 : index
    %c0_284 = arith.constant 0 : index
    %c0_285 = arith.constant 0 : index
    %261 = vector.load %arg14[%c0_283, %c0_284, %c0_285] : memref<1x8x128xf32, #tpu.memory_space<vmem>>, vector<1x8x128xf32>
    %262 = vector.shape_cast %261 : vector<1x8x128xf32> to vector<8x128xf32>
    %263 = vector.shape_cast %260 : vector<8x128xf32> to vector<1x8x128xf32>
    tpu.vector_store %arg14[%c0_283, %c0_284, %c0_285], %263 {strides = array<i32>} : memref<1x8x128xf32, #tpu.memory_space<vmem>>, vector<1x8x128xf32>,
    return
  }
  func.func @transform_0(%arg0: i32) -> (i32, i32, i32) {
    %c0_i32 = arith.constant 0 : i32
    %c0_i32_0 = arith.constant 0 : i32
    %c0_i32_1 = arith.constant 0 : i32
    return %arg0, %c0_i32, %c0_i32_0 : i32, i32, i32
  }
  func.func @transform_1(%arg0: i32) -> (i32, i32) {
    %c0_i32 = arith.constant 0 : i32
    %c0_i32_0 = arith.constant 0 : i32
    %c0_i32_1 = arith.constant 0 : i32
    return %c0_i32, %c0_i32_0 : i32, i32
  }
  func.func @transform_2(%arg0: i32) -> (i32, i32) {
    %c0_i32 = arith.constant 0 : i32
    %c0_i32_0 = arith.constant 0 : i32
    %c0_i32_1 = arith.constant 0 : i32
    return %c0_i32, %c0_i32_0 : i32, i32
  }
  func.func @transform_3(%arg0: i32) -> (i32, i32) {
    %c0_i32 = arith.constant 0 : i32
    %c0_i32_0 = arith.constant 0 : i32
    %c0_i32_1 = arith.constant 0 : i32
    return %c0_i32, %c0_i32_0 : i32, i32
  }
  func.func @transform_4(%arg0: i32) -> (i32, i32) {
    %c0_i32 = arith.constant 0 : i32
    %c0_i32_0 = arith.constant 0 : i32
    %c0_i32_1 = arith.constant 0 : i32
    return %c0_i32, %c0_i32_0 : i32, i32
  }
  func.func @transform_5(%arg0: i32) -> (i32, i32) {
    %c0_i32 = arith.constant 0 : i32
    %c0_i32_0 = arith.constant 0 : i32
    %c0_i32_1 = arith.constant 0 : i32
    return %c0_i32, %c0_i32_0 : i32, i32
  }
  func.func @transform_6(%arg0: i32) -> (i32, i32) {
    %c0_i32 = arith.constant 0 : i32
    %c0_i32_0 = arith.constant 0 : i32
    %c0_i32_1 = arith.constant 0 : i32
    return %c0_i32, %c0_i32_0 : i32, i32
  }
  func.func @transform_7(%arg0: i32) -> (i32, i32) {
    %c0_i32 = arith.constant 0 : i32
    %c0_i32_0 = arith.constant 0 : i32
    %c0_i32_1 = arith.constant 0 : i32
    return %c0_i32, %c0_i32_0 : i32, i32
  }
  func.func @transform_8(%arg0: i32) -> (i32, i32) {
    %c0_i32 = arith.constant 0 : i32
    %c0_i32_0 = arith.constant 0 : i32
    %c0_i32_1 = arith.constant 0 : i32
    return %c0_i32, %c0_i32_0 : i32, i32
  }
  func.func @transform_9(%arg0: i32) -> (i32, i32) {
    %c0_i32 = arith.constant 0 : i32
    %c0_i32_0 = arith.constant 0 : i32
    %c0_i32_1 = arith.constant 0 : i32
    return %c0_i32, %c0_i32_0 : i32, i32
  }
  func.func @transform_10(%arg0: i32) -> (i32, i32) {
    %c0_i32 = arith.constant 0 : i32
    %c0_i32_0 = arith.constant 0 : i32
    %c0_i32_1 = arith.constant 0 : i32
    return %c0_i32, %c0_i32_0 : i32, i32
  }
  func.func @transform_11(%arg0: i32) -> (i32, i32) {
    %c0_i32 = arith.constant 0 : i32
    %c0_i32_0 = arith.constant 0 : i32
    %c0_i32_1 = arith.constant 0 : i32
    return %c0_i32, %c0_i32_0 : i32, i32
  }
  func.func @transform_12(%arg0: i32) -> (i32, i32) {
    %c0_i32 = arith.constant 0 : i32
    %c0_i32_0 = arith.constant 0 : i32
    %c0_i32_1 = arith.constant 0 : i32
    return %c0_i32, %c0_i32_0 : i32, i32
  }
  func.func @transform_13(%arg0: i32) -> (i32, i32, i32) {
    %c0_i32 = arith.constant 0 : i32
    %c0_i32_0 = arith.constant 0 : i32
    %c0_i32_1 = arith.constant 0 : i32
    return %arg0, %c0_i32, %c0_i32_0 : i32, i32, i32
  }
}

</mosaic_0001>

<bundles_post_ra>
// kernel: discriminator_forward.1
= control target key start
LH: loop header
LB: loop body
LE: loop exit
PB: predicated region body
PF: predicated region fallthrough
CT: control target
= control target key end

     0   :  { %s6202_s27 = smov 0   ;;  %s7376_s0 = inlined_call_operand.vmem [shape: bf16[2,176,1024], index: 0, kind: input, shape index: {}]   ;;  %s7377_s1 = inlined_call_operand.vmem [shape: bf16[1024,128], index: 1, kind: input, shape index: {}]   ;;  %s7378_s2 = inlined_call_operand.vmem [shape: f32[1,128], index: 2, kind: input, shape index: {}]   ;;  %s7379_s3 = inlined_call_operand.vmem [shape: bf16[1152,128], index: 3, kind: input, shape index: {}]   ;;  %s7380_s4 = inlined_call_operand.vmem [shape: f32[1,128], index: 4, kind: input, shape index: {}]   ;;  %s7381_s5 = inlined_call_operand.vmem [shape: bf16[1152,128], index: 5, kind: input, shape index: {}]   ;;  %s7382_s6 = inlined_call_operand.vmem [shape: f32[1,128], index: 6, kind: input, shape index: {}]   ;;  %s7383_s7 = inlined_call_operand.vmem [shape: bf16[128,384], index: 7, kind: input, shape index: {}]   ;;  %s7384_s8 = inlined_call_operand.vmem [shape: f32[1,384], index: 8, kind: input, shape index: {}]   ;;  %s7385_s9 = inlined_call_operand.vmem [shape: bf16[384,256], index: 9, kind: input, shape index: {}]   ;;  %s7386_s10 = inlined_call_operand.vmem [shape: f32[1,256], index: 10, kind: input, shape index: {}]   ;;  %s7387_s11 = inlined_call_operand.vmem [shape: f32[1,256], index: 11, kind: input, shape index: {}]   ;;  %s7388_s12 = inlined_call_operand.<no memory space> [shape: f32[1,1], index: 12, kind: input, shape index: {}]   ;;  %s7389_s13 = inlined_call_operand.vmem [shape: f32[2,8,128], index: 13, kind: output, shape index: {}]  }
   0x1   :  { %v18_v0 = vstv %s7388_s12 }
   0x2   :  { %19 = vst [vmem:[#allocation6] sm:$0x1] %v18_v0 }
   0x3 LB: > { %s4740_s28 = sadd.s32 4294967295, %s6124_s27   ;;  %p4744_p0 = scmp.ge.s32.totalorder %s6124_s27, 1  ;;  %s6124_s27 = sphi %s6202_s27, %s25_s27  }
   0x4   : > { %p389_p1 = scmp.lt.s32.totalorder %s6124_s27, 3 }
   0x6   : > { %p390_p2 = pnand %p4744_p0, %p389_p1 }
   0x7   : > { %v5805_v1 = vld [vmem:[%s7377_s1 + $0x40] sm:$0xff] (!%p390_p2)   ;;  %p432_p3 = scmp.lt.s32.totalorder (!%p390_p2), %s4740_s28, 1  ;;  %v5807_v3 = vld [vmem:[%s7377_s1 + $0x48] sm:$0xff] (!%p390_p2)   ;;  %v5809_v5 = vld [vmem:[%s7377_s1 + $0x50] sm:$0xff] (!%p390_p2)   ;;  %vm6127_vm0 = vmmov (!%p390_p2), 0  }
   0x8   : > { %393 = sbr.rel (%p390_p2) target bundleno = 1801 (0x709), region = 72  ;;  %v5806_v2 = vld [vmem:[%s7377_s1] sm:$0xff] (!%p390_p2)   ;;  %5770 = vmatprep.subr.bf16.mxu1 (!%p390_p2), %v5805_v1  ;;  %5121 = vmatprep.subr.bf16.mxu0 (!%p390_p2), %v5805_v1  ;;  %v5808_v4 = vld [vmem:[%s7377_s1 + $0x8] sm:$0xff] (!%p390_p2)   ;;  %v5810_v6 = vld [vmem:[%s7377_s1 + $0x10] sm:$0xff] (!%p390_p2)  }
   0x9   : > { %5778 = vmatpush3.bf16.msra.mxu1 (!%p390_p2), %v5806_v2  ;;  %5122 = vmatpush3.bf16.msra.mxu0 (!%p390_p2), %v5806_v2  ;;  %v5811_v7 = vld [vmem:[%s7377_s1 + $0x58] sm:$0xff] (!%p390_p2)   ;;  %v5813_v9 = vld [vmem:[%s7377_s1 + $0x60] sm:$0xff] (!%p390_p2)   ;;  %v5815_v11 = vld [vmem:[%s7377_s1 + $0x68] sm:$0xff] (!%p390_p2)  }
   0xa   : > { %5771 = vmatprep.subr.bf16.mxu1 (!%p390_p2), %v5807_v3  ;;  %5123 = vmatprep.subr.bf16.mxu0 (!%p390_p2), %v5807_v3  ;;  %v5812_v8 = vld [vmem:[%s7377_s1 + $0x18] sm:$0xff] (!%p390_p2)   ;;  %v5814_v10 = vld [vmem:[%s7377_s1 + $0x20] sm:$0xff] (!%p390_p2)   ;;  %v5816_v15 = vld [vmem:[%s7377_s1 + $0x28] sm:$0xff] (!%p390_p2)  }
   0xb   : > { %v5817_v16 = vld [vmem:[%s7377_s1 + $0x70] sm:$0xff] (!%p390_p2)   ;;  %v5819_v21 = vld [vmem:[%s7377_s1 + $0x78] sm:$0xff] (!%p390_p2)   ;;  %v5821_v23 = vld [vmem:[%s7377_s1 + $0xc0] sm:$0xff] (!%p390_p2)  }
   0xc   : > { %v5818_v20 = vld [vmem:[%s7377_s1 + $0x30] sm:$0xff] (!%p390_p2)   ;;  %v5820_v22 = vld [vmem:[%s7377_s1 + $0x38] sm:$0xff] (!%p390_p2)   ;;  %v5828_v27 = vld [vmem:[%s7377_s1 + $0x140] sm:$0xff] (!%p390_p2)  }
   0xd   : > { %5779 = vmatpush3.bf16.msra.mxu1 (!%p390_p2), %v5808_v4  ;;  %5124 = vmatpush3.bf16.msra.mxu0 (!%p390_p2), %v5808_v4  ;;  %v5822_v31 = vld [vmem:[%s7377_s1 + $0x80] sm:$0xff] (!%p390_p2)   ;;  %v5823_v33 = vld [vmem:[%s7377_s1 + $0xc8] sm:$0xff] (!%p390_p2)   ;;  %v5825_v37 = vld [vmem:[%s7377_s1 + $0xd0] sm:$0xff] (!%p390_p2)  }
   0xe   : > { %5772 = vmatprep.subr.bf16.mxu1 (!%p390_p2), %v5809_v5  ;;  %5125 = vmatprep.subr.bf16.mxu0 (!%p390_p2), %v5809_v5  ;;  %v5824_v35 = vld [vmem:[%s7377_s1 + $0x88] sm:$0xff] (!%p390_p2)   ;;  %v5830_v36 = vld [vmem:[%s7377_s1 + $0x100] sm:$0xff] (!%p390_p2)   ;;  %v5826_v46 = vld [vmem:[%s7377_s1 + $0x90] sm:$0xff] (!%p390_p2)  }
   0xf   : > { %s7391_s28 = smov (!%p432_p3, %s4740_s28), 1  ;;  %v5831_v40 = vld [vmem:[%s7377_s1 + $0x148] sm:$0xff]   ;;  %v5827_v48 = vld [vmem:[%s7377_s1 + $0xd8] sm:$0xff]   ;;  %v5835_v51 = vld [vmem:[%s7377_s1 + $0x150] sm:$0xff]  }
  0x10   : > { %s5792_s25 = smul.u32 704, %s7391_s28  ;;  %v5832_v41 = vld [vmem:[%s7377_s1 + $0x108] sm:$0xff]   ;;  %v5829_v50 = vld [vmem:[%s7377_s1 + $0x98] sm:$0xff]   ;;  %v5836_v54 = vld [vmem:[%s7377_s1 + $0x110] sm:$0xff]   ;;  %s4746_s18 = sshll.u32 %s7391_s28, 3 }
  0x11   : > { %5780 = vmatpush3.bf16.msra.mxu1 %v5810_v6  ;;  %5126 = vmatpush3.bf16.msra.mxu0 %v5810_v6  ;;  %v5838_v55 = vld [vmem:[%s7377_s1 + $0x158] sm:$0xff]   ;;  %v5833_v56 = vld [vmem:[%s7377_s1 + $0xe0] sm:$0xff]   ;;  %v5837_v63 = vld [vmem:[%s7377_s1 + $0xe8] sm:$0xff]   ;;  %s440_s21 = scalar_lea.vmem %s7389_s13, %s4746_s18 }
  0x12   : > { %5773 = vmatprep.subr.bf16.mxu1 %v5811_v7  ;;  %5127 = vmatprep.subr.bf16.mxu0 %v5811_v7  ;;  %s6243_s16 = scalar_lea.vmem %s7376_s0, %s5792_s25  ;;  %v5834_v62 = vld [vmem:[%s7377_s1 + $0xa0] sm:$0xff]   ;;  %v5840_v0 = vld [vmem:[%s7377_s1 + $0x118] sm:$0xff]   ;;  %v5839_v1 = vld [vmem:[%s7377_s1 + $0xa8] sm:$0xff]  }
  0x13   : > { %v536_v12 = vld [vmem:[%s6243_s16 + $0x140] sm:$0xff]  ;;  %v5843_v7 = vld [vmem:[%s7377_s1 + $0xf0] sm:$0xff]  }
  0x14   : > { %v540_v13 = vld [vmem:[%s6243_s16 + $0x160] sm:$0xff] }
  0x15   : > { %5781 = vmatpush3.bf16.msra.mxu1 %v5812_v8  ;;  %5128 = vmatpush3.bf16.msra.mxu0 %v5812_v8  ;;  %v4789_v14 = vcombine.high %v536_v12, %v540_v13  ;;  %v496_v17 = vld [vmem:[%s6243_s16] sm:$0xff]  ;;  %v4788_v29 = vcombine.low %v536_v12, %v540_v13  ;;  %v5845_v8 = vld [vmem:[%s7377_s1 + $0x168] sm:$0xff]  }
  0x16   : > { %5774 = vmatprep.subr.bf16.mxu1 %v5813_v9  ;;  %5129 = vmatprep.subr.bf16.mxu0 %v5813_v9  ;;  %v500_v18 = vld [vmem:[%s6243_s16 + $0x20] sm:$0xff] }
  0x17   : > { %1615 = vmatprep.mubr.bf16.mxu1 %v4789_v14  ;;  %v4749_v19 = vcombine.high %v496_v17, %v500_v18  ;;  %v544_v24 = vld [vmem:[%s6243_s16 + $0x180] sm:$0xff]  ;;  %v4748_v30 = vcombine.low %v496_v17, %v500_v18  ;;  %v5844_v14 = vld [vmem:[%s7377_s1 + $0xb0] sm:$0xff]   ;;  %v5847_v17 = vld [vmem:[%s7377_s1 + $0xf8] sm:$0xff]  }
  0x18   : > { %v548_v25 = vld [vmem:[%s6243_s16 + $0x1a0] sm:$0xff]  ;;  %v5848_v18 = vld [vmem:[%s7377_s1 + $0x170] sm:$0xff]  }
  0x19   : > { %5782 = vmatpush3.bf16.msra.mxu1 %v5814_v10  ;;  %5130 = vmatpush3.bf16.msra.mxu0 %v5814_v10  ;;  %v504_v26 = vld [vmem:[%s6243_s16 + $0x40] sm:$0xff]  ;;  %v4797_v32 = vcombine.high %v544_v24, %v548_v25  ;;  %v4796_v44 = vcombine.low %v544_v24, %v548_v25  ;;  %v498_v24 = vld [vmem:[%s6243_s16 + $0x10] sm:$0xff] }
  0x1a   : > { %5775 = vmatprep.subr.bf16.mxu1 %v5815_v11  ;;  %5131 = vmatprep.subr.bf16.mxu0 %v5815_v11  ;;  %v508_v28 = vld [vmem:[%s6243_s16 + $0x60] sm:$0xff]  ;;  %v502_v25 = vld [vmem:[%s6243_s16 + $0x30] sm:$0xff] }
  0x1b   : > { %1575 = vmatprep.mubr.bf16.mxu0 %v4749_v19  ;;  %v4757_v34 = vcombine.high %v504_v26, %v508_v28  ;;  %v552_v38 = vld [vmem:[%s6243_s16 + $0x1c0] sm:$0xff]  ;;  %v4756_v45 = vcombine.low %v504_v26, %v508_v28  ;;  %v5851_v26 = vld [vmem:[%s7377_s1 + $0x178] sm:$0xff]  }
  0x1c   : > { %v556_v39 = vld [vmem:[%s6243_s16 + $0x1e0] sm:$0xff] }
  0x1d   : > { %5783 = vmatpush3.bf16.msra.mxu1 %v5816_v15  ;;  %5132 = vmatpush3.bf16.msra.mxu0 %v5816_v15  ;;  %v512_v42 = vld [vmem:[%s6243_s16 + $0x80] sm:$0xff]  ;;  %v4805_v47 = vcombine.high %v552_v38, %v556_v39  ;;  %v4804_v58 = vcombine.low %v552_v38, %v556_v39  ;;  %v5846_v15 = vld [vmem:[%s7377_s1 + $0x128] sm:$0xff]  }
  0x1e   : > { %5776 = vmatprep.subr.bf16.mxu1 %v5817_v16  ;;  %5133 = vmatprep.subr.bf16.mxu0 %v5817_v16  ;;  %v516_v43 = vld [vmem:[%s6243_s16 + $0xa0] sm:$0xff] }
  0x1f   : > { %v4765_v49 = vcombine.high %v512_v42, %v516_v43  ;;  %v560_v52 = vld [vmem:[%s6243_s16 + $0x200] sm:$0xff]  ;;  %v4764_v59 = vcombine.low %v512_v42, %v516_v43  ;;  %v514_v42 = vld [vmem:[%s6243_s16 + $0x90] sm:$0xff] }
  0x20   : > { %v564_v53 = vld [vmem:[%s6243_s16 + $0x220] sm:$0xff]  ;;  %v518_v43 = vld [vmem:[%s6243_s16 + $0xb0] sm:$0xff] }
  0x21   : > { %5784 = vmatpush3.bf16.msra.mxu1 %v5818_v20  ;;  %5134 = vmatpush3.bf16.msra.mxu0 %v5818_v20  ;;  %v520_v57 = vld [vmem:[%s6243_s16 + $0xc0] sm:$0xff]  ;;  %v4813_v61 = vcombine.high %v560_v52, %v564_v53  ;;  %v4812_v11 = vcombine.low %v560_v52, %v564_v53  ;;  %v517_v52 = vld [vmem:[%s6243_s16 + $0xa8] sm:$0xff]  ;;  %v5857_v53 = vld [vmem:[%s7377_s1 + $0x1d0] sm:$0xff]  }
  0x22   : > { %5777 = vmatprep.subr.bf16.mxu1 %v5819_v21  ;;  %5135 = vmatprep.subr.bf16.mxu0 %v5819_v21  ;;  %v524_v60 = vld [vmem:[%s6243_s16 + $0xe0] sm:$0xff]  ;;  %v5849_v21 = vld [vmem:[%s7377_s1 + $0xb8] sm:$0xff]  }
  0x23   : > { %v4773_v2 = vcombine.high %v520_v57, %v524_v60  ;;  %v5841_v3 = vld [vmem:[%s7377_s1 + $0x160] sm:$0xff]   ;;  %v4772_v12 = vcombine.low %v520_v57, %v524_v60  ;;  %v4768_v57 = vcombine.low %v514_v42, %v518_v43 }
  0x24   : > { %v568_v4 = vld [vmem:[%s6243_s16 + $0x240] sm:$0xff] }
  0x25   : > { %5785 = vmatpush3.bf16.msra.mxu1 %v5820_v22  ;;  %5136 = vmatpush3.bf16.msra.mxu0 %v5820_v22  ;;  %v572_v5 = vld [vmem:[%s6243_s16 + $0x260] sm:$0xff]  ;;  %v5850_v22 = vld [vmem:[%s7377_s1 + $0x130] sm:$0xff]  }
  0x26   : > { %5203 = vmatprep.subr.bf16.mxu1 %v5821_v23  ;;  %5285 = vmatprep.subr.bf16.mxu0 %v5828_v27  ;;  %v5842_v6 = vld [vmem:[%s7377_s1 + $0x120] sm:$0xff]   ;;  %v4821_v13 = vcombine.high %v568_v4, %v572_v5  ;;  %v4820_v27 = vcombine.low %v568_v4, %v572_v5 }
  0x27   : > { %v528_v9 = vld [vmem:[%s6243_s16 + $0x100] sm:$0xff] }
  0x28   : > { %1616 = vmatmul.mubr.bf16.vlgmr.msra.gmra.mrb[0].mxu1 %v4788_v29  ;;  %1576 = vmatmul.mubr.bf16.vlgmr.msra.gmra.mrb[0].mxu0 %v4748_v30  ;;  %v532_v10 = vld [vmem:[%s6243_s16 + $0x120] sm:$0xff]  ;;  %v4753_v30 = vcombine.high %v498_v24, %v502_v25 }
  0x29   : > { %5204 = vmatpush3.bf16.msra.mxu1 %v5822_v31  ;;  %1623 = vmatprep.mubr.bf16.mxu1 %v4797_v32  ;;  %v4781_v16 = vcombine.high %v528_v9, %v532_v10  ;;  %v576_v19 = vld [vmem:[%s6243_s16 + $0x280] sm:$0xff]  ;;  %v4780_v28 = vcombine.low %v528_v9, %v532_v10  ;;  %v5852_v31 = vld [vmem:[%s7377_s1 + $0x138] sm:$0xff]   ;;  %v497_v32 = vld [vmem:[%s6243_s16 + $0x8] sm:$0xff] }
  0x2a   : > { %5205 = vmatprep.subr.bf16.mxu1 %v5823_v33  ;;  %1583 = vmatprep.mubr.bf16.mxu0 %v4757_v34  ;;  %v580_v20 = vld [vmem:[%s6243_s16 + $0x2a0] sm:$0xff]  ;;  %v501_v33 = vld [vmem:[%s6243_s16 + $0x28] sm:$0xff]  ;;  %v506_v34 = vld [vmem:[%s6243_s16 + $0x50] sm:$0xff] }
  0x2b   : > { %5286 = vmatpush3.bf16.msra.mxu0 %v5830_v36  ;;  %v5853_v23 = vld [vmem:[%s7377_s1 + $0x1c0] sm:$0xff]   ;;  %v4829_v29 = vcombine.high %v576_v19, %v580_v20  ;;  %v4828_v36 = vcombine.low %v576_v19, %v580_v20  ;;  %v4751_v38 = vcombine.high %v497_v32, %v501_v33  ;;  %v5863_v9 = vld [vmem:[%s7377_s1 + $0x1e8] sm:$0xff]  }
  0x2c   : > { %5287 = vmatprep.subr.bf16.mxu0 %v5831_v40  ;;  %v505_v40 = vld [vmem:[%s6243_s16 + $0x48] sm:$0xff] }
  0x2d   : > { %5206 = vmatpush3.bf16.msra.mxu1 %v5824_v35  ;;  %v510_v35 = vld [vmem:[%s6243_s16 + $0x70] sm:$0xff]  ;;  %v529_v10 = vld [vmem:[%s6243_s16 + $0x108] sm:$0xff] }
  0x2e   : > { %5207 = vmatprep.subr.bf16.mxu1 %v5825_v37  ;;  %v4752_v37 = vcombine.low %v498_v24, %v502_v25  ;;  %v4761_v39 = vcombine.high %v506_v34, %v510_v35  ;;  %v546_v24 = vld [vmem:[%s6243_s16 + $0x190] sm:$0xff] }
  0x2f   : > { %5288 = vmatpush3.bf16.msra.mxu0 %v5832_v41  ;;  %v509_v41 = vld [vmem:[%s6243_s16 + $0x68] sm:$0xff]  ;;  %v550_v25 = vld [vmem:[%s6243_s16 + $0x1b0] sm:$0xff] }
  0x30   : > { %1624 = vmatmul.mubr.bf16.gmra.mrb[4].mxu1 %v4796_v44  ;;  %1584 = vmatmul.mubr.bf16.gmra.mrb[4].mxu0 %v4756_v45  ;;  %v4750_v44 = vcombine.low %v497_v32, %v501_v33  ;;  %v4760_v45 = vcombine.low %v506_v34, %v510_v35  ;;  %v549_v32 = vld [vmem:[%s6243_s16 + $0x1a8] sm:$0xff]  ;;  %v554_v33 = vld [vmem:[%s6243_s16 + $0x1d0] sm:$0xff] }
  0x31   : > { %5208 = vmatpush3.bf16.msra.mxu1 %v5826_v46  ;;  %1631 = vmatprep.mubr.bf16.mxu1 %v4805_v47  ;;  %v5854_v46 = vld [vmem:[%s7377_s1 + $0x180] sm:$0xff]   ;;  %v4759_v47 = vcombine.high %v505_v40, %v509_v41  ;;  %v558_v34 = vld [vmem:[%s6243_s16 + $0x1f0] sm:$0xff] }
  0x32   : > { %5209 = vmatprep.subr.bf16.mxu1 %v5827_v48  ;;  %1591 = vmatprep.mubr.bf16.mxu0 %v4765_v49  ;;  %v5855_v48 = vld [vmem:[%s7377_s1 + $0x1c8] sm:$0xff]   ;;  %v4769_v49 = vcombine.high %v514_v42, %v518_v43  ;;  %v566_v42 = vld [vmem:[%s6243_s16 + $0x230] sm:$0xff] }
  0x33   : > { %5289 = vmatprep.subr.bf16.mxu0 %v5835_v51  ;;  %v513_v51 = vld [vmem:[%s6243_s16 + $0x88] sm:$0xff] }
  0x34   : > { %5290 = vmatpush3.bf16.msra.mxu0 %v5836_v54  ;;  %v522_v54 = vld [vmem:[%s6243_s16 + $0xd0] sm:$0xff]  ;;  %v4766_v4 = vcombine.low %v513_v51, %v517_v52 }
  0x35   : > { %5210 = vmatpush3.bf16.msra.mxu1 %v5829_v50  ;;  %5291 = vmatprep.subr.bf16.mxu0 %v5838_v55  ;;  %v5856_v50 = vld [vmem:[%s7377_s1 + $0x188] sm:$0xff]   ;;  %v526_v55 = vld [vmem:[%s6243_s16 + $0xf0] sm:$0xff] }
  0x36   : > { %5211 = vmatprep.subr.bf16.mxu1 %v5833_v56  ;;  %v4758_v56 = vcombine.low %v505_v40, %v509_v41  ;;  %v4777_v60 = vcombine.high %v522_v54, %v526_v55  ;;  %v4776_v5 = vcombine.low %v522_v54, %v526_v55  ;;  %v557_v40 = vld [vmem:[%s6243_s16 + $0x1e8] sm:$0xff]  ;;  %v562_v41 = vld [vmem:[%s6243_s16 + $0x210] sm:$0xff] }
  0x37   : > { %v569_v55 = vld [vmem:[%s6243_s16 + $0x248] sm:$0xff] }
  0x38   : > { %1632 = vmatmul.mubr.bf16.gmra.mrb[8].mxu1 %v4804_v58  ;;  %1592 = vmatmul.mubr.bf16.gmra.mrb[8].mxu0 %v4764_v59  ;;  %v4767_v58 = vcombine.high %v513_v51, %v517_v52  ;;  %v5858_v59 = vld [vmem:[%s7377_s1 + $0x190] sm:$0xff]   ;;  %v4816_v52 = vcombine.low %v562_v41, %v566_v42 }
  0x39   : > { %1639 = vmatprep.mubr.bf16.mxu1 %v4813_v61  ;;  %5212 = vmatpush3.bf16.msra.mxu1 %v5834_v62  ;;  %v5859_v61 = vld [vmem:[%s7377_s1 + $0x1d8] sm:$0xff]   ;;  %v521_v62 = vld [vmem:[%s6243_s16 + $0xc8] sm:$0xff] }
  0x3a   : > { %5213 = vmatprep.subr.bf16.mxu1 %v5837_v63  ;;  %5292 = vmatpush3.bf16.msra.mxu0 %v5840_v0  ;;  %v525_v63 = vld [vmem:[%s6243_s16 + $0xe8] sm:$0xff]  ;;  %v530_v0 = vld [vmem:[%s6243_s16 + $0x110] sm:$0xff] }
  0x3b   : > { %1599 = vmatprep.mubr.bf16.mxu0 %v4773_v2  ;;  %5293 = vmatprep.subr.bf16.mxu0 %v5841_v3  ;;  %v5860_v2 = vld [vmem:[%s7377_s1 + $0x198] sm:$0xff]   ;;  %v5861_v3 = vld [vmem:[%s7377_s1 + $0x1e0] sm:$0xff]  }
  0x3d   : > { %5214 = vmatpush3.bf16.msra.mxu1 %v5839_v1  ;;  %v534_v1 = vld [vmem:[%s6243_s16 + $0x130] sm:$0xff] }
  0x3e   : > { %5294 = vmatpush3.bf16.msra.mxu0 %v5842_v6  ;;  %5215 = vmatprep.subr.bf16.mxu1 %v5843_v7  ;;  %v5862_v6 = vld [vmem:[%s7377_s1 + $0x1a0] sm:$0xff]   ;;  %v4775_v7 = vcombine.high %v521_v62, %v525_v63 }
  0x3f   : > { %5295 = vmatprep.subr.bf16.mxu0 %v5845_v8  ;;  %v4785_v8 = vcombine.high %v530_v0, %v534_v1 }
  0x40   : > { %1640 = vmatmul.mubr.bf16.gmra.mrb[12].mxu1 %v4812_v11  ;;  %1600 = vmatmul.mubr.bf16.gmra.mrb[12].mxu0 %v4772_v12  ;;  %v533_v11 = vld [vmem:[%s6243_s16 + $0x128] sm:$0xff]  ;;  %v538_v12 = vld [vmem:[%s6243_s16 + $0x150] sm:$0xff] }
  0x41   : > { %1647 = vmatprep.mubr.bf16.mxu1 %v4821_v13  ;;  %5216 = vmatpush3.bf16.msra.mxu1 %v5844_v14  ;;  %v542_v13 = vld [vmem:[%s6243_s16 + $0x170] sm:$0xff]  ;;  %v5864_v14 = vld [vmem:[%s7377_s1 + $0x1a8] sm:$0xff]   ;;  %v4783_v19 = vcombine.high %v529_v10, %v533_v11 }
  0x42   : > { %5296 = vmatpush3.bf16.msra.mxu0 %v5846_v15  ;;  %1607 = vmatprep.mubr.bf16.mxu0 %v4781_v16  ;;  %v5865_v15 = vld [vmem:[%s7377_s1 + $0x1f0] sm:$0xff]   ;;  %v4774_v16 = vcombine.low %v521_v62, %v525_v63  ;;  %v4793_v20 = vcombine.high %v538_v12, %v542_v13  ;;  %v577_v63 = vld [vmem:[%s6243_s16 + $0x288] sm:$0xff] }
  0x43   : > { %5217 = vmatprep.subr.bf16.mxu1 %v5847_v17  ;;  %5297 = vmatprep.subr.bf16.mxu0 %v5848_v18  ;;  %v4784_v17 = vcombine.low %v530_v0, %v534_v1  ;;  %v5866_v18 = vld [vmem:[%s7377_s1 + $0x1b0] sm:$0xff]   ;;  %v581_v0 = vld [vmem:[%s6243_s16 + $0x2a8] sm:$0xff] }
  0x45   : > { %5218 = vmatpush3.bf16.msra.mxu1 %v5849_v21  ;;  %v5867_v21 = vld [vmem:[%s7377_s1 + $0x1f8] sm:$0xff]  }
  0x46   : > { %5298 = vmatpush3.bf16.msra.mxu0 %v5850_v22  ;;  %5367 = vmatprep.subr.bf16.mxu1 %v5853_v23  ;;  %v537_v22 = vld [vmem:[%s6243_s16 + $0x148] sm:$0xff] }
  0x47   : > { %5299 = vmatprep.subr.bf16.mxu0 %v5851_v26  ;;  %v541_v23 = vld [vmem:[%s6243_s16 + $0x168] sm:$0xff]  ;;  %v5868_v26 = vld [vmem:[%s7377_s1 + $0x1b8] sm:$0xff]  }
  0x48   : > { %1648 = vmatmul.mubr.bf16.gmra.mrb[16].mxu1 %v4820_v27  ;;  %1608 = vmatmul.mubr.bf16.gmra.mrb[16].mxu0 %v4780_v28  ;;  %v4782_v27 = vcombine.low %v529_v10, %v533_v11  ;;  %v4792_v28 = vcombine.low %v538_v12, %v542_v13  ;;  %v4790_v35 = vcombine.low %v537_v22, %v541_v23  ;;  %v515_v12 = vld [vmem:[%s6243_s16 + $0x98] sm:$0xff] }
  0x49   : > { %1655 = vmatprep.mubr.bf16.mxu1 %v4829_v29  ;;  %1817 = vmatprep.mubr.bf16.mxu0 %v4753_v30  ;;  %v4791_v29 = vcombine.high %v537_v22, %v541_v23  ;;  %v4801_v30 = vcombine.high %v546_v24, %v550_v25  ;;  %v519_v13 = vld [vmem:[%s6243_s16 + $0xb8] sm:$0xff] }
  0x4a   : > { %5300 = vmatpush3.bf16.msra.mxu0 %v5852_v31  ;;  %v545_v31 = vld [vmem:[%s6243_s16 + $0x188] sm:$0xff] }
  0x4b   : > { %v4798_v43 = vcombine.low %v545_v31, %v549_v32 }
  0x50   : > { %1656 = vmatmul.mubr.bf16.gmra.mrb[20].mxu1 %v4828_v36  ;;  %1818 = vmatmul.mubr.bf16.vlgmr.msra.gmra.mrb[20].mxu0 %v4752_v37  ;;  %v4800_v36 = vcombine.low %v546_v24, %v550_v25  ;;  %v4799_v37 = vcombine.high %v545_v31, %v549_v32  ;;  %v539_v24 = vld [vmem:[%s6243_s16 + $0x158] sm:$0xff] }
  0x51   : > { %1696 = vmatprep.mubr.bf16.mxu1 %v4751_v38  ;;  %1825 = vmatprep.mubr.bf16.mxu0 %v4761_v39  ;;  %v4809_v38 = vcombine.high %v554_v33, %v558_v34  ;;  %v553_v39 = vld [vmem:[%s6243_s16 + $0x1c8] sm:$0xff]  ;;  %v543_v25 = vld [vmem:[%s6243_s16 + $0x178] sm:$0xff] }
  0x52   : > { %v4806_v51 = vcombine.low %v553_v39, %v557_v40  ;;  %v555_v32 = vld [vmem:[%s6243_s16 + $0x1d8] sm:$0xff] }
  0x58   : > { %1697 = vmatmul.mubr.bf16.vlgmr.msra.gmra.mrb[24].mxu1 %v4750_v44  ;;  %1826 = vmatmul.mubr.bf16.gmra.mrb[24].mxu0 %v4760_v45  ;;  %v4808_v44 = vcombine.low %v554_v33, %v558_v34  ;;  %v4807_v45 = vcombine.high %v553_v39, %v557_v40  ;;  %v559_v33 = vld [vmem:[%s6243_s16 + $0x1f8] sm:$0xff] }
  0x59   : > { %5368 = vmatpush3.bf16.msra.mxu1 %v5854_v46  ;;  %1704 = vmatprep.mubr.bf16.mxu1 %v4759_v47  ;;  %v4817_v46 = vcombine.high %v562_v41, %v566_v42  ;;  %v561_v47 = vld [vmem:[%s6243_s16 + $0x208] sm:$0xff]  ;;  %v571_v40 = vld [vmem:[%s6243_s16 + $0x258] sm:$0xff] }
  0x5a   : > { %5369 = vmatprep.subr.bf16.mxu1 %v5855_v48  ;;  %1833 = vmatprep.mubr.bf16.mxu0 %v4769_v49  ;;  %v565_v48 = vld [vmem:[%s6243_s16 + $0x228] sm:$0xff]  ;;  %v570_v49 = vld [vmem:[%s6243_s16 + $0x250] sm:$0xff]  ;;  %v575_v41 = vld [vmem:[%s6243_s16 + $0x278] sm:$0xff] }
  0x5d   : > { %5370 = vmatpush3.bf16.msra.mxu1 %v5856_v50  ;;  %v574_v50 = vld [vmem:[%s6243_s16 + $0x270] sm:$0xff] }
  0x5e   : > { %5371 = vmatprep.subr.bf16.mxu1 %v5857_v53  ;;  %v4815_v53 = vcombine.high %v561_v47, %v565_v48  ;;  %v4825_v54 = vcombine.high %v570_v49, %v574_v50 }
  0x60   : > { %1705 = vmatmul.mubr.bf16.gmra.mrb[28].mxu1 %v4758_v56  ;;  %1834 = vmatmul.mubr.bf16.gmra.mrb[28].mxu0 %v4768_v57  ;;  %v573_v56 = vld [vmem:[%s6243_s16 + $0x268] sm:$0xff]  ;;  %v578_v57 = vld [vmem:[%s6243_s16 + $0x290] sm:$0xff] }
  0x61   : > { %1712 = vmatprep.mubr.bf16.mxu1 %v4767_v58  ;;  %5372 = vmatpush3.bf16.msra.mxu1 %v5858_v59  ;;  %v582_v58 = vld [vmem:[%s6243_s16 + $0x2b0] sm:$0xff]  ;;  %v4814_v59 = vcombine.low %v561_v47, %v565_v48  ;;  %v4822_v1 = vcombine.low %v569_v55, %v573_v56  ;;  %v5870_v47 = vld [vmem:[%s7379_s3] sm:$0xff]   ;;  %v4826_v48 = vcombine.low %v571_v40, %v575_v41 }
  0x62   : > { %1841 = vmatprep.mubr.bf16.mxu0 %v4777_v60  ;;  %5373 = vmatprep.subr.bf16.mxu1 %v5859_v61  ;;  %v4824_v60 = vcombine.low %v570_v49, %v574_v50  ;;  %v4823_v61 = vcombine.high %v569_v55, %v573_v56  ;;  %v4833_v62 = vcombine.high %v578_v57, %v582_v58 }
  0x65   : > { %5374 = vmatpush3.bf16.msra.mxu1 %v5860_v2  ;;  %v4832_v2 = vcombine.low %v578_v57, %v582_v58 }
  0x66   : > { %5375 = vmatprep.subr.bf16.mxu1 %v5861_v3  ;;  %v4831_v3 = vcombine.high %v577_v63, %v581_v0 }
  0x68   : > { %1713 = vmatmul.mubr.bf16.gmra.mrb[32].mxu1 %v4766_v4  ;;  %1842 = vmatmul.mubr.bf16.gmra.mrb[32].mxu0 %v4776_v5  ;;  %v499_v4 = vld [vmem:[%s6243_s16 + $0x18] sm:$0xff] }
  0x69   : > { %1720 = vmatprep.mubr.bf16.mxu1 %v4775_v7  ;;  %1849 = vmatprep.mubr.bf16.mxu0 %v4785_v8  ;;  %v503_v5 = vld [vmem:[%s6243_s16 + $0x38] sm:$0xff] }
  0x6a   : > { %5376 = vmatpush3.bf16.msra.mxu1 %v5862_v6  ;;  %v4830_v6 = vcombine.low %v577_v63, %v581_v0  ;;  %v4755_v7 = vcombine.high %v499_v4, %v503_v5  ;;  %v507_v8 = vld [vmem:[%s6243_s16 + $0x58] sm:$0xff]  ;;  %v4754_v10 = vcombine.low %v499_v4, %v503_v5  ;;  %v5872_v0 = vld [vmem:[%s7379_s3 + $0x8] sm:$0xff]   ;;  %v6126_v5 = vmov 0.0  }
  0x6b   : > { %5377 = vmatprep.subr.bf16.mxu1 %v5863_v9  ;;  %v511_v9 = vld [vmem:[%s6243_s16 + $0x78] sm:$0xff]  ;;  %442 = vst [vmem:[#allocation3] sm:$0xff] %v6126_v5  ;;  %444 = vst [vmem:[#allocation3 + $0x10] sm:$0xff] %v6126_v5 }
  0x6c   : > { %v4763_v11 = vcombine.high %v507_v8, %v511_v9  ;;  %443 = vst [vmem:[#allocation3 + $0x8] sm:$0xff] %v6126_v5  ;;  %445 = vst [vmem:[#allocation3 + $0x18] sm:$0xff] %v6126_v5 }
  0x6d   : > { %446 = vst [vmem:[#allocation3 + $0x20] sm:$0xff] %v6126_v5  ;;  %447 = vst [vmem:[#allocation3 + $0x28] sm:$0xff] %v6126_v5 }
  0x6e   : > { %5378 = vmatpush3.bf16.msra.mxu1 %v5864_v14  ;;  %v4762_v14 = vcombine.low %v507_v8, %v511_v9  ;;  %448 = vst [vmem:[#allocation3 + $0x30] sm:$0xff] %v6126_v5  ;;  %449 = vst [vmem:[#allocation3 + $0x38] sm:$0xff] %v6126_v5 }
  0x6f   : > { %5379 = vmatprep.subr.bf16.mxu1 %v5865_v15  ;;  %v4771_v15 = vcombine.high %v515_v12, %v519_v13  ;;  %450 = vst [vmem:[#allocation3 + $0x40] sm:$0xff] %v6126_v5  ;;  %451 = vst [vmem:[#allocation3 + $0x48] sm:$0xff] %v6126_v5 }
  0x70   : > { %1721 = vmatmul.mubr.bf16.gmra.mrb[36].mxu1 %v4774_v16  ;;  %1850 = vmatmul.mubr.bf16.gmra.mrb[36].mxu0 %v4784_v17  ;;  %v523_v16 = vld [vmem:[%s6243_s16 + $0xd8] sm:$0xff]  ;;  %452 = vst [vmem:[#allocation3 + $0x50] sm:$0xff] %v6126_v5  ;;  %453 = vst [vmem:[#allocation3 + $0x58] sm:$0xff] %v6126_v5 }
  0x71   : > { %1728 = vmatprep.mubr.bf16.mxu1 %v4783_v19  ;;  %1857 = vmatprep.mubr.bf16.mxu0 %v4793_v20  ;;  %v527_v17 = vld [vmem:[%s6243_s16 + $0xf8] sm:$0xff]  ;;  %454 = vst [vmem:[#allocation3 + $0x60] sm:$0xff] %v6126_v5  ;;  %455 = vst [vmem:[#allocation3 + $0x68] sm:$0xff] %v6126_v5 }
  0x72   : > { %5380 = vmatpush3.bf16.msra.mxu1 %v5866_v18  ;;  %v4770_v18 = vcombine.low %v515_v12, %v519_v13  ;;  %v4779_v19 = vcombine.high %v523_v16, %v527_v17  ;;  %v531_v20 = vld [vmem:[%s6243_s16 + $0x118] sm:$0xff]  ;;  %v4778_v22 = vcombine.low %v523_v16, %v527_v17  ;;  %456 = vst [vmem:[#allocation3 + $0x70] sm:$0xff] %v6126_v5  ;;  %457 = vst [vmem:[#allocation3 + $0x78] sm:$0xff] %v6126_v5 }
  0x73   : > { %5381 = vmatprep.subr.bf16.mxu1 %v5867_v21  ;;  %v535_v21 = vld [vmem:[%s6243_s16 + $0x138] sm:$0xff]  ;;  %458 = vst [vmem:[#allocation3 + $0x80] sm:$0xff] %v6126_v5  ;;  %459 = vst [vmem:[#allocation3 + $0x88] sm:$0xff] %v6126_v5 }
  0x74   : > { %v4787_v23 = vcombine.high %v531_v20, %v535_v21  ;;  %460 = vst [vmem:[#allocation3 + $0x90] sm:$0xff] %v6126_v5  ;;  %461 = vst [vmem:[#allocation3 + $0x98] sm:$0xff] %v6126_v5 }
  0x75   : > { %462 = vst [vmem:[#allocation3 + $0xa0] sm:$0xff] %v6126_v5  ;;  %463 = vst [vmem:[#allocation3 + $0xa8] sm:$0xff] %v6126_v5 }
  0x76   : > { %5382 = vmatpush3.bf16.msra.mxu1 %v5868_v26  ;;  %v4786_v26 = vcombine.low %v531_v20, %v535_v21  ;;  %464 = vst [vmem:[#allocation3 + $0xb0] sm:$0xff] %v6126_v5  ;;  %465 = vst [vmem:[#allocation3 + $0xb8] sm:$0xff] %v6126_v5 }
  0x77   : > { %466 = vst [vmem:[#allocation3 + $0xc0] sm:$0xff] %v6126_v5  ;;  %467 = vst [vmem:[#allocation3 + $0xc8] sm:$0xff] %v6126_v5 }
  0x78   : > { %1729 = vmatmul.mubr.bf16.gmra.mrb[40].mxu1 %v4782_v27  ;;  %1858 = vmatmul.mubr.bf16.gmra.mrb[40].mxu0 %v4792_v28  ;;  %v4795_v27 = vcombine.high %v539_v24, %v543_v25  ;;  %v547_v28 = vld [vmem:[%s6243_s16 + $0x198] sm:$0xff]  ;;  %468 = vst [vmem:[#allocation3 + $0xd0] sm:$0xff] %v6126_v5  ;;  %469 = vst [vmem:[#allocation3 + $0xd8] sm:$0xff] %v6126_v5 }
  0x79   : > { %1736 = vmatprep.mubr.bf16.mxu1 %v4791_v29  ;;  %1865 = vmatprep.mubr.bf16.mxu0 %v4801_v30  ;;  %v551_v29 = vld [vmem:[%s6243_s16 + $0x1b8] sm:$0xff]  ;;  %v4794_v30 = vcombine.low %v539_v24, %v543_v25  ;;  %470 = vst [vmem:[#allocation3 + $0xe0] sm:$0xff] %v6126_v5  ;;  %471 = vst [vmem:[#allocation3 + $0xe8] sm:$0xff] %v6126_v5 }
  0x7a   : > { %v4803_v31 = vcombine.high %v547_v28, %v551_v29  ;;  %v4802_v34 = vcombine.low %v547_v28, %v551_v29  ;;  %472 = vst [vmem:[#allocation3 + $0xf0] sm:$0xff] %v6126_v5  ;;  %473 = vst [vmem:[#allocation3 + $0xf8] sm:$0xff] %v6126_v5 }
  0x7b   : > { %474 = vst [vmem:[#allocation3 + $0x100] sm:$0xff] %v6126_v5  ;;  %475 = vst [vmem:[#allocation3 + $0x108] sm:$0xff] %v6126_v5 }
  0x7c   : > { %476 = vst [vmem:[#allocation3 + $0x110] sm:$0xff] %v6126_v5  ;;  %477 = vst [vmem:[#allocation3 + $0x118] sm:$0xff] %v6126_v5 }
  0x7d   : > { %478 = vst [vmem:[#allocation3 + $0x120] sm:$0xff] %v6126_v5  ;;  %479 = vst [vmem:[#allocation3 + $0x128] sm:$0xff] %v6126_v5 }
  0x7e   : > { %480 = vst [vmem:[#allocation3 + $0x130] sm:$0xff] %v6126_v5  ;;  %481 = vst [vmem:[#allocation3 + $0x138] sm:$0xff] %v6126_v5 }
  0x7f   : > { %482 = vst [vmem:[#allocation3 + $0x140] sm:$0xff] %v6126_v5  ;;  %483 = vst [vmem:[#allocation3 + $0x148] sm:$0xff] %v6126_v5 }
  0x80   : > { %1737 = vmatmul.mubr.bf16.gmra.mrb[44].mxu1 %v4790_v35  ;;  %1866 = vmatmul.mubr.bf16.gmra.mrb[44].mxu0 %v4800_v36  ;;  %v4811_v35 = vcombine.high %v555_v32, %v559_v33  ;;  %v563_v36 = vld [vmem:[%s6243_s16 + $0x218] sm:$0xff]  ;;  %484 = vst [vmem:[#allocation3 + $0x150] sm:$0xff] %v6126_v5  ;;  %485 = vst [vmem:[#allocation3 + $0x158] sm:$0xff] %v6126_v5 }
  0x81   : > { %1744 = vmatprep.mubr.bf16.mxu1 %v4799_v37  ;;  %1873 = vmatprep.mubr.bf16.mxu0 %v4809_v38  ;;  %v567_v37 = vld [vmem:[%s6243_s16 + $0x238] sm:$0xff]  ;;  %v4810_v38 = vcombine.low %v555_v32, %v559_v33  ;;  %486 = vst [vmem:[#allocation3 + $0x160] sm:$0xff] %v6126_v5  ;;  %487 = vst [vmem:[#allocation5] sm:$0xff] %v6126_v5 }
  0x82   : > { %v4819_v39 = vcombine.high %v563_v36, %v567_v37  ;;  %v4818_v42 = vcombine.low %v563_v36, %v567_v37  ;;  %488 = vst [vmem:[#allocation5 + $0x8] sm:$0xff] %v6126_v5  ;;  %489 = vst [vmem:[#allocation5 + $0x10] sm:$0xff] %v6126_v5  ;;  %v5874_v36 = vld [vmem:[%s7379_s3 + $0x10] sm:$0xff]   ;;  %v5876_v37 = vld [vmem:[%s7379_s3 + $0x80] sm:$0xff]  }
  0x83   : > { %490 = vst [vmem:[#allocation5 + $0x18] sm:$0xff] %v6126_v5  ;;  %491 = vst [vmem:[#allocation5 + $0x20] sm:$0xff] %v6126_v5 }
  0x84   : > { %492 = vst [vmem:[#allocation5 + $0x28] sm:$0xff] %v6126_v5  ;;  %493 = vst [vmem:[#allocation5 + $0x30] sm:$0xff] %v6126_v5 }
  0x85   : > { %494 = vst [vmem:[#allocation5 + $0x38] sm:$0xff] %v6126_v5  ;;  %495 = vst [vmem:[#allocation5 + $0x40] sm:$0xff] %v6126_v5  ;;  %v5882_v5 = vld [vmem:[%s7379_s3 + $0x20] sm:$0xff]  }
  0x88   : > { %1745 = vmatmul.mubr.bf16.gmra.mrb[48].mxu1 %v4798_v43  ;;  %1874 = vmatmul.mubr.bf16.gmra.mrb[48].mxu0 %v4808_v44  ;;  %v4827_v43 = vcombine.high %v571_v40, %v575_v41  ;;  %v579_v44 = vld [vmem:[%s6243_s16 + $0x298] sm:$0xff] }
  0x89   : > { %1752 = vmatprep.mubr.bf16.mxu1 %v4807_v45  ;;  %1881 = vmatprep.mubr.bf16.mxu0 %v4817_v46  ;;  %v583_v45 = vld [vmem:[%s6243_s16 + $0x2b8] sm:$0xff]  ;;  %v5869_v46 = vld [vmem:[%s7379_s3 + $0x40] sm:$0xff]  }
  0x8a   : > { %v4835_v49 = vcombine.high %v579_v44, %v583_v45  ;;  %5449 = vmatprep.subr.bf16.mxu0 %v5869_v46  ;;  %v5877_v46 = vld [vmem:[%s7379_s3 + $0x58] sm:$0xff]  }
  0x8b   : > { %5450 = vmatpush3.bf16.msra.mxu0 %v5870_v47  ;;  %v5880_v47 = vld [vmem:[%s7379_s3 + $0x88] sm:$0xff]  }
  0x90   : > { %1753 = vmatmul.mubr.bf16.gmra.mrb[52].mxu1 %v4806_v51  ;;  %1882 = vmatmul.mubr.bf16.gmra.mrb[52].mxu0 %v4816_v52  ;;  %v5871_v52 = vld [vmem:[%s7379_s3 + $0x48] sm:$0xff]  }
  0x91   : > { %1760 = vmatprep.mubr.bf16.mxu1 %v4815_v53  ;;  %1889 = vmatprep.mubr.bf16.mxu0 %v4825_v54  ;;  %v4834_v54 = vcombine.low %v579_v44, %v583_v45  ;;  %v5879_v45 = vld [vmem:[%s7379_s3 + $0xc8] sm:$0xff]  }
  0x92   : > { %5451 = vmatprep.subr.bf16.mxu0 %v5871_v52 }
  0x93   : > { %5452 = vmatpush3.bf16.msra.mxu0 %v5872_v0  ;;  %v5884_v0 = vld [vmem:[%s7379_s3 + $0x90] sm:$0xff]  }
  0x98   : > { %1761 = vmatmul.mubr.bf16.gmra.mrb[56].mxu1 %v4814_v59  ;;  %1890 = vmatmul.mubr.bf16.gmra.mrb[56].mxu0 %v4824_v60 }
  0x99   : > { %1768 = vmatprep.mubr.bf16.mxu1 %v4823_v61  ;;  %1897 = vmatprep.mubr.bf16.mxu0 %v4833_v62 }
  0xa0   : > { %1769 = vmatmul.mubr.bf16.gmra.mrb[60].mxu1 %v4822_v1  ;;  %1898 = vmatmul.mubr.bf16.gmra.mrb[60].mxu0 %v4832_v2 }
  0xa1   : > { %1776 = vmatprep.mubr.bf16.mxu1 %v4831_v3 }
  0xa8   : > { %1777 = vmatmul.mubr.bf16.gmra.mrb[64].mxu1 %v4830_v6 }
  0xa9   : > { %1938 = vmatprep.mubr.bf16.mxu1 %v4755_v7 }
  0xb0   : > { %1939 = vmatmul.mubr.bf16.vlgmr.msra.gmra.mrb[68].mxu1 %v4754_v10 }
  0xb1   : > { %1946 = vmatprep.mubr.bf16.mxu1 %v4763_v11 }
  0xb8   : > { %1947 = vmatmul.mubr.bf16.gmra.mrb[72].mxu1 %v4762_v14 }
  0xb9   : > { %1954 = vmatprep.mubr.bf16.mxu1 %v4771_v15 }
  0xc0   : > { %1955 = vmatmul.mubr.bf16.gmra.mrb[76].mxu1 %v4770_v18 }
  0xc1   : > { %1962 = vmatprep.mubr.bf16.mxu1 %v4779_v19 }
  0xc8   : > { %1963 = vmatmul.mubr.bf16.gmra.mrb[80].mxu1 %v4778_v22 }
  0xc9   : > { %1970 = vmatprep.mubr.bf16.mxu1 %v4787_v23 }
  0xd0   : > { %1971 = vmatmul.mubr.bf16.gmra.mrb[84].mxu1 %v4786_v26 }
  0xd1   : > { %1978 = vmatprep.mubr.bf16.mxu1 %v4795_v27 }
  0xd8   : > { %1979 = vmatmul.mubr.bf16.gmra.mrb[88].mxu1 %v4794_v30  ;;  %v5875_v30 = vld [vmem:[%s7379_s3 + $0xc0] sm:$0xff]  }
  0xd9   : > { %1986 = vmatprep.mubr.bf16.mxu1 %v4803_v31  ;;  %5483 = vmatprep.subr.bf16.mxu1 %v5875_v30  ;;  %v5890_v30 = vld [vmem:[%s7379_s3 + $0xa0] sm:$0xff]  }
  0xda   : > { %5484 = vmatpush3.bf16.msra.mxu1 %v5876_v37 }
  0xdb   : > { %5485 = vmatprep.subr.bf16.mxu1 %v5879_v45 }
  0xde   : > { %5486 = vmatpush3.bf16.msra.mxu1 %v5880_v47  ;;  %v5895_v47 = vld [vmem:[%s7379_s3 + $0x78] sm:$0xff]  }
  0xe0   : > { %1987 = vmatmul.mubr.bf16.gmra.mrb[92].mxu1 %v4802_v34 }
  0xe1   : > { %1994 = vmatprep.mubr.bf16.mxu1 %v4811_v35  ;;  %v5873_v35 = vld [vmem:[%s7379_s3 + $0x50] sm:$0xff]  }
  0xe2   : > { %5453 = vmatprep.subr.bf16.mxu0 %v5873_v35  ;;  %v5891_v35 = vld [vmem:[%s7379_s3 + $0x70] sm:$0xff]  }
  0xe3   : > { %5454 = vmatpush3.bf16.msra.mxu0 %v5874_v36  ;;  %v5892_v36 = vld [vmem:[%s7379_s3 + $0x30] sm:$0xff]  }
  0xe4   : > { %5455 = vmatprep.subr.bf16.mxu0 %v5877_v46 }
  0xe8   : > { %1995 = vmatmul.mubr.bf16.gmra.mrb[96].mxu1 %v4810_v38  ;;  %v6551_v38 = vld [vmem:[%s7378_s2] ss:$0 sm:$0xff] }
  0xe9   : > { %2002 = vmatprep.mubr.bf16.mxu1 %v4819_v39 }
  0xf0   : > { %2003 = vmatmul.mubr.bf16.gmra.mrb[100].mxu1 %v4818_v42 }
  0xf1   : > { %2010 = vmatprep.mubr.bf16.mxu1 %v4827_v43 }
  0xf8   : > { %2011 = vmatmul.mubr.bf16.gmra.mrb[104].mxu1 %v4826_v48 }
  0xf9   : > { %2018 = vmatprep.mubr.bf16.mxu1 %v4835_v49 }
  0xfb   : > { %v5167_v50 = vpop.f32.mrb[0].mxu1  ;;  %v5137_v51 = vpop.f32.mrb[0].mxu0 }
  0xfc   : > { %v5168_v53 = vpop.f32.mrb[1].mxu1  ;;  %v5138_v55 = vpop.f32.mrb[1].mxu0 }
  0xfd   : > { %v6507_v56 = vadd.f32 %v5168_v53, %v5167_v50  ;;  %v5170_v57 = vpop.f32.mrb[2].mxu1  ;;  %v6509_v58 = vadd.f32 %v5138_v55, %v5137_v51  ;;  %v5140_v59 = vpop.f32.mrb[2].mxu0  ;;  %v5878_v50 = vld [vmem:[%s7379_s3 + $0x18] sm:$0xff]  }
  0xfe   : > { %v5171_v60 = vpop.f32.mrb[3].mxu1  ;;  %v5141_v61 = vpop.f32.mrb[3].mxu0  ;;  %5456 = vmatpush3.bf16.msra.mxu0 %v5878_v50  ;;  %v5896_v50 = vld [vmem:[%s7379_s3 + $0x38] sm:$0xff]  }
  0xff   : > { %v6511_v62 = vadd.f32 %v5171_v60, %v5170_v57  ;;  %v6513_v63 = vadd.f32 %v5141_v61, %v5140_v59  ;;  %v5883_v59 = vld [vmem:[%s7379_s3 + $0xd0] sm:$0xff]  }
 0x100   : > { %2019 = vmatmul.mubr.bf16.gmra.mrb[108].mxu1 %v4834_v54  ;;  %5487 = vmatprep.subr.bf16.mxu1 %v5883_v59 }
 0x101   : > { %5488 = vmatpush3.bf16.msra.mxu1 %v5884_v0 }
 0x103   : > { %v5173_v1 = vpop.f32.mrb[4].mxu1  ;;  %v5143_v2 = vpop.f32.mrb[4].mxu0 }
 0x104   : > { %v5174_v3 = vpop.f32.mrb[5].mxu1  ;;  %v5144_v4 = vpop.f32.mrb[5].mxu0 }
 0x105   : > { %v6518_v6 = vadd.f32 %v5174_v3, %v5173_v1  ;;  %v5176_v7 = vpop.f32.mrb[6].mxu1  ;;  %v6520_v8 = vadd.f32 %v5144_v4, %v5143_v2  ;;  %v5146_v9 = vpop.f32.mrb[6].mxu0  ;;  %v5881_v4 = vld [vmem:[%s7379_s3 + $0x60] sm:$0xff]  }
 0x106   : > { %v5177_v10 = vpop.f32.mrb[7].mxu1  ;;  %v5147_v11 = vpop.f32.mrb[7].mxu0  ;;  %5457 = vmatprep.subr.bf16.mxu0 %v5881_v4 }
 0x107   : > { %v6522_v12 = vadd.f32 %v5177_v10, %v5176_v7  ;;  %v6524_v13 = vadd.f32 %v5147_v11, %v5146_v9  ;;  %v5885_v9 = vld [vmem:[%s7379_s3 + $0xd8] sm:$0xff]   ;;  %5458 = vmatpush3.bf16.msra.mxu0 %v5882_v5 }
 0x108   : > { %v5886_v10 = vld [vmem:[%s7379_s3 + $0x98] sm:$0xff]   ;;  %5489 = vmatprep.subr.bf16.mxu1 %v5885_v9 }
 0x109   : > { %5490 = vmatpush3.bf16.msra.mxu1 %v5886_v10  ;;  %v5899_v9 = vld [vmem:[%s7379_s3 + $0xf8] sm:$0xff]  }
 0x10a   : > { %v5900_v10 = vld [vmem:[%s7379_s3 + $0xb8] sm:$0xff]  }
 0x10b   : > { %v5179_v14 = vpop.f32.mrb[8].mxu1  ;;  %v5149_v15 = vpop.f32.mrb[8].mxu0 }
 0x10c   : > { %v5180_v16 = vpop.f32.mrb[9].mxu1  ;;  %v5150_v17 = vpop.f32.mrb[9].mxu0 }
 0x10d   : > { %v6526_v18 = vadd.f32 %v5180_v16, %v5179_v14  ;;  %v5182_v19 = vpop.f32.mrb[10].mxu1  ;;  %v6528_v20 = vadd.f32 %v5150_v17, %v5149_v15  ;;  %v5152_v21 = vpop.f32.mrb[10].mxu0  ;;  %v5887_v15 = vld [vmem:[%s7379_s3 + $0x68] sm:$0xff]  }
 0x10e   : > { %v5183_v22 = vpop.f32.mrb[11].mxu1  ;;  %v5153_v23 = vpop.f32.mrb[11].mxu0  ;;  %5459 = vmatprep.subr.bf16.mxu0 %v5887_v15 }
 0x10f   : > { %v6530_v24 = vadd.f32 %v5183_v22, %v5182_v19  ;;  %v6532_v25 = vadd.f32 %v5153_v23, %v5152_v21  ;;  %v5888_v19 = vld [vmem:[%s7379_s3 + $0x28] sm:$0xff]  }
 0x110   : > { %5460 = vmatpush3.bf16.msra.mxu0 %v5888_v19 }
 0x111   : > { %5461 = vmatprep.subr.bf16.mxu0 %v5891_v35 }
 0x113   : > { %v5185_v26 = vpop.f32.mrb[12].mxu1  ;;  %v5155_v27 = vpop.f32.mrb[12].mxu0 }
 0x114   : > { %v5186_v28 = vpop.f32.mrb[13].mxu1  ;;  %v5156_v29 = vpop.f32.mrb[13].mxu0  ;;  %5462 = vmatpush3.bf16.msra.mxu0 %v5892_v36  ;;  %v1594_v36 = vadd.f32 %v6528_v20, %v6551_v38 }
 0x115   : > { %v5187_v31 = vadd.f32 %v5186_v28, %v5185_v26  ;;  %v5188_v32 = vpop.f32.mrb[14].mxu1  ;;  %v6537_v33 = vadd.f32 %v5156_v29, %v5155_v27  ;;  %v5158_v34 = vpop.f32.mrb[14].mxu0  ;;  %v5889_v27 = vld [vmem:[%s7379_s3 + $0xe0] sm:$0xff]   ;;  %5463 = vmatprep.subr.bf16.mxu0 %v5895_v47 }
 0x116   : > { %v5189_v39 = vpop.f32.mrb[15].mxu1  ;;  %v5159_v40 = vpop.f32.mrb[15].mxu0  ;;  %5491 = vmatprep.subr.bf16.mxu1 %v5889_v27 }
 0x117   : > { %v6554_v41 = vadd.f32 %v5187_v31, %v6551_v38  ;;  %v5190_v42 = vadd.f32 %v5189_v39, %v5188_v32  ;;  %v6556_v43 = vadd.f32 %v5159_v40, %v5158_v34  ;;  %5492 = vmatpush3.bf16.msra.mxu1 %v5890_v30  ;;  %v5893_v39 = vld [vmem:[%s7379_s3 + $0xe8] sm:$0xff]  }
 0x118   : > { %v5894_v40 = vld [vmem:[%s7379_s3 + $0xa8] sm:$0xff]   ;;  %5493 = vmatprep.subr.bf16.mxu1 %v5893_v39  ;;  %5464 = vmatpush3.bf16.msra.mxu0 %v5896_v50 }
 0x119   : > { %v6559_v44 = vadd.f32 %v5190_v42, %v6551_v38  ;;  %v1578_v42 = vadd.f32 %v6509_v58, %v6551_v38 }
 0x11b   : > { %v5191_v48 = vpop.f32.mrb[16].mxu1  ;;  %v5161_v49 = vpop.f32.mrb[16].mxu0  ;;  %5494 = vmatpush3.bf16.msra.mxu1 %v5894_v40 }
 0x11c   : > { %v5192_v51 = vpop.f32.mrb[17].mxu1  ;;  %v5162_v52 = vpop.f32.mrb[17].mxu0 }
 0x11d   : > { %v5193_v53 = vadd.f32 %v5192_v51, %v5191_v48  ;;  %v5194_v54 = vpop.f32.mrb[18].mxu1  ;;  %v6573_v55 = vadd.f32 %v5162_v52, %v5161_v49  ;;  %v5164_v57 = vpop.f32.mrb[18].mxu0  ;;  %v1581_v51 = vadd.f32 %v6513_v63, %v6551_v38 }
 0x11e   : > { %v5195_v60 = vpop.f32.mrb[19].mxu1  ;;  %v5165_v61 = vpop.f32.mrb[19].mxu0 }
 0x11f   : > { %v6582_v1 = vadd.f32 %v5193_v53, %v6551_v38  ;;  %v5196_v2 = vadd.f32 %v5195_v60, %v5194_v54  ;;  %v6584_v3 = vadd.f32 %v5165_v61, %v5164_v57  ;;  %v5897_v57 = vld [vmem:[%s7379_s3 + $0xf0] sm:$0xff]  }
 0x120   : > { %v5898_v61 = vld [vmem:[%s7379_s3 + $0xb0] sm:$0xff]   ;;  %5495 = vmatprep.subr.bf16.mxu1 %v5897_v57 }
 0x121   : > { %v6593_v7 = vadd.f32 %v5196_v2, %v6551_v38  ;;  %5496 = vmatpush3.bf16.msra.mxu1 %v5898_v61 }
 0x122   : > { %5497 = vmatprep.subr.bf16.mxu1 %v5899_v9 }
 0x123   : > { %v5197_v11 = vpop.f32.mrb[20].mxu1  ;;  %v5301_v14 = vpop.f32.mrb[20].mxu0 }
 0x124   : > { %v5198_v16 = vpop.f32.mrb[21].mxu1  ;;  %v5302_v17 = vpop.f32.mrb[21].mxu0 }
 0x125   : > { %v5199_v21 = vadd.f32 %v5198_v16, %v5197_v11  ;;  %v5200_v22 = vpop.f32.mrb[22].mxu1  ;;  %v5303_v23 = vadd.f32 %v5302_v17, %v5301_v14  ;;  %v5304_v26 = vpop.f32.mrb[22].mxu0  ;;  %v1586_v11 = vadd.f32 %v6520_v8, %v6551_v38  ;;  %5498 = vmatpush3.bf16.msra.mxu1 %v5900_v10 }
 0x126   : > { %v5201_v28 = vpop.f32.mrb[23].mxu1  ;;  %v5305_v29 = vpop.f32.mrb[23].mxu0 }
 0x127   : > { %v6614_v31 = vadd.f32 %v5199_v21, %v6551_v38  ;;  %v5202_v32 = vadd.f32 %v5201_v28, %v5200_v22  ;;  %v5306_v34 = vadd.f32 %v5305_v29, %v5304_v26  ;;  %v1589_v21 = vadd.f32 %v6524_v13, %v6551_v38 }
 0x129   : > { %v6623_v37 = vadd.f32 %v5202_v32, %v6551_v38 }
 0x12b   : > { %v5219_v45 = vpop.f32.mrb[24].mxu1  ;;  %v5307_v46 = vpop.f32.mrb[24].mxu0 }
 0x12c   : > { %v5220_v48 = vpop.f32.mrb[25].mxu1  ;;  %v5308_v49 = vpop.f32.mrb[25].mxu0 }
 0x12d   : > { %v5221_v52 = vadd.f32 %v5220_v48, %v5219_v45  ;;  %v5222_v53 = vpop.f32.mrb[26].mxu1  ;;  %v5309_v58 = vadd.f32 %v5308_v49, %v5307_v46  ;;  %v5310_v54 = vpop.f32.mrb[26].mxu0  ;;  %v1597_v46 = vadd.f32 %v6532_v25, %v6551_v38 }
 0x12e   : > { %v5223_v59 = vpop.f32.mrb[27].mxu1  ;;  %v5311_v60 = vpop.f32.mrb[27].mxu0 }
 0x12f   : > { %v1699_v0 = vadd.f32 %v5221_v52, %v1578_v42  ;;  %v5224_v2 = vadd.f32 %v5223_v59, %v5222_v53  ;;  %v5312_v4 = vadd.f32 %v5311_v60, %v5310_v54  ;;  %v1602_v59 = vadd.f32 %v6537_v33, %v6551_v38 }
 0x131   : > { %v1702_v63 = vadd.f32 %v5224_v2, %v1581_v51  ;;  %v6647_v5 = vadd.f32 %v5303_v23, %v1699_v0 }
 0x133   : > { %v6657_v14 = vadd.f32 %v5306_v34, %v1702_v63  ;;  %v5225_v15 = vpop.f32.mrb[28].mxu1  ;;  %v5313_v16 = vpop.f32.mrb[28].mxu0 }
 0x134   : > { %v5226_v17 = vpop.f32.mrb[29].mxu1  ;;  %v5314_v19 = vpop.f32.mrb[29].mxu0 }
 0x135   : > { %v5227_v22 = vadd.f32 %v5226_v17, %v5225_v15  ;;  %v5228_v23 = vpop.f32.mrb[30].mxu1  ;;  %v5315_v26 = vadd.f32 %v5314_v19, %v5313_v16  ;;  %v5316_v27 = vpop.f32.mrb[30].mxu0  ;;  %v5901_v17 = vld [vmem:[%s7379_s3 + $0x140] sm:$0xff]  }
 0x136   : > { %v5229_v28 = vpop.f32.mrb[31].mxu1  ;;  %v5317_v29 = vpop.f32.mrb[31].mxu0  ;;  %5517 = vmatprep.subr.bf16.mxu0 %v5901_v17 }
 0x137   : > { %v1707_v30 = vadd.f32 %v5227_v22, %v1586_v11  ;;  %v5230_v32 = vadd.f32 %v5229_v28, %v5228_v23  ;;  %v5318_v8 = vadd.f32 %v5317_v29, %v5316_v27 }
 0x139   : > { %v1710_v34 = vadd.f32 %v5230_v32, %v1589_v21  ;;  %v6661_v35 = vadd.f32 %v5309_v58, %v1707_v30  ;;  %v1613_v32 = vadd.f32 %v6584_v3, %v6551_v38 }
 0x13b   : > { %v6665_v39 = vadd.f32 %v5312_v4, %v1710_v34  ;;  %v5231_v40 = vpop.f32.mrb[32].mxu1  ;;  %v5319_v42 = vpop.f32.mrb[32].mxu0  ;;  %v1605_v4 = vadd.f32 %v6556_v43, %v6551_v38  ;;  %v1610_v43 = vadd.f32 %v6573_v55, %v6551_v38 }
 0x13c   : > { %v5232_v13 = vpop.f32.mrb[33].mxu1  ;;  %v5320_v45 = vpop.f32.mrb[33].mxu0 }
 0x13d   : > { %v5233_v47 = vadd.f32 %v5232_v13, %v5231_v40  ;;  %v5234_v48 = vpop.f32.mrb[34].mxu1  ;;  %v5321_v49 = vadd.f32 %v5320_v45, %v5319_v42  ;;  %v5322_v50 = vpop.f32.mrb[34].mxu0  ;;  %v5905_v42 = vld [vmem:[%s7379_s3 + $0x1c0] sm:$0xff]  }
 0x13e   : > { %v5235_v51 = vpop.f32.mrb[35].mxu1  ;;  %v5323_v52 = vpop.f32.mrb[35].mxu0  ;;  %5551 = vmatprep.subr.bf16.mxu1 %v5905_v42 }
 0x13f   : > { %v1715_v53 = vadd.f32 %v5233_v47, %v1594_v36  ;;  %v5236_v58 = vadd.f32 %v5235_v51, %v5234_v48  ;;  %v5324_v54 = vadd.f32 %v5323_v52, %v5322_v50 }
 0x141   : > { %v1718_v57 = vadd.f32 %v5236_v58, %v1597_v46  ;;  %v6669_v20 = vadd.f32 %v5315_v26, %v1715_v53  ;;  %v1618_v58 = vadd.f32 %v6507_v56, %v6551_v38 }
 0x143   : > { %v6673_v60 = vadd.f32 %v5318_v8, %v1718_v57  ;;  %v5237_v61 = vpop.f32.mrb[36].mxu1  ;;  %v5325_v0 = vpop.f32.mrb[36].mxu0 }
 0x144   : > { %v5238_v25 = vpop.f32.mrb[37].mxu1  ;;  %v5326_v2 = vpop.f32.mrb[37].mxu0 }
 0x145   : > { %v5239_v63 = vadd.f32 %v5238_v25, %v5237_v61  ;;  %v5240_v9 = vpop.f32.mrb[38].mxu1  ;;  %v5327_v10 = vadd.f32 %v5326_v2, %v5325_v0  ;;  %v5328_v11 = vpop.f32.mrb[38].mxu0  ;;  %v1621_v2 = vadd.f32 %v6511_v62, %v6551_v38 }
 0x146   : > { %v5241_v15 = vpop.f32.mrb[39].mxu1  ;;  %v5329_v16 = vpop.f32.mrb[39].mxu0 }
 0x147   : > { %v1723_v33 = vadd.f32 %v5239_v63, %v1602_v59  ;;  %v5242_v19 = vadd.f32 %v5241_v15, %v5240_v9  ;;  %v5330_v21 = vadd.f32 %v5329_v16, %v5328_v11 }
 0x149   : > { %v1726_v22 = vadd.f32 %v5242_v19, %v1605_v4  ;;  %v6680_v23 = vadd.f32 %v5321_v49, %v1723_v33  ;;  %v1626_v19 = vadd.f32 %v6518_v6, %v6551_v38 }
 0x14b   : > { %v6684_v26 = vadd.f32 %v5324_v54, %v1726_v22  ;;  %v5243_v27 = vpop.f32.mrb[40].mxu1  ;;  %v5331_v28 = vpop.f32.mrb[40].mxu0 }
 0x14c   : > { %v5244_v29 = vpop.f32.mrb[41].mxu1  ;;  %v5332_v30 = vpop.f32.mrb[41].mxu0 }
 0x14d   : > { %v5245_v8 = vadd.f32 %v5244_v29, %v5243_v27  ;;  %v5246_v34 = vpop.f32.mrb[42].mxu1  ;;  %v5333_v36 = vadd.f32 %v5332_v30, %v5331_v28  ;;  %v5334_v40 = vpop.f32.mrb[42].mxu0  ;;  %v1629_v29 = vadd.f32 %v6522_v12, %v6551_v38 }
 0x14e   : > { %v5247_v13 = vpop.f32.mrb[43].mxu1  ;;  %v5335_v45 = vpop.f32.mrb[43].mxu0 }
 0x14f   : > { %v1731_v55 = vadd.f32 %v5245_v8, %v1610_v43  ;;  %v5248_v46 = vadd.f32 %v5247_v13, %v5246_v34  ;;  %v5336_v47 = vadd.f32 %v5335_v45, %v5334_v40 }
 0x151   : > { %v1734_v48 = vadd.f32 %v5248_v46, %v1613_v32  ;;  %v6691_v49 = vadd.f32 %v5327_v10, %v1731_v55  ;;  %v1634_v55 = vadd.f32 %v6526_v18, %v6551_v38 }
 0x153   : > { %v6693_v50 = vadd.f32 %v5330_v21, %v1734_v48  ;;  %v5249_v3 = vpop.f32.mrb[44].mxu1  ;;  %v5337_v51 = vpop.f32.mrb[44].mxu0 }
 0x154   : > { %v5250_v52 = vpop.f32.mrb[45].mxu1  ;;  %v5338_v53 = vpop.f32.mrb[45].mxu0 }
 0x155   : > { %v5251_v54 = vadd.f32 %v5250_v52, %v5249_v3  ;;  %v5252_v57 = vpop.f32.mrb[46].mxu1  ;;  %v5339_v59 = vadd.f32 %v5338_v53, %v5337_v51  ;;  %v5340_v61 = vpop.f32.mrb[46].mxu0  ;;  %v1637_v52 = vadd.f32 %v6530_v24, %v6551_v38 }
 0x156   : > { %v5253_v0 = vpop.f32.mrb[47].mxu1  ;;  %v5341_v25 = vpop.f32.mrb[47].mxu0 }
 0x157   : > { %v1739_v4 = vadd.f32 %v5251_v54, %v1618_v58  ;;  %v5254_v63 = vadd.f32 %v5253_v0, %v5252_v57  ;;  %v5342_v9 = vadd.f32 %v5341_v25, %v5340_v61 }
 0x159   : > { %v1742_v10 = vadd.f32 %v5254_v63, %v1621_v2  ;;  %v6699_v11 = vadd.f32 %v5333_v36, %v1739_v4 }
 0x15b   : > { %v6701_v15 = vadd.f32 %v5336_v47, %v1742_v10  ;;  %v5255_v16 = vpop.f32.mrb[48].mxu1  ;;  %v5343_v17 = vpop.f32.mrb[48].mxu0 }
 0x15c   : > { %v5256_v56 = vpop.f32.mrb[49].mxu1  ;;  %v5344_v33 = vpop.f32.mrb[49].mxu0 }
 0x15d   : > { %v5257_v21 = vadd.f32 %v5256_v56, %v5255_v16  ;;  %v5258_v22 = vpop.f32.mrb[50].mxu1  ;;  %v5345_v43 = vadd.f32 %v5344_v33, %v5343_v17  ;;  %v5346_v27 = vpop.f32.mrb[50].mxu0 }
 0x15e   : > { %v5259_v62 = vpop.f32.mrb[51].mxu1  ;;  %v5347_v28 = vpop.f32.mrb[51].mxu0 }
 0x15f   : > { %v1747_v30 = vadd.f32 %v5257_v21, %v1626_v19  ;;  %v5260_v32 = vadd.f32 %v5259_v62, %v5258_v22  ;;  %v5348_v8 = vadd.f32 %v5347_v28, %v5346_v27 }
 0x161   : > { %v1750_v34 = vadd.f32 %v5260_v32, %v1629_v29  ;;  %v6707_v36 = vadd.f32 %v5339_v59, %v1747_v30 }
 0x163   : > { %v6709_v40 = vadd.f32 %v5342_v9, %v1750_v34  ;;  %v5261_v42 = vpop.f32.mrb[52].mxu1  ;;  %v5349_v13 = vpop.f32.mrb[52].mxu0 }
 0x164   : > { %v5262_v6 = vpop.f32.mrb[53].mxu1  ;;  %v5350_v45 = vpop.f32.mrb[53].mxu0 }
 0x165   : > { %v5263_v46 = vadd.f32 %v5262_v6, %v5261_v42  ;;  %v5264_v47 = vpop.f32.mrb[54].mxu1  ;;  %v5351_v48 = vadd.f32 %v5350_v45, %v5349_v13  ;;  %v5352_v3 = vpop.f32.mrb[54].mxu0 }
 0x166   : > { %v5265_v12 = vpop.f32.mrb[55].mxu1  ;;  %v5353_v51 = vpop.f32.mrb[55].mxu0 }
 0x167   : > { %v1755_v53 = vadd.f32 %v5263_v46, %v1634_v55  ;;  %v5266_v58 = vadd.f32 %v5265_v12, %v5264_v47  ;;  %v5354_v54 = vadd.f32 %v5353_v51, %v5352_v3 }
 0x169   : > { %v1758_v57 = vadd.f32 %v5266_v58, %v1637_v52  ;;  %v6715_v59 = vadd.f32 %v5345_v43, %v1755_v53 }
 0x16b   : > { %v6717_v61 = vadd.f32 %v5348_v8, %v1758_v57  ;;  %v5267_v0 = vpop.f32.mrb[56].mxu1  ;;  %v5355_v25 = vpop.f32.mrb[56].mxu0 }
 0x16c   : > { %v5268_v18 = vpop.f32.mrb[57].mxu1  ;;  %v5356_v2 = vpop.f32.mrb[57].mxu0 }
 0x16d   : > { %v5269_v4 = vadd.f32 %v5268_v18, %v5267_v0  ;;  %v5270_v63 = vpop.f32.mrb[58].mxu1  ;;  %v5357_v9 = vadd.f32 %v5356_v2, %v5355_v25  ;;  %v5358_v10 = vpop.f32.mrb[58].mxu0 }
 0x16e   : > { %v5271_v16 = vpop.f32.mrb[59].mxu1  ;;  %v5359_v17 = vpop.f32.mrb[59].mxu0 }
 0x16f   : > { %v1763_v24 = vadd.f32 %v5269_v4, %v6554_v41  ;;  %v5272_v38 = vadd.f32 %v5271_v16, %v5270_v63  ;;  %v5360_v56 = vadd.f32 %v5359_v17, %v5358_v10 }
 0x171   : > { %v1766_v33 = vadd.f32 %v5272_v38, %v6559_v44  ;;  %v6721_v19 = vadd.f32 %v5351_v48, %v1763_v24 }
 0x173   : > { %v6723_v21 = vadd.f32 %v5354_v54, %v1766_v33  ;;  %v5273_v22 = vpop.f32.mrb[60].mxu1  ;;  %v5361_v43 = vpop.f32.mrb[60].mxu0 }
 0x174   : > { %v5274_v27 = vpop.f32.mrb[61].mxu1  ;;  %v5362_v62 = vpop.f32.mrb[61].mxu0 }
 0x175   : > { %v5275_v28 = vadd.f32 %v5274_v27, %v5273_v22  ;;  %v5276_v29 = vpop.f32.mrb[62].mxu1  ;;  %v5363_v30 = vadd.f32 %v5362_v62, %v5361_v43  ;;  %v5364_v32 = vpop.f32.mrb[62].mxu0 }
 0x176   : > { %v5277_v8 = vpop.f32.mrb[63].mxu1  ;;  %v5365_v34 = vpop.f32.mrb[63].mxu0 }
 0x177   : > { %v1771_v41 = vadd.f32 %v5275_v28, %v6582_v1  ;;  %v5278_v42 = vadd.f32 %v5277_v8, %v5276_v29  ;;  %v5366_v13 = vadd.f32 %v5365_v34, %v5364_v32 }
 0x179   : > { %v1774_v44 = vadd.f32 %v5278_v42, %v6593_v7  ;;  %v6727_v6 = vadd.f32 %v5357_v9, %v1771_v41 }
 0x17b   : > { %v6729_v45 = vadd.f32 %v5360_v56, %v1774_v44  ;;  %v5279_v55 = vpop.f32.mrb[64].mxu1 }
 0x17c   : > { %v5280_v46 = vpop.f32.mrb[65].mxu1 }
 0x17d   : > { %v5281_v47 = vadd.f32 %v5280_v46, %v5279_v55  ;;  %v5282_v48 = vpop.f32.mrb[66].mxu1 }
 0x17e   : > { %v5283_v3 = vpop.f32.mrb[67].mxu1 }
 0x17f   : > { %v1779_v12 = vadd.f32 %v5281_v47, %v6614_v31  ;;  %v5284_v51 = vadd.f32 %v5283_v3, %v5282_v48 }
 0x181   : > { %v1782_v52 = vadd.f32 %v5284_v51, %v6623_v37  ;;  %v6733_v53 = vadd.f32 %v5363_v30, %v1779_v12 }
 0x183   : > { %v6735_v1 = vadd.f32 %v5366_v13, %v1782_v52  ;;  %v5383_v58 = vpop.f32.mrb[68].mxu1 }
 0x184   : > { %v5384_v7 = vpop.f32.mrb[69].mxu1 }
 0x185   : > { %v5385_v54 = vadd.f32 %v5384_v7, %v5383_v58  ;;  %v5386_v57 = vpop.f32.mrb[70].mxu1 }
 0x186   : > { %v5387_v0 = vpop.f32.mrb[71].mxu1 }
 0x187   : > { %v1941_v25 = vadd.f32 %v5385_v54, %v6647_v5  ;;  %v5388_v18 = vadd.f32 %v5387_v0, %v5386_v57 }
 0x189   : > { %v2027_v2 = vmax.f32 %v1941_v25, 0.0  ;;  %v1944_v4 = vadd.f32 %v5388_v18, %v6657_v14 }
 0x18b   : > { %2049 = vst [vmem:[#allocation2] sm:$0xff] %v2027_v2  ;;  %v2028_v31 = vmax.f32 %v1944_v4, 0.0  ;;  %v5389_v63 = vpop.f32.mrb[72].mxu1 }
 0x18c   : > { %v5390_v9 = vpop.f32.mrb[73].mxu1 }
 0x18d   : > { %2050 = vst [vmem:[#allocation2 + $0x8] sm:$0xff] %v2028_v31  ;;  %v5391_v37 = vadd.f32 %v5390_v9, %v5389_v63  ;;  %v5392_v10 = vpop.f32.mrb[74].mxu1 }
 0x18e   : > { %v5393_v16 = vpop.f32.mrb[75].mxu1 }
 0x18f   : > { %v1949_v17 = vadd.f32 %v5391_v37, %v6661_v35  ;;  %v5394_v24 = vadd.f32 %v5393_v16, %v5392_v10 }
 0x191   : > { %v2029_v38 = vmax.f32 %v1949_v17, 0.0  ;;  %v1952_v56 = vadd.f32 %v5394_v24, %v6665_v39 }
 0x192   : > { %v2071_v33 = vld [vmem:[#allocation2] sm:$0x1f] }
 0x193   : > { %v2075_v5 = vld [vmem:[#allocation2 + $0x1] sm:$0x1f]  ;;  %2072 = vst [vmem:[#allocation3] sm:$0x1f] %v2071_v33  ;;  %2051 = vst [vmem:[#allocation2 + $0x10] sm:$0xff] %v2029_v38  ;;  %v2030_v14 = vmax.f32 %v1952_v56, 0.0 }
 0x194   : > { %2076 = vst [vmem:[#allocation3 + $0x10] sm:$0x1f] %v2075_v5  ;;  %v5395_v22 = vpop.f32.mrb[76].mxu1  ;;  %v2073_v43 = vld [vmem:[#allocation2 + $0x8] sm:$0x1f] }
 0x195   : > { %v5396_v27 = vpop.f32.mrb[77].mxu1  ;;  %2074 = vst [vmem:[#allocation3 + $0x8] sm:$0x1f] %v2073_v43  ;;  %2052 = vst [vmem:[#allocation2 + $0x18] sm:$0xff] %v2030_v14 }
 0x196   : > { %v5397_v62 = vadd.f32 %v5396_v27, %v5395_v22  ;;  %v5398_v28 = vpop.f32.mrb[78].mxu1 }
 0x197   : > { %v5399_v29 = vpop.f32.mrb[79].mxu1 }
 0x198   : > { %v1957_v35 = vadd.f32 %v5397_v62, %v6669_v20  ;;  %v5400_v30 = vadd.f32 %v5399_v29, %v5398_v28  ;;  %v5903_v62 = vld [vmem:[%s7379_s3 + $0x148] sm:$0xff]  }
 0x19a   : > { %v2031_v32 = vmax.f32 %v1957_v35, 0.0  ;;  %v1960_v39 = vadd.f32 %v5400_v30, %v6673_v60  ;;  %v2077_v8 = vld [vmem:[#allocation2 + $0x10] sm:$0x1f] }
 0x19b   : > { %v2081_v34 = vld [vmem:[#allocation2 + $0x11] sm:$0x1f]  ;;  %2078 = vst [vmem:[#allocation3 + $0x18] sm:$0x1f] %v2077_v8  ;;  %v5401_v42 = vpop.f32.mrb[80].mxu1 }
 0x19c   : > { %2082 = vst [vmem:[#allocation3 + $0x28] sm:$0x1f] %v2081_v34  ;;  %2053 = vst [vmem:[#allocation2 + $0x20] sm:$0xff] %v2031_v32  ;;  %v2032_v41 = vmax.f32 %v1960_v39, 0.0  ;;  %v2079_v13 = vld [vmem:[#allocation2 + $0x18] sm:$0x1f] }
 0x19d   : > { %v5402_v44 = vpop.f32.mrb[81].mxu1  ;;  %2080 = vst [vmem:[#allocation3 + $0x20] sm:$0x1f] %v2079_v13  ;;  %v2162_v56 = vld [vmem:[#allocation3 + $0x8] sm:$0xff]  ;;  %v2161_v22 = vld [vmem:[#allocation3] sm:$0xff]  ;;  %v5904_v39 = vld [vmem:[%s7379_s3 + $0x108] sm:$0xff]  }
 0x19e   : > { %2054 = vst [vmem:[#allocation2 + $0x28] sm:$0xff] %v2032_v41  ;;  %v5403_v55 = vadd.f32 %v5402_v44, %v5401_v42  ;;  %v5404_v46 = vpop.f32.mrb[82].mxu1  ;;  %v5906_v8 = vld [vmem:[%s7379_s3 + $0x150] sm:$0xff]  }
 0x19f   : > { %v5405_v47 = vpop.f32.mrb[83].mxu1 }
 0x1a0   : > { %v1965_v20 = vadd.f32 %v5403_v55, %v6680_v23  ;;  %v5406_v48 = vadd.f32 %v5405_v47, %v5404_v46 }
 0x1a2   : > { %v2033_v3 = vmax.f32 %v1965_v20, 0.0  ;;  %v1968_v60 = vadd.f32 %v5406_v48, %v6684_v26  ;;  %v2164_v55 = vld [vmem:[#allocation3 + $0x18] sm:$0xff] }
 0x1a3   : > { %v2083_v12 = vld [vmem:[#allocation2 + $0x20] sm:$0x1f]  ;;  %v5407_v54 = vpop.f32.mrb[84].mxu1 }
 0x1a4   : > { %v2087_v51 = vld [vmem:[#allocation2 + $0x21] sm:$0x1f]  ;;  %2084 = vst [vmem:[#allocation3 + $0x30] sm:$0x1f] %v2083_v12  ;;  %2055 = vst [vmem:[#allocation2 + $0x30] sm:$0xff] %v2033_v3  ;;  %v2034_v7 = vmax.f32 %v1968_v60, 0.0 }
 0x1a5   : > { %v2089_v52 = vld [vmem:[#allocation2 + $0x20] sm:$0x1f]  ;;  %2088 = vst [vmem:[#allocation3 + $0x40] sm:$0x1f] %v2087_v51  ;;  %v2085_v57 = vld [vmem:[#allocation2 + $0x28] sm:$0x1f] }
 0x1a6   : > { %2090 = vst [vmem:[#allocation3 + $0x48] sm:$0x1f] %v2089_v52  ;;  %v2093_v58 = vld [vmem:[#allocation2 + $0x21] sm:$0x1f]  ;;  %v2091_v0 = vld [vmem:[#allocation2 + $0x28] sm:$0x1f] }
 0x1a7   : > { %2094 = vst [vmem:[#allocation3 + $0x58] sm:$0x1f] %v2093_v58  ;;  %v5408_v25 = vpop.f32.mrb[85].mxu1  ;;  %2086 = vst [vmem:[#allocation3 + $0x38] sm:$0x1f] %v2085_v57  ;;  %v2163_v60 = vld [vmem:[#allocation3 + $0x10] sm:$0xff] }
 0x1a8   : > { %2092 = vst [vmem:[#allocation3 + $0x50] sm:$0x1f] %v2091_v0  ;;  %2056 = vst [vmem:[#allocation2 + $0x38] sm:$0xff] %v2034_v7  ;;  %v5409_v23 = vadd.f32 %v5408_v25, %v5407_v54  ;;  %v5410_v18 = vpop.f32.mrb[86].mxu1  ;;  %v5908_v58 = vld [vmem:[%s7379_s3 + $0x110] sm:$0xff]   ;;  %v5909_v7 = vld [vmem:[%s7379_s3 + $0x1c8] sm:$0xff]  }
 0x1a9   : > { %v5411_v26 = vpop.f32.mrb[87].mxu1  ;;  %v5910_v57 = vld [vmem:[%s7379_s3 + $0x158] sm:$0xff]  }
 0x1aa   : > { %v1973_v2 = vadd.f32 %v5409_v23, %v6691_v49  ;;  %v5412_v4 = vadd.f32 %v5411_v26, %v5410_v18  ;;  %v5911_v23 = vld [vmem:[%s7379_s3 + $0x188] sm:$0xff]  }
 0x1ab   : > { %v2095_v9 = vld [vmem:[#allocation2 + $0x30] sm:$0x1f]  ;;  %v5413_v16 = vpop.f32.mrb[88].mxu1 }
 0x1ac   : > { %v2035_v31 = vmax.f32 %v1973_v2, 0.0  ;;  %v1976_v63 = vadd.f32 %v5412_v4, %v6693_v50  ;;  %v2099_v37 = vld [vmem:[#allocation2 + $0x31] sm:$0x1f]  ;;  %2096 = vst [vmem:[#allocation3 + $0x60] sm:$0x1f] %v2095_v9  ;;  %v5414_v38 = vpop.f32.mrb[89].mxu1 }
 0x1ad   : > { %2100 = vst [vmem:[#allocation3 + $0x70] sm:$0x1f] %v2099_v37  ;;  %v2170_v17 = vld [vmem:[#allocation3 + $0x48] sm:$0xff]  ;;  %v5415_v5 = vadd.f32 %v5414_v38, %v5413_v16  ;;  %v5416_v49 = vpop.f32.mrb[90].mxu1  ;;  %v5902_v50 = vld [vmem:[%s7379_s3 + $0x100] sm:$0xff]   ;;  %v5915_v16 = vld [vmem:[%s7379_s3 + $0x190] sm:$0xff]  }
 0x1ae   : > { %2057 = vst [vmem:[#allocation2 + $0x40] sm:$0xff] %v2035_v31  ;;  %v2036_v10 = vmax.f32 %v1976_v63, 0.0  ;;  %v5417_v43 = vpop.f32.mrb[91].mxu1  ;;  %v2206_v27 = vpack.c.bf16 %v2170_v17, %v2161_v22  ;;  %v2172_v32 = vld [vmem:[#allocation3 + $0x58] sm:$0xff]  ;;  %v5912_v2 = vld [vmem:[%s7379_s3 + $0x118] sm:$0xff]   ;;  %v5914_v63 = vld [vmem:[%s7379_s3 + $0x160] sm:$0xff]  }
 0x1af   : > { %v2097_v24 = vld [vmem:[#allocation2 + $0x38] sm:$0x1f]  ;;  %v2171_v33 = vld [vmem:[#allocation3 + $0x50] sm:$0xff]  ;;  %v1981_v28 = vadd.f32 %v5415_v5, %v6699_v11  ;;  %v5418_v29 = vadd.f32 %v5417_v43, %v5416_v49  ;;  %v2208_v52 = vpack.c.bf16 %v2172_v32, %v2163_v60  ;;  %v5918_v5 = vld [vmem:[%s7379_s3 + $0x168] sm:$0xff]  }
 0x1b0   : > { %2098 = vst [vmem:[#allocation3 + $0x68] sm:$0x1f] %v2097_v24  ;;  %2058 = vst [vmem:[#allocation2 + $0x48] sm:$0xff] %v2036_v10  ;;  %v2207_v14 = vpack.c.bf16 %v2171_v33, %v2162_v56  ;;  %v5907_v11 = vld [vmem:[%s7379_s3 + $0x180] sm:$0xff]   ;;  %v5917_v56 = vld [vmem:[%s7379_s3 + $0x1d8] sm:$0xff]  }
 0x1b1   : > { %v2037_v35 = vmax.f32 %v1981_v28, 0.0  ;;  %v1984_v30 = vadd.f32 %v5418_v29, %v6701_v15  ;;  %v5916_v38 = vld [vmem:[%s7379_s3 + $0x120] sm:$0xff]   ;;  %v5919_v22 = vld [vmem:[%s7379_s3 + $0x198] sm:$0xff]  }
 0x1b2   : > { %2848 = vmatprep.mubr.bf16.mxu0 %v2207_v14  ;;  %v5928_v60 = vld [vmem:[%s7379_s3 + $0x138] sm:$0xff]  }
 0x1b3   : > { %2849 = vmatmul.mubr.bf16.vlgmr.msra.gmra.mrb[64].mxu0 %v2206_v27  ;;  %2059 = vst [vmem:[#allocation2 + $0x50] sm:$0xff] %v2037_v35  ;;  %v2038_v13 = vmax.f32 %v1984_v30, 0.0  ;;  %v5419_v44 = vpop.f32.mrb[92].mxu1  ;;  %v2173_v46 = vld [vmem:[#allocation3 + $0x60] sm:$0xff]  ;;  %v5920_v27 = vld [vmem:[%s7379_s3 + $0x128] sm:$0xff]  }
 0x1b4   : > { %5518 = vmatpush3.bf16.msra.mxu0 %v5902_v50  ;;  %v5420_v48 = vpop.f32.mrb[93].mxu1  ;;  %v2209_v3 = vpack.c.bf16 %v2173_v46, %v2164_v55  ;;  %v5926_v55 = vld [vmem:[%s7379_s3 + $0x178] sm:$0xff]  }
 0x1b5   : > { %v2101_v34 = vld [vmem:[#allocation2 + $0x40] sm:$0x1f]  ;;  %5519 = vmatprep.subr.bf16.mxu0 %v5903_v62  ;;  %2060 = vst [vmem:[#allocation2 + $0x58] sm:$0xff] %v2038_v13  ;;  %v5421_v12 = vadd.f32 %v5420_v48, %v5419_v44  ;;  %v5422_v51 = vpop.f32.mrb[94].mxu1  ;;  %v5925_v13 = vld [vmem:[%s7379_s3 + $0x1e8] sm:$0xff]  }
 0x1b6   : > { %v2105_v41 = vld [vmem:[#allocation2 + $0x41] sm:$0x1f]  ;;  %2102 = vst [vmem:[#allocation3 + $0x78] sm:$0x1f] %v2101_v34  ;;  %2904 = vmatprep.mubr.bf16.mxu1 %v2209_v3  ;;  %v5423_v54 = vpop.f32.mrb[95].mxu1 }
 0x1b7   : > { %v2107_v42 = vld [vmem:[#allocation2 + $0x40] sm:$0x1f]  ;;  %2106 = vst [vmem:[#allocation3 + $0x88] sm:$0x1f] %v2105_v41  ;;  %v2103_v47 = vld [vmem:[#allocation2 + $0x48] sm:$0x1f]  ;;  %v1989_v0 = vadd.f32 %v5421_v12, %v6707_v36  ;;  %v5424_v25 = vadd.f32 %v5423_v54, %v5422_v51  ;;  %2905 = vmatmul.mubr.bf16.vlgmr.msra.gmra.mrb[112].mxu1 %v2208_v52 }
 0x1b8   : > { %2108 = vst [vmem:[#allocation3 + $0x90] sm:$0x1f] %v2107_v42  ;;  %v2111_v15 = vld [vmem:[#allocation2 + $0x41] sm:$0x1f]  ;;  %v2109_v20 = vld [vmem:[#allocation2 + $0x48] sm:$0x1f]  ;;  %5520 = vmatpush3.bf16.msra.mxu0 %v5904_v39  ;;  %5552 = vmatpush3.bf16.msra.mxu1 %v5907_v11 }
 0x1b9   : > { %2112 = vst [vmem:[#allocation3 + $0xa0] sm:$0x1f] %v2111_v15  ;;  %2104 = vst [vmem:[#allocation3 + $0x80] sm:$0x1f] %v2103_v47  ;;  %5521 = vmatprep.subr.bf16.mxu0 %v5906_v8  ;;  %v2039_v18 = vmax.f32 %v1989_v0, 0.0  ;;  %v1992_v26 = vadd.f32 %v5424_v25, %v6709_v40  ;;  %5553 = vmatprep.subr.bf16.mxu1 %v5909_v7  ;;  %v5913_v36 = vld [vmem:[%s7379_s3 + $0x1d0] sm:$0xff]  }
 0x1ba   : > { %2110 = vst [vmem:[#allocation3 + $0x98] sm:$0x1f] %v2109_v20  ;;  %v2113_v4 = vld [vmem:[#allocation2 + $0x50] sm:$0x1f]  ;;  %v5921_v62 = vld [vmem:[%s7379_s3 + $0x1e0] sm:$0xff]   ;;  %v5927_v20 = vld [vmem:[%s7379_s3 + $0x1a8] sm:$0xff]  }
 0x1bb   : > { %v2117_v31 = vld [vmem:[#allocation2 + $0x51] sm:$0x1f]  ;;  %2114 = vst [vmem:[#allocation3 + $0xa8] sm:$0x1f] %v2113_v4  ;;  %2061 = vst [vmem:[#allocation2 + $0x60] sm:$0xff] %v2039_v18  ;;  %v2040_v40 = vmax.f32 %v1992_v26, 0.0 }
 0x1bc   : > { %5522 = vmatpush3.bf16.msra.mxu0 %v5908_v58  ;;  %2118 = vst [vmem:[#allocation3 + $0xb8] sm:$0x1f] %v2117_v31  ;;  %v5425_v9 = vpop.f32.mrb[96].mxu1  ;;  %v2115_v37 = vld [vmem:[#allocation2 + $0x58] sm:$0x1f]  ;;  %5554 = vmatpush3.bf16.msra.mxu1 %v5911_v23  ;;  %v5923_v41 = vld [vmem:[%s7379_s3 + $0x1a0] sm:$0xff]  }
 0x1bd   : > { %5523 = vmatprep.subr.bf16.mxu0 %v5910_v57  ;;  %v5426_v10 = vpop.f32.mrb[97].mxu1  ;;  %2116 = vst [vmem:[#allocation3 + $0xb0] sm:$0x1f] %v2115_v37  ;;  %2062 = vst [vmem:[#allocation2 + $0x68] sm:$0xff] %v2040_v40  ;;  %5555 = vmatprep.subr.bf16.mxu1 %v5913_v36  ;;  %v5924_v15 = vld [vmem:[%s7379_s3 + $0x130] sm:$0xff]   ;;  %v5932_v36 = vld [vmem:[%s7379_s3 + $0x1f8] sm:$0xff]  }
 0x1be   : > { %v5427_v17 = vadd.f32 %v5426_v10, %v5425_v9  ;;  %v5428_v24 = vpop.f32.mrb[98].mxu1  ;;  %v5929_v12 = vld [vmem:[%s7379_s3 + $0x1f0] sm:$0xff]   ;;  %v5933_v37 = vld [vmem:[%s7379_s3 + $0x1b8] sm:$0xff]  }
 0x1bf   : > { %v5429_v33 = vpop.f32.mrb[99].mxu1 }
 0x1c0   : > { %5524 = vmatpush3.bf16.msra.mxu0 %v5912_v2  ;;  %v1997_v49 = vadd.f32 %v5427_v17, %v6715_v59  ;;  %v5430_v14 = vadd.f32 %v5429_v33, %v5428_v24  ;;  %5556 = vmatpush3.bf16.msra.mxu1 %v5915_v16  ;;  %v5922_v59 = vld [vmem:[%s7379_s3 + $0x170] sm:$0xff]   ;;  %v2179_v2 = vld [vmem:[#allocation3 + $0x90] sm:$0xff] }
 0x1c1   : > { %5525 = vmatprep.subr.bf16.mxu0 %v5914_v63  ;;  %5557 = vmatprep.subr.bf16.mxu1 %v5917_v56  ;;  %v2180_v0 = vld [vmem:[#allocation3 + $0x98] sm:$0xff]  ;;  %v6842_v63 = vld [vmem:[#allocation3 + $0x108] sm:$0xff] }
 0x1c2   : > { %v2041_v50 = vmax.f32 %v1997_v49, 0.0  ;;  %v2000_v43 = vadd.f32 %v5430_v14, %v6717_v61  ;;  %v2119_v28 = vld [vmem:[#allocation2 + $0x60] sm:$0x1f]  ;;  %v2182_v49 = vld [vmem:[#allocation3 + $0xa8] sm:$0xff] }
 0x1c3   : > { %v2123_v29 = vld [vmem:[#allocation2 + $0x61] sm:$0x1f]  ;;  %2120 = vst [vmem:[#allocation3 + $0xc0] sm:$0x1f] %v2119_v28  ;;  %v5431_v32 = vpop.f32.mrb[100].mxu1 }
 0x1c4   : > { %5526 = vmatpush3.bf16.msra.mxu0 %v5916_v38  ;;  %v2125_v35 = vld [vmem:[#allocation2 + $0x60] sm:$0x1f]  ;;  %2124 = vst [vmem:[#allocation3 + $0xd0] sm:$0x1f] %v2123_v29  ;;  %2063 = vst [vmem:[#allocation2 + $0x70] sm:$0xff] %v2041_v50  ;;  %v2042_v30 = vmax.f32 %v2000_v43, 0.0  ;;  %5558 = vmatpush3.bf16.msra.mxu1 %v5919_v22 }
 0x1c5   : > { %5527 = vmatprep.subr.bf16.mxu0 %v5918_v5  ;;  %2126 = vst [vmem:[#allocation3 + $0xd8] sm:$0x1f] %v2125_v35  ;;  %v2129_v61 = vld [vmem:[#allocation2 + $0x61] sm:$0x1f]  ;;  %v2121_v39 = vld [vmem:[#allocation2 + $0x68] sm:$0x1f]  ;;  %5559 = vmatprep.subr.bf16.mxu1 %v5921_v62 }
 0x1c6   : > { %2130 = vst [vmem:[#allocation3 + $0xe8] sm:$0x1f] %v2129_v61  ;;  %v2127_v8 = vld [vmem:[#allocation2 + $0x68] sm:$0x1f]  ;;  %v5432_v34 = vpop.f32.mrb[101].mxu1  ;;  %2064 = vst [vmem:[#allocation2 + $0x78] sm:$0xff] %v2042_v30 }
 0x1c7   : > { %2122 = vst [vmem:[#allocation3 + $0xc8] sm:$0x1f] %v2121_v39  ;;  %2128 = vst [vmem:[#allocation3 + $0xe0] sm:$0x1f] %v2127_v8  ;;  %v5433_v42 = vadd.f32 %v5432_v34, %v5431_v32  ;;  %v5434_v11 = vpop.f32.mrb[102].mxu1 }
 0x1c8   : > { %5528 = vmatpush3.bf16.msra.mxu0 %v5920_v27  ;;  %v5435_v44 = vpop.f32.mrb[103].mxu1  ;;  %5560 = vmatpush3.bf16.msra.mxu1 %v5923_v41 }
 0x1c9   : > { %5529 = vmatprep.subr.bf16.mxu0 %v5922_v59  ;;  %v2005_v46 = vadd.f32 %v5433_v42, %v6721_v19  ;;  %v5436_v47 = vadd.f32 %v5435_v44, %v5434_v11  ;;  %5561 = vmatprep.subr.bf16.mxu1 %v5925_v13 }
 0x1cb   : > { %v2043_v48 = vmax.f32 %v2005_v46, 0.0  ;;  %v2008_v3 = vadd.f32 %v5436_v47, %v6723_v21  ;;  %v2131_v19 = vld [vmem:[#allocation2 + $0x70] sm:$0x1f]  ;;  %v5437_v58 = vpop.f32.mrb[104].mxu1 }
 0x1cc   : > { %5530 = vmatpush3.bf16.msra.mxu0 %v5924_v15  ;;  %v2135_v51 = vld [vmem:[#allocation2 + $0x71] sm:$0x1f]  ;;  %2132 = vst [vmem:[#allocation3 + $0xf0] sm:$0x1f] %v2131_v19  ;;  %v2188_v7 = vld [vmem:[#allocation3 + $0xd8] sm:$0xff]  ;;  %v5438_v57 = vpop.f32.mrb[105].mxu1  ;;  %5562 = vmatpush3.bf16.msra.mxu1 %v5927_v20 }
 0x1cd   : > { %5531 = vmatprep.subr.bf16.mxu0 %v5926_v55  ;;  %2136 = vst [vmem:[#allocation3 + $0x100] sm:$0x1f] %v2135_v51  ;;  %2065 = vst [vmem:[#allocation2 + $0x80] sm:$0xff] %v2043_v48  ;;  %v2044_v52 = vmax.f32 %v2008_v3, 0.0  ;;  %v5930_v21 = vld [vmem:[%s7379_s3 + $0x1b0] sm:$0xff]   ;;  %v5439_v23 = vadd.f32 %v5438_v57, %v5437_v58  ;;  %v5440_v18 = vpop.f32.mrb[106].mxu1  ;;  %5563 = vmatprep.subr.bf16.mxu1 %v5929_v12  ;;  %v2215_v31 = vpack.c.bf16 %v2188_v7, %v2179_v2 }
 0x1ce   : > { %v2133_v54 = vld [vmem:[#allocation2 + $0x78] sm:$0x1f]  ;;  %v2189_v25 = vld [vmem:[#allocation3 + $0xe0] sm:$0xff]  ;;  %v5441_v4 = vpop.f32.mrb[107].mxu1  ;;  %v2175_v15 = vld [vmem:[#allocation3 + $0x70] sm:$0xff] }
 0x1cf   : > { %2134 = vst [vmem:[#allocation3 + $0xf8] sm:$0x1f] %v2133_v54  ;;  %2066 = vst [vmem:[#allocation2 + $0x88] sm:$0xff] %v2044_v52  ;;  %v2216_v26 = vpack.c.bf16 %v2189_v25, %v2180_v0  ;;  %v2013_v40 = vadd.f32 %v5439_v23, %v6727_v6  ;;  %v5442_v9 = vadd.f32 %v5441_v4, %v5440_v18  ;;  %v2190_v17 = vld [vmem:[#allocation3 + $0xe8] sm:$0xff]  ;;  %v2177_v46 = vld [vmem:[#allocation3 + $0x80] sm:$0xff] }
 0x1d0   : > { %5532 = vmatpush3.bf16.msra.mxu0 %v5928_v60  ;;  %5564 = vmatpush3.bf16.msra.mxu1 %v5930_v21  ;;  %v2174_v60 = vld [vmem:[#allocation3 + $0x68] sm:$0xff]  ;;  %v2168_v51 = vld [vmem:[#allocation3 + $0x38] sm:$0xff]  ;;  %v2165_v7 = vld [vmem:[#allocation3 + $0x20] sm:$0xff] }
 0x1d1   : > { %5702 = vmatprep.subr.bf16.mxu0 %v6842_v63  ;;  %2856 = vmatprep.mubr.bf16.mxu0 %v2216_v26  ;;  %v2045_v10 = vmax.f32 %v2013_v40, 0.0  ;;  %v2016_v16 = vadd.f32 %v5442_v9, %v6729_v45  ;;  %v2181_v45 = vld [vmem:[#allocation3 + $0xa0] sm:$0xff]  ;;  %v2213_v58 = vpack.c.bf16 %v2177_v46, %v2168_v51  ;;  %v5931_v21 = vld [vmem:[%s7379_s3 + $0x200] sm:$0xff]   ;;  %v2210_v54 = vpack.c.bf16 %v2174_v60, %v2165_v7  ;;  %v2184_v57 = vld [vmem:[#allocation3 + $0xb8] sm:$0xff] }
 0x1d2   : > { %2857 = vmatmul.mubr.bf16.gmra.mrb[68].mxu0 %v2215_v31  ;;  %5565 = vmatprep.subr.bf16.mxu1 %v5932_v36  ;;  %v2217_v28 = vpack.c.bf16 %v2190_v17, %v2181_v45  ;;  %v5934_v25 = vld [vmem:[%s7379_s3 + $0x208] sm:$0xff]   ;;  %v2167_v26 = vld [vmem:[#allocation3 + $0x30] sm:$0xff]  ;;  %v2186_v4 = vld [vmem:[#allocation3 + $0xc8] sm:$0xff] }
 0x1d3   : > { %2067 = vst [vmem:[#allocation2 + $0x90] sm:$0xff] %v2045_v10  ;;  %v2046_v6 = vmax.f32 %v2016_v16, 0.0  ;;  %v5443_v5 = vpop.f32.mrb[108].mxu1  ;;  %v2191_v14 = vld [vmem:[#allocation3 + $0xf0] sm:$0xff]  ;;  %v2176_v23 = vld [vmem:[#allocation3 + $0x78] sm:$0xff]  ;;  %v5936_v17 = vld [vmem:[%s7379_s3 + $0x218] sm:$0xff]  }
 0x1d4   : > { %v2137_v24 = vld [vmem:[#allocation2 + $0x80] sm:$0x1f]  ;;  %v5444_v43 = vpop.f32.mrb[109].mxu1  ;;  %v2218_v27 = vpack.c.bf16 %v2191_v14, %v2182_v49  ;;  %5566 = vmatpush3.bf16.msra.mxu1 %v5933_v37  ;;  %v2193_v52 = vld [vmem:[#allocation3 + $0x100] sm:$0xff]  ;;  %v2212_v36 = vpack.c.bf16 %v2176_v23, %v2167_v26  ;;  %v5940_v45 = vld [vmem:[%s7379_s3 + $0x238] sm:$0xff]  }
 0x1d5   : > { %v2141_v38 = vld [vmem:[#allocation2 + $0x81] sm:$0x1f]  ;;  %2138 = vst [vmem:[#allocation3 + $0x108] sm:$0x1f] %v2137_v24  ;;  %2068 = vst [vmem:[#allocation2 + $0x98] sm:$0xff] %v2046_v6  ;;  %v5445_v62 = vadd.f32 %v5444_v43, %v5443_v5  ;;  %v5446_v59 = vpop.f32.mrb[110].mxu1  ;;  %v2220_v0 = vpack.c.bf16 %v2193_v52, %v2184_v57 }
 0x1d6   : > { %v2143_v56 = vld [vmem:[#allocation2 + $0x80] sm:$0x1f]  ;;  %2142 = vst [vmem:[#allocation3 + $0x118] sm:$0x1f] %v2141_v38  ;;  %v2139_v22 = vld [vmem:[#allocation2 + $0x88] sm:$0x1f]  ;;  %2912 = vmatprep.mubr.bf16.mxu1 %v2218_v27 }
 0x1d7   : > { %v2147_v33 = vld [vmem:[#allocation2 + $0x81] sm:$0x1f]  ;;  %2144 = vst [vmem:[#allocation3 + $0x120] sm:$0x1f] %v2143_v56  ;;  %v2145_v50 = vld [vmem:[#allocation2 + $0x88] sm:$0x1f]  ;;  %v2021_v35 = vadd.f32 %v5445_v62, %v6733_v53  ;;  %2913 = vmatmul.mubr.bf16.gmra.mrb[116].mxu1 %v2217_v28 }
 0x1d8   : > { %2148 = vst [vmem:[#allocation3 + $0x130] sm:$0x1f] %v2147_v33  ;;  %2140 = vst [vmem:[#allocation3 + $0x110] sm:$0x1f] %v2139_v22  ;;  %v5447_v29 = vpop.f32.mrb[111].mxu1  ;;  %v2166_v53 = vld [vmem:[#allocation3 + $0x28] sm:$0xff] }
 0x1d9   : > { %2146 = vst [vmem:[#allocation3 + $0x128] sm:$0x1f] %v2145_v50  ;;  %v5448_v61 = vadd.f32 %v5447_v29, %v5446_v59  ;;  %v2047_v30 = vmax.f32 %v2021_v35, 0.0  ;;  %v2211_v55 = vpack.c.bf16 %v2175_v15, %v2166_v53  ;;  %v2192_v2 = vld [vmem:[#allocation3 + $0xf8] sm:$0xff]  ;;  %v2183_v9 = vld [vmem:[#allocation3 + $0xb0] sm:$0xff]  ;;  %v5935_v37 = vld [vmem:[%s7379_s3 + $0x210] sm:$0xff]  }
 0x1da   : > { %v2149_v39 = vld [vmem:[#allocation2 + $0x90] sm:$0x1f]  ;;  %v2219_v10 = vpack.c.bf16 %v2192_v2, %v2183_v9  ;;  %v5937_v49 = vld [vmem:[%s7379_s3 + $0x220] sm:$0xff]   ;;  %v5938_v22 = vld [vmem:[%s7379_s3 + $0x228] sm:$0xff]  }
 0x1db   : > { %v2024_v32 = vadd.f32 %v5448_v61, %v6735_v1  ;;  %v2153_v8 = vld [vmem:[#allocation2 + $0x91] sm:$0x1f]  ;;  %2150 = vst [vmem:[#allocation3 + $0x138] sm:$0x1f] %v2149_v39  ;;  %2069 = vst [vmem:[#allocation2 + $0xa0] sm:$0xff] %v2047_v30  ;;  %v2178_v62 = vld [vmem:[#allocation3 + $0x88] sm:$0xff] }
 0x1dc   : > { %2154 = vst [vmem:[#allocation3 + $0x148] sm:$0x1f] %v2153_v8  ;;  %v2151_v42 = vld [vmem:[#allocation2 + $0x98] sm:$0x1f]  ;;  %v2185_v56 = vld [vmem:[#allocation3 + $0xc0] sm:$0xff]  ;;  %v2187_v35 = vld [vmem:[#allocation3 + $0xd0] sm:$0xff] }
 0x1dd   : > { %v2048_v34 = vmax.f32 %v2024_v32, 0.0  ;;  %2152 = vst [vmem:[#allocation3 + $0x140] sm:$0x1f] %v2151_v42  ;;  %v2194_v24 = vld [vmem:[#allocation3 + $0x108] sm:$0xff]  ;;  %v5939_v27 = vld [vmem:[%s7379_s3 + $0x230] sm:$0xff]   ;;  %v2196_v29 = vld [vmem:[#allocation3 + $0x118] sm:$0xff] }
 0x1de   : > { %v2197_v41 = vld [vmem:[#allocation3 + $0x120] sm:$0xff]  ;;  %v2221_v6 = vpack.c.bf16 %v2194_v24, %v2185_v56  ;;  %v2223_v61 = vpack.c.bf16 %v2196_v29, %v2187_v35  ;;  %v5941_v39 = vld [vmem:[%s7381_s5 + $0x40] sm:$0xff]   ;;  %v5945_v42 = vld [vmem:[%s7381_s5 + $0x48] sm:$0xff]  }
 0x1df   : > { %2070 = vst [vmem:[#allocation2 + $0xa8] sm:$0xff] %v2048_v34  ;;  %v2224_v44 = vpack.c.bf16 %v2197_v41, %v2197_v41  ;;  %v2199_v1 = vld [vmem:[#allocation3 + $0x130] sm:$0xff]  ;;  %v2169_v59 = vld [vmem:[#allocation3 + $0x40] sm:$0xff]  ;;  %5596 = vmatprep.subr.bf16.mxu1 %v5941_v39  ;;  %v5947_v15 = vld [vmem:[%s7381_s5 + $0xc8] sm:$0xff]  }
 0x1e0   : > { %v2198_v11 = vld [vmem:[#allocation3 + $0x128] sm:$0xff]  ;;  %v2226_v19 = vpack.c.bf16 %v2199_v1, %v2199_v1  ;;  %v2195_v18 = vld [vmem:[#allocation3 + $0x110] sm:$0xff]  ;;  %v2214_v28 = vpack.c.bf16 %v2178_v62, %v2169_v59  ;;  %v5950_v53 = vld [vmem:[%s7381_s5 + $0x10] sm:$0xff]  }
 0x1e1   : > { %v2225_v13 = vpack.c.bf16 %v2198_v11, %v2198_v11  ;;  %v2222_v40 = vpack.c.bf16 %v2195_v18, %v2186_v4  ;;  %v5942_v8 = vld [vmem:[%s7381_s5] sm:$0xff]   ;;  %v5946_v11 = vld [vmem:[%s7381_s5 + $0x8] sm:$0xff]   ;;  %v5952_v1 = vld [vmem:[%s7381_s5 + $0x90] sm:$0xff]  }
 0x1e2   : > { %v2155_v47 = vld [vmem:[#allocation2 + $0xa0] sm:$0x1f]  ;;  %v2200_v48 = vld [vmem:[#allocation3 + $0x138] sm:$0xff]  ;;  %v5953_v46 = vld [vmem:[%s7381_s5 + $0x58] sm:$0xff]  }
 0x1e3   : > { %2864 = vmatprep.mubr.bf16.mxu0 %v2225_v13  ;;  %v2159_v20 = vld [vmem:[#allocation2 + $0xa1] sm:$0x1f]  ;;  %2156 = vst [vmem:[#allocation3 + $0x150] sm:$0x1f] %v2155_v47  ;;  %v2227_v3 = vpack.c.bf16 %v2200_v48, %v2200_v48  ;;  %v2202_v31 = vld [vmem:[#allocation3 + $0x148] sm:$0xff]  ;;  %v5948_v13 = vld [vmem:[%s7381_s5 + $0x88] sm:$0xff]  }
 0x1e4   : > { %2865 = vmatmul.mubr.bf16.gmra.mrb[72].mxu0 %v2224_v44  ;;  %2160 = vst [vmem:[#allocation3 + $0x160] sm:$0x1f] %v2159_v20  ;;  %v2229_v16 = vpack.c.bf16 %v2202_v31, %v2202_v31  ;;  %v2201_v33 = vld [vmem:[#allocation3 + $0x140] sm:$0xff]  ;;  %v5943_v34 = vld [vmem:[%s7381_s5 + $0xc0] sm:$0xff]   ;;  %v5954_v47 = vld [vmem:[%s7381_s5 + $0x18] sm:$0xff]  }
 0x1e5   : > { %2960 = vmatprep.mubr.bf16.mxu0 %v2211_v55  ;;  %2920 = vmatprep.mubr.bf16.mxu1 %v2227_v3  ;;  %v2228_v14 = vpack.c.bf16 %v2201_v33, %v2201_v33  ;;  %v5944_v41 = vld [vmem:[%s7381_s5 + $0x80] sm:$0xff]   ;;  %v5949_v44 = vld [vmem:[%s7381_s5 + $0x50] sm:$0xff]   ;;  %v5955_v20 = vld [vmem:[%s7381_s5 + $0xd8] sm:$0xff]  }
 0x1e6   : > { %v2157_v12 = vld [vmem:[#allocation2 + $0xa8] sm:$0x1f]  ;;  %2921 = vmatmul.mubr.bf16.gmra.mrb[120].mxu1 %v2226_v19  ;;  %v5951_v55 = vld [vmem:[%s7381_s5 + $0xd0] sm:$0xff]   ;;  %v5956_v48 = vld [vmem:[%s7381_s5 + $0x98] sm:$0xff]  }
 0x1e7   : > { %2158 = vst [vmem:[#allocation3 + $0x158] sm:$0x1f] %v2157_v12  ;;  %3016 = vmatprep.mubr.bf16.mxu1 %v2213_v58  ;;  %v5957_v3 = vld [vmem:[%s7381_s5 + $0x60] sm:$0xff]   ;;  %v5961_v51 = vld [vmem:[%s7381_s5 + $0x68] sm:$0xff]   ;;  %v5967_v57 = vld [vmem:[%s7381_s5 + $0xf0] sm:$0xff]  }
 0x1e8   : > { %v5958_v60 = vld [vmem:[%s7381_s5 + $0x20] sm:$0xff]   ;;  %v5962_v52 = vld [vmem:[%s7381_s5 + $0x28] sm:$0xff]   ;;  %v5970_v23 = vld [vmem:[%s7381_s5 + $0x38] sm:$0xff]  }
 0x1e9   : > { %v5959_v12 = vld [vmem:[%s7381_s5 + $0xe0] sm:$0xff]   ;;  %v5963_v58 = vld [vmem:[%s7381_s5 + $0xe8] sm:$0xff]   ;;  %v5971_v18 = vld [vmem:[%s7381_s5 + $0xf8] sm:$0xff]  }
 0x1ea   : > { %v2203_v50 = vld [vmem:[#allocation3 + $0x150] sm:$0xff]  ;;  %v5964_v7 = vld [vmem:[%s7381_s5 + $0xa8] sm:$0xff]   ;;  %v5972_v26 = vld [vmem:[%s7381_s5 + $0xb8] sm:$0xff]  }
 0x1eb   : > { %v2230_v43 = vpack.c.bf16 %v2203_v50, %v2203_v50  ;;  %v2205_v30 = vld [vmem:[#allocation3 + $0x160] sm:$0xff]  ;;  %v5960_v19 = vld [vmem:[%s7381_s5 + $0xa0] sm:$0xff]  }
 0x1ec   : > { %2961 = vmatmul.mubr.bf16.vlgmr.msra.gmra.mrb[76].mxu0 %v2210_v54  ;;  %v2232_v32 = vpack.c.bf16 %v2205_v30, %v2205_v30  ;;  %v5966_v54 = vld [vmem:[%s7381_s5 + $0x30] sm:$0xff]   ;;  %v5973_v2 = vld [vmem:[%s7381_s5 + $0x140] sm:$0xff]  }
 0x1ed   : > { %5703 = vmatpush3.bf16.msra.mxu0 %v5931_v21  ;;  %2968 = vmatprep.mubr.bf16.mxu0 %v2220_v0  ;;  %v5965_v21 = vld [vmem:[%s7381_s5 + $0x70] sm:$0xff]   ;;  %v5975_v9 = vld [vmem:[%s7381_s5 + $0x1c0] sm:$0xff]  }
 0x1ee   : > { %5704 = vmatprep.subr.bf16.mxu0 %v6842_v63  ;;  %3017 = vmatmul.mubr.bf16.vlgmr.msra.gmra.mrb[124].mxu1 %v2212_v36  ;;  %v2204_v38 = vld [vmem:[#allocation3 + $0x158] sm:$0xff]  ;;  %v5968_v0 = vld [vmem:[%s7381_s5 + $0xb0] sm:$0xff]  }
 0x1ef   : > { %3024 = vmatprep.mubr.bf16.mxu1 %v2222_v40  ;;  %v2231_v5 = vpack.c.bf16 %v2204_v38, %v2204_v38  ;;  %5597 = vmatpush3.bf16.msra.mxu1 %v5942_v8 }
 0x1f0   : > { %5598 = vmatprep.subr.bf16.mxu1 %v5945_v42 }
 0x1f1   : > { %5705 = vmatpush3.bf16.msra.mxu0 %v5934_v25  ;;  %v5969_v25 = vld [vmem:[%s7381_s5 + $0x78] sm:$0xff]  }
 0x1f2   : > { %5706 = vmatprep.subr.bf16.mxu0 %v6842_v63 }
 0x1f3   : > { %5599 = vmatpush3.bf16.msra.mxu1 %v5946_v11 }
 0x1f4   : > { %2969 = vmatmul.mubr.bf16.gmra.mrb[80].mxu0 %v2219_v10  ;;  %5600 = vmatprep.subr.bf16.mxu1 %v5949_v44 }
 0x1f5   : > { %5707 = vmatpush3.bf16.msra.mxu0 %v5935_v37  ;;  %2976 = vmatprep.mubr.bf16.mxu0 %v2229_v16  ;;  %v4900_v16 = vld [vmem:[%s7380_s4] ss:$0 sm:$0xff] }
 0x1f6   : > { %5708 = vmatprep.subr.bf16.mxu0 %v6842_v63  ;;  %3025 = vmatmul.mubr.bf16.gmra.mrb[128].mxu1 %v2221_v6 }
 0x1f7   : > { %3032 = vmatprep.mubr.bf16.mxu1 %v2231_v5  ;;  %5601 = vmatpush3.bf16.msra.mxu1 %v5950_v53 }
 0x1f8   : > { %5602 = vmatprep.subr.bf16.mxu1 %v5953_v46 }
 0x1f9   : > { %5709 = vmatpush3.bf16.msra.mxu0 %v5936_v17 }
 0x1fa   : > { %5710 = vmatprep.subr.bf16.mxu0 %v6842_v63 }
 0x1fb   : > { %5603 = vmatpush3.bf16.msra.mxu1 %v5954_v47 }
 0x1fc   : > { %2977 = vmatmul.mubr.bf16.gmra.mrb[84].mxu0 %v2228_v14  ;;  %5604 = vmatprep.subr.bf16.mxu1 %v5957_v3 }
 0x1fd   : > { %5711 = vmatpush3.bf16.msra.mxu0 %v5937_v49  ;;  %5718 = vmatprep.mubr.msk.bf16.mxu0 %vm6127_vm0, %v6842_v63 }
 0x1fe   : > { %5712 = vmatprep.subr.bf16.mxu0 %v6842_v63  ;;  %3033 = vmatmul.mubr.bf16.gmra.mrb[132].mxu1 %v2230_v43 }
 0x1ff   : > { %5605 = vmatpush3.bf16.msra.mxu1 %v5958_v60 }
 0x200   : > { %5606 = vmatprep.subr.bf16.mxu1 %v5961_v51 }
 0x201   : > { %5713 = vmatpush3.bf16.msra.mxu0 %v5938_v22 }
 0x202   : > { %5714 = vmatprep.subr.bf16.mxu0 %v6842_v63 }
 0x203   : > { %5607 = vmatpush3.bf16.msra.mxu1 %v5962_v52 }
 0x204   : > { %5608 = vmatprep.subr.bf16.mxu1 %v5965_v21 }
 0x205   : > { %5715 = vmatpush3.bf16.msra.mxu0 %v5939_v27 }
 0x206   : > { %5716 = vmatprep.subr.bf16.mxu0 %v6842_v63 }
 0x207   : > { %5609 = vmatpush3.bf16.msra.mxu1 %v5966_v54 }
 0x208   : > { %5610 = vmatprep.subr.bf16.mxu1 %v5969_v25 }
 0x209   : > { %5717 = vmatpush3.bf16.msra.mxu0 %v5940_v45 }
 0x20a   : > { %5618 = vmatprep.subr.bf16.mxu0 %v5943_v34 }
 0x20b   : > { %5611 = vmatpush3.bf16.msra.mxu1 %v5970_v23 }
 0x20c   : > { %5719 = vmatmul.mubr.bf16.vlgmr.msra.gmra.mrb[88].mxu0 %v2214_v28  ;;  %5640 = vmatprep.subr.bf16.mxu1 %v5973_v2 }
 0x20d   : > { %5722 = vmatprep.mubr.msk.bf16.mxu0 %vm6127_vm0, %v6842_v63  ;;  %5619 = vmatpush3.bf16.msra.mxu0 %v5944_v41 }
 0x20e   : > { %5620 = vmatprep.subr.bf16.mxu0 %v5947_v15 }
 0x211   : > { %5621 = vmatpush3.bf16.msra.mxu0 %v5948_v13 }
 0x212   : > { %5622 = vmatprep.subr.bf16.mxu0 %v5951_v55 }
 0x214   : > { %5723 = vmatmul.mubr.bf16.gmra.mrb[92].mxu0 %v2223_v61 }
 0x215   : > { %5726 = vmatprep.mubr.msk.bf16.mxu0 %vm6127_vm0, %v6842_v63  ;;  %5623 = vmatpush3.bf16.msra.mxu0 %v5952_v1 }
 0x216   : > { %5624 = vmatprep.subr.bf16.mxu0 %v5955_v20 }
 0x219   : > { %5625 = vmatpush3.bf16.msra.mxu0 %v5956_v48 }
 0x21a   : > { %5626 = vmatprep.subr.bf16.mxu0 %v5959_v12 }
 0x21c   : > { %5727 = vmatmul.mubr.bf16.gmra.mrb[96].mxu0 %v2232_v32 }
 0x21d   : > { %5627 = vmatpush3.bf16.msra.mxu0 %v5960_v19 }
 0x21e   : > { %5628 = vmatprep.subr.bf16.mxu0 %v5963_v58 }
 0x221   : > { %5629 = vmatpush3.bf16.msra.mxu0 %v5964_v7 }
 0x222   : > { %5630 = vmatprep.subr.bf16.mxu0 %v5967_v57 }
 0x225   : > { %5631 = vmatpush3.bf16.msra.mxu0 %v5968_v0 }
 0x226   : > { %5632 = vmatprep.subr.bf16.mxu0 %v5971_v18 }
 0x229   : > { %5633 = vmatpush3.bf16.msra.mxu0 %v5972_v26 }
 0x22a   : > { %5662 = vmatprep.subr.bf16.mxu0 %v5975_v9 }
 0x286   : > { %v5465_v36 = vpop.f32.mrb[64].mxu0 }
 0x287   : > { %v5466_v4 = vpop.f32.mrb[65].mxu0 }
 0x288   : > { %v5467_v31 = vadd.f32 %v5466_v4, %v5465_v36  ;;  %v5468_v40 = vpop.f32.mrb[66].mxu0 }
 0x289   : > { %v5469_v37 = vpop.f32.mrb[67].mxu0 }
 0x28a   : > { %v5470_v10 = vadd.f32 %v5469_v37, %v5468_v40  ;;  %v5499_v17 = vpop.f32.mrb[112].mxu1  ;;  %v2851_v38 = vadd.f32 %v5467_v31, %v4900_v16 }
 0x28b   : > { %v5500_v24 = vpop.f32.mrb[113].mxu1 }
 0x28c   : > { %v5501_v56 = vadd.f32 %v5500_v24, %v5499_v17  ;;  %v5502_v33 = vpop.f32.mrb[114].mxu1  ;;  %v2854_v5 = vadd.f32 %v5470_v10, %v4900_v16 }
 0x28d   : > { %v5503_v6 = vpop.f32.mrb[115].mxu1 }
 0x28e   : > { %v2907_v49 = vadd.f32 %v5501_v56, %v2851_v38  ;;  %v5504_v14 = vadd.f32 %v5503_v6, %v5502_v33 }
 0x290   : > { %v2910_v22 = vadd.f32 %v5504_v14, %v2854_v5 }
 0x2a5   : > { %v5471_v50 = vpop.f32.mrb[68].mxu0 }
 0x2a6   : > { %v5472_v43 = vpop.f32.mrb[69].mxu0 }
 0x2a7   : > { %v5473_v27 = vadd.f32 %v5472_v43, %v5471_v50  ;;  %v5474_v45 = vpop.f32.mrb[70].mxu0 }
 0x2a8   : > { %v5475_v62 = vpop.f32.mrb[71].mxu0 }
 0x2a9   : > { %v5476_v59 = vadd.f32 %v5475_v62, %v5474_v45  ;;  %v2859_v35 = vadd.f32 %v5473_v27, %v4900_v16 }
 0x2aa   : > { %v5505_v28 = vpop.f32.mrb[116].mxu1 }
 0x2ab   : > { %v5506_v29 = vpop.f32.mrb[117].mxu1  ;;  %v2862_v39 = vadd.f32 %v5476_v59, %v4900_v16 }
 0x2ac   : > { %v5507_v61 = vadd.f32 %v5506_v29, %v5505_v28  ;;  %v5508_v30 = vpop.f32.mrb[118].mxu1 }
 0x2ad   : > { %v5509_v32 = vpop.f32.mrb[119].mxu1 }
 0x2ae   : > { %v2915_v8 = vadd.f32 %v5507_v61, %v2859_v35  ;;  %v5510_v34 = vadd.f32 %v5509_v32, %v5508_v30 }
 0x2b0   : > { %v2918_v41 = vadd.f32 %v5510_v34, %v2862_v39 }
 0x2b7   : > { %v5477_v42 = vpop.f32.mrb[72].mxu0 }
 0x2b8   : > { %v5478_v11 = vpop.f32.mrb[73].mxu0 }
 0x2b9   : > { %v5479_v15 = vadd.f32 %v5478_v11, %v5477_v42  ;;  %v5480_v13 = vpop.f32.mrb[74].mxu0  ;;  %v5511_v53 = vpop.f32.mrb[120].mxu1 }
 0x2ba   : > { %v5481_v44 = vpop.f32.mrb[75].mxu0  ;;  %v5512_v55 = vpop.f32.mrb[121].mxu1 }
 0x2bb   : > { %v2867_v1 = vadd.f32 %v5479_v15, %v4900_v16  ;;  %v5513_v46 = vadd.f32 %v5512_v55, %v5511_v53  ;;  %v5514_v47 = vpop.f32.mrb[122].mxu1 }
 0x2bc   : > { %v5515_v48 = vpop.f32.mrb[123].mxu1 }
 0x2bd   : > { %v2923_v60 = vadd.f32 %v5513_v46, %v2867_v1 }
 0x2bf   : > { %v5533_v20 = vpop.f32.mrb[76].mxu0 }
 0x2c0   : > { %v5534_v3 = vpop.f32.mrb[77].mxu0 }
 0x2c1   : > { %v5535_v12 = vadd.f32 %v5534_v3, %v5533_v20  ;;  %v5536_v19 = vpop.f32.mrb[78].mxu0  ;;  %v5567_v21 = vpop.f32.mrb[124].mxu1 }
 0x2c2   : > { %v5537_v51 = vpop.f32.mrb[79].mxu0  ;;  %v5568_v54 = vpop.f32.mrb[125].mxu1 }
 0x2c3   : > { %v2963_v52 = vadd.f32 %v5535_v12, %v2907_v49  ;;  %v5538_v58 = vadd.f32 %v5537_v51, %v5536_v19  ;;  %v5569_v57 = vadd.f32 %v5568_v54, %v5567_v21  ;;  %v5570_v25 = vpop.f32.mrb[126].mxu1 }
 0x2c4   : > { %v5571_v18 = vpop.f32.mrb[127].mxu1 }
 0x2c5   : > { %v2966_v7 = vadd.f32 %v5538_v58, %v2910_v22  ;;  %v5572_v2 = vadd.f32 %v5571_v18, %v5570_v25  ;;  %v3019_v4 = vadd.f32 %v5569_v57, %v2963_v52 }
 0x2c7   : > { %v5539_v0 = vpop.f32.mrb[80].mxu0  ;;  %v3022_v37 = vadd.f32 %v5572_v2, %v2966_v7 }
 0x2c8   : > { %v5540_v23 = vpop.f32.mrb[81].mxu0 }
 0x2c9   : > { %v5541_v26 = vadd.f32 %v5540_v23, %v5539_v0  ;;  %v5542_v36 = vpop.f32.mrb[82].mxu0  ;;  %v5573_v16 = vpop.f32.mrb[128].mxu1 }
 0x2ca   : > { %v5543_v31 = vpop.f32.mrb[83].mxu0  ;;  %v5574_v17 = vpop.f32.mrb[129].mxu1 }
 0x2cb   : > { %v2971_v40 = vadd.f32 %v5541_v26, %v2915_v8  ;;  %v5544_v9 = vadd.f32 %v5543_v31, %v5542_v36  ;;  %v5575_v24 = vadd.f32 %v5574_v17, %v5573_v16  ;;  %v5576_v56 = vpop.f32.mrb[130].mxu1 }
 0x2cc   : > { %v5577_v6 = vpop.f32.mrb[131].mxu1 }
 0x2cd   : > { %v2974_v10 = vadd.f32 %v5544_v9, %v2918_v41  ;;  %v5578_v49 = vadd.f32 %v5577_v6, %v5576_v56  ;;  %v3027_v22 = vadd.f32 %v5575_v24, %v2971_v40 }
 0x2cf   : > { %v5545_v38 = vpop.f32.mrb[84].mxu0  ;;  %v3030_v27 = vadd.f32 %v5578_v49, %v2974_v10 }
 0x2d0   : > { %v5546_v33 = vpop.f32.mrb[85].mxu0 }
 0x2d1   : > { %v5547_v5 = vadd.f32 %v5546_v33, %v5545_v38  ;;  %v5548_v14 = vpop.f32.mrb[86].mxu0  ;;  %v5579_v45 = vpop.f32.mrb[132].mxu1 }
 0x2d2   : > { %v5549_v50 = vpop.f32.mrb[87].mxu0  ;;  %v5580_v62 = vpop.f32.mrb[133].mxu1 }
 0x2d3   : > { %v2979_v43 = vadd.f32 %v5547_v5, %v2923_v60  ;;  %v5581_v59 = vadd.f32 %v5580_v62, %v5579_v45  ;;  %v5582_v28 = vpop.f32.mrb[134].mxu1 }
 0x2d4   : > { %v5583_v29 = vpop.f32.mrb[135].mxu1 }
 0x2d5   : > { %v3035_v35 = vadd.f32 %v5581_v59, %v2979_v43 }
 0x2df   : > { %v3074_v61 = vpop.f32.mrb[88].mxu0 }
 0x2e0   : > { %v3075_v30 = vadd.f32 %v3074_v61, %v3019_v4  ;;  %v5720_v32 = vpop.f32.mrb[89].mxu0 }
 0x2e1   : > { %v3077_v39 = vpop.f32.mrb[90].mxu0 }
 0x2e2   : > { %v3096_v8 = vmax.f32 %v3075_v30, 0.0  ;;  %v3078_v34 = vadd.f32 %v3077_v39, %v3022_v37  ;;  %v5721_v41 = vpop.f32.mrb[91].mxu0 }
 0x2e4   : > { %3101 = vst [vmem:[#allocation4] sm:$0xff] %v3096_v8  ;;  %v3097_v42 = vmax.f32 %v3078_v34, 0.0 }
 0x2e6   : > { %3102 = vst [vmem:[#allocation4 + $0x8] sm:$0xff] %v3097_v42 }
 0x2e7   : > { %v3082_v11 = vpop.f32.mrb[92].mxu0 }
 0x2e8   : > { %v3083_v15 = vadd.f32 %v3082_v11, %v3027_v22  ;;  %v5724_v13 = vpop.f32.mrb[93].mxu0 }
 0x2e9   : > { %v3085_v44 = vpop.f32.mrb[94].mxu0 }
 0x2ea   : > { %v3098_v53 = vmax.f32 %v3083_v15, 0.0  ;;  %v3086_v55 = vadd.f32 %v3085_v44, %v3030_v27  ;;  %v5725_v1 = vpop.f32.mrb[95].mxu0 }
 0x2eb   : > { %v3106_v46 = vld [vmem:[#allocation4] sm:$0x1]  ;;  %v3108_v47 = vld [vmem:[#allocation4 + $0x2] sm:$0x1]  ;;  %v3116_v20 = vld [vmem:[#allocation4 + $0x1] sm:$0x1] }
 0x2ec   : > { %3103 = vst [vmem:[#allocation4 + $0x10] sm:$0xff] %v3098_v53  ;;  %v3118_v48 = vld [vmem:[#allocation4 + $0x3] sm:$0x1]  ;;  %v3099_v3 = vmax.f32 %v3086_v55, 0.0  ;;  %v3126_v12 = vld [vmem:[#allocation4 + $0x2] sm:$0x1]  ;;  %v3109_v7 = vadd.f32 %v3108_v47, %v3106_v46 }
 0x2ed   : > { %v3128_v19 = vld [vmem:[#allocation4 + $0x4] sm:$0x1]  ;;  %v3119_v21 = vadd.f32 %v3118_v48, %v3116_v20  ;;  %v3136_v54 = vld [vmem:[#allocation4 + $0x8] sm:$0x1]  ;;  %v3138_v57 = vld [vmem:[#allocation4 + $0xa] sm:$0x1] }
 0x2ee   : > { %3104 = vst [vmem:[#allocation4 + $0x18] sm:$0xff] %v3099_v3  ;;  %v3129_v23 = vadd.f32 %v3128_v19, %v3126_v12  ;;  %v3146_v18 = vld [vmem:[#allocation4 + $0x9] sm:$0x1]  ;;  %v3148_v36 = vld [vmem:[#allocation4 + $0xb] sm:$0x1]  ;;  %v3139_v5 = vadd.f32 %v3138_v57, %v3136_v54 }
 0x2ef   : > { %v3090_v60 = vpop.f32.mrb[96].mxu0  ;;  %v3156_v4 = vld [vmem:[#allocation4 + $0xa] sm:$0x1]  ;;  %v3158_v37 = vld [vmem:[#allocation4 + $0xc] sm:$0x1]  ;;  %v3149_v43 = vadd.f32 %v3148_v36, %v3146_v18  ;;  %v5977_v36 = vld [vmem:[%s7381_s5 + $0x148] sm:$0xff]  }
 0x2f0   : > { %v3091_v51 = vadd.f32 %v3090_v60, %v3035_v35  ;;  %v5728_v52 = vpop.f32.mrb[97].mxu0  ;;  %v3159_v28 = vadd.f32 %v3158_v37, %v3156_v4  ;;  %v5976_v37 = vld [vmem:[%s7381_s5 + $0x180] sm:$0xff]  }
 0x2f1   : > { %v3093_v58 = vpop.f32.mrb[98].mxu0 }
 0x2f2   : > { %v3100_v0 = vmax.f32 %v3091_v51, 0.0  ;;  %v5729_v25 = vpop.f32.mrb[99].mxu0 }
 0x2f3   : > { %v3110_v26 = vld [vmem:[#allocation4 + $0x10] sm:$0x1]  ;;  %v3120_v2 = vld [vmem:[#allocation4 + $0x11] sm:$0x1]  ;;  %v3130_v9 = vld [vmem:[#allocation4 + $0x12] sm:$0x1] }
 0x2f4   : > { %v3111_v31 = vadd.f32 %v3110_v26, %v3109_v7  ;;  %v3121_v40 = vadd.f32 %v3120_v2, %v3119_v21  ;;  %3105 = vst [vmem:[#allocation4 + $0x20] sm:$0xff] %v3100_v0  ;;  %v3112_v10 = vld [vmem:[#allocation4 + $0x12] sm:$0x1]  ;;  %v3122_v16 = vld [vmem:[#allocation4 + $0x13] sm:$0x1]  ;;  %v3131_v17 = vadd.f32 %v3130_v9, %v3129_v23  ;;  %v5974_v2 = vld [vmem:[%s7381_s5 + $0x100] sm:$0xff]  }
 0x2f5   : > { %v3132_v56 = vld [vmem:[#allocation4 + $0x14] sm:$0x1]  ;;  %v3166_v33 = vld [vmem:[#allocation4 + $0x10] sm:$0x1]  ;;  %v3168_v6 = vld [vmem:[#allocation4 + $0x12] sm:$0x1] }
 0x2f6   : > { %v3113_v24 = vadd.f32 %v3112_v10, %v3111_v31  ;;  %v3123_v38 = vadd.f32 %v3122_v16, %v3121_v40  ;;  %v3133_v49 = vadd.f32 %v3132_v56, %v3131_v17  ;;  %v3176_v14 = vld [vmem:[#allocation4 + $0x11] sm:$0x1]  ;;  %v3178_v22 = vld [vmem:[#allocation4 + $0x13] sm:$0x1]  ;;  %v3186_v50 = vld [vmem:[#allocation4 + $0x12] sm:$0x1]  ;;  %v3169_v30 = vadd.f32 %v3168_v6, %v3166_v33 }
 0x2f7   : > { %v3188_v62 = vld [vmem:[#allocation4 + $0x14] sm:$0x1]  ;;  %v3140_v59 = vld [vmem:[#allocation4 + $0x18] sm:$0x1]  ;;  %v3150_v61 = vld [vmem:[#allocation4 + $0x19] sm:$0x1]  ;;  %v3179_v32 = vadd.f32 %v3178_v22, %v3176_v14 }
 0x2f8   : > { %v3114_v27 = vmul.f32 0.25, %v3113_v24  ;;  %v3124_v45 = vmul.f32 0.25, %v3123_v38  ;;  %v3134_v29 = vmul.f32 0.25, %v3133_v49  ;;  %v3141_v35 = vadd.f32 %v3140_v59, %v3139_v5  ;;  %v3142_v39 = vld [vmem:[#allocation4 + $0x1a] sm:$0x1]  ;;  %v5978_v40 = vld [vmem:[%s7381_s5 + $0x108] sm:$0xff]  }
 0x2f9   : > { %v3151_v8 = vadd.f32 %v3150_v61, %v3149_v43  ;;  %v3160_v34 = vld [vmem:[#allocation4 + $0x1a] sm:$0x1]  ;;  %v3189_v41 = vadd.f32 %v3188_v62, %v3186_v50  ;;  %v3152_v11 = vld [vmem:[#allocation4 + $0x1b] sm:$0x1]  ;;  %v3162_v55 = vld [vmem:[#allocation4 + $0x1c] sm:$0x1] }
 0x2fa   : > { %3115 = vst [vmem:[#allocation5] sm:$0x1] %v3114_v27  ;;  %3125 = vst [vmem:[#allocation5 + $0x8] sm:$0x1] %v3124_v45  ;;  %v3143_v42 = vadd.f32 %v3142_v39, %v3141_v35  ;;  %v3161_v15 = vadd.f32 %v3160_v34, %v3159_v28  ;;  %v5979_v17 = vld [vmem:[%s7381_s5 + $0x1c8] sm:$0xff]   ;;  %v5981_v24 = vld [vmem:[%s7381_s5 + $0x150] sm:$0xff]  }
 0x2fb   : > { %3135 = vst [vmem:[#allocation5 + $0x10] sm:$0x1] %v3134_v29  ;;  %v3170_v13 = vld [vmem:[#allocation4 + $0x20] sm:$0x1]  ;;  %v3180_v44 = vld [vmem:[#allocation4 + $0x21] sm:$0x1]  ;;  %v3153_v53 = vadd.f32 %v3152_v11, %v3151_v8 }
 0x2fc   : > { %v3171_v1 = vadd.f32 %v3170_v13, %v3169_v30  ;;  %v3181_v46 = vadd.f32 %v3180_v44, %v3179_v32  ;;  %v3190_v47 = vld [vmem:[#allocation4 + $0x22] sm:$0x1]  ;;  %v3144_v20 = vmul.f32 0.25, %v3143_v42  ;;  %v3163_v48 = vadd.f32 %v3162_v55, %v3161_v15  ;;  %v3182_v60 = vld [vmem:[#allocation4 + $0x23] sm:$0x1]  ;;  %v5982_v6 = vld [vmem:[%s7381_s5 + $0x110] sm:$0xff]  }
 0x2fd   : > { %v3172_v3 = vld [vmem:[#allocation4 + $0x22] sm:$0x1]  ;;  %v3191_v12 = vadd.f32 %v3190_v47, %v3189_v41  ;;  %v3154_v19 = vmul.f32 0.25, %v3153_v53  ;;  %v3192_v58 = vld [vmem:[#allocation4 + $0x24] sm:$0x1]  ;;  %v5980_v5 = vld [vmem:[%s7381_s5 + $0x188] sm:$0xff]  }
 0x2fe   : > { %v3173_v51 = vadd.f32 %v3172_v3, %v3171_v1  ;;  %v3183_v52 = vadd.f32 %v3182_v60, %v3181_v46  ;;  %v3164_v7 = vmul.f32 0.25, %v3163_v48  ;;  %3145 = vst [vmem:[#allocation5 + $0x18] sm:$0x1] %v3144_v20  ;;  %v5985_v49 = vld [vmem:[%s7381_s5 + $0x158] sm:$0xff]   ;;  %v5983_v14 = vld [vmem:[%s7381_s5 + $0x1d0] sm:$0xff]   ;;  %v5989_v43 = vld [vmem:[%s7381_s5 + $0x160] sm:$0xff]  }
 0x2ff   : > { %v3193_v21 = vadd.f32 %v3192_v58, %v3191_v12  ;;  %3155 = vst [vmem:[#allocation5 + $0x20] sm:$0x1] %v3154_v19  ;;  %v5986_v22 = vld [vmem:[%s7381_s5 + $0x118] sm:$0xff]   ;;  %v5984_v50 = vld [vmem:[%s7381_s5 + $0x190] sm:$0xff]   ;;  %v5990_v45 = vld [vmem:[%s7381_s5 + $0x120] sm:$0xff]  }
 0x300   : > { %v3174_v54 = vmul.f32 0.25, %v3173_v51  ;;  %v3184_v57 = vmul.f32 0.25, %v3183_v52  ;;  %3165 = vst [vmem:[#allocation5 + $0x28] sm:$0x1] %v3164_v7  ;;  %v5987_v27 = vld [vmem:[%s7381_s5 + $0x1d8] sm:$0xff]   ;;  %v5993_v59 = vld [vmem:[%s7381_s5 + $0x168] sm:$0xff]  }
 0x301   : > { %v3194_v0 = vmul.f32 0.25, %v3193_v21  ;;  %v3197_v25 = vld [vmem:[#allocation5 + $0x8] sm:$0xff]  ;;  %v3196_v23 = vld [vmem:[#allocation5] sm:$0xff]  ;;  %v5988_v62 = vld [vmem:[%s7381_s5 + $0x198] sm:$0xff]  }
 0x302   : > { %3175 = vst [vmem:[#allocation5 + $0x30] sm:$0x1] %v3174_v54  ;;  %3185 = vst [vmem:[#allocation5 + $0x38] sm:$0x1] %v3184_v57  ;;  %v3206_v18 = vpack.c.bf16 %v3197_v25, %v3197_v25  ;;  %v3205_v26 = vpack.c.bf16 %v3196_v23, %v3196_v23  ;;  %v3198_v4 = vld [vmem:[#allocation5 + $0x10] sm:$0xff]  ;;  %v5991_v28 = vld [vmem:[%s7381_s5 + $0x1e0] sm:$0xff]  }
 0x303   : > { %3195 = vst [vmem:[#allocation5 + $0x40] sm:$0x1] %v3194_v0  ;;  %v3207_v16 = vpack.c.bf16 %v3198_v4, %v3198_v4  ;;  %v5994_v29 = vld [vmem:[%s7381_s5 + $0x128] sm:$0xff]   ;;  %v5992_v35 = vld [vmem:[%s7381_s5 + $0x1a0] sm:$0xff]   ;;  %v5997_v61 = vld [vmem:[%s7381_s5 + $0x170] sm:$0xff]  }
 0x304   : > { %3829 = vmatprep.mubr.bf16.mxu1 %v3206_v18  ;;  %v5995_v30 = vld [vmem:[%s7381_s5 + $0x1e8] sm:$0xff]   ;;  %v5998_v32 = vld [vmem:[%s7381_s5 + $0x130] sm:$0xff]   ;;  %v6001_v8 = vld [vmem:[%s7381_s5 + $0x178] sm:$0xff]  }
 0x305   : > { %3830 = vmatmul.mubr.bf16.vlgmr.msra.gmra.mrb[136].mxu1 %v3205_v26  ;;  %v3199_v31 = vld [vmem:[#allocation5 + $0x18] sm:$0xff]  ;;  %v5996_v39 = vld [vmem:[%s7381_s5 + $0x1a8] sm:$0xff]   ;;  %v5999_v34 = vld [vmem:[%s7381_s5 + $0x1f0] sm:$0xff]  }
 0x306   : > { %5641 = vmatpush3.bf16.msra.mxu1 %v5974_v2  ;;  %v3208_v9 = vpack.c.bf16 %v3199_v31, %v3199_v31  ;;  %v6002_v41 = vld [vmem:[%s7381_s5 + $0x138] sm:$0xff]   ;;  %v6000_v42 = vld [vmem:[%s7381_s5 + $0x1b0] sm:$0xff]   ;;  %v3200_v15 = vld [vmem:[#allocation5 + $0x20] sm:$0xff] }
 0x307   : > { %5642 = vmatprep.subr.bf16.mxu1 %v5977_v36  ;;  %v3201_v10 = vld [vmem:[#allocation5 + $0x28] sm:$0xff]  ;;  %v6003_v11 = vld [vmem:[%s7381_s5 + $0x1f8] sm:$0xff]   ;;  %v6005_v13 = vld [vmem:[%s7381_s5 + $0x200] sm:$0xff]   ;;  %v3209_v53 = vpack.c.bf16 %v3200_v15, %v3200_v15 }
 0x308   : > { %3869 = vmatprep.mubr.bf16.mxu0 %v3208_v9  ;;  %v3210_v38 = vpack.c.bf16 %v3201_v10, %v3201_v10  ;;  %v6004_v44 = vld [vmem:[%s7381_s5 + $0x1b8] sm:$0xff]   ;;  %v6006_v1 = vld [vmem:[%s7381_s5 + $0x208] sm:$0xff]   ;;  %v6007_v47 = vld [vmem:[%s7381_s5 + $0x210] sm:$0xff]  }
 0x309   : > { %v3203_v56 = vld [vmem:[#allocation5 + $0x38] sm:$0xff]  ;;  %3870 = vmatmul.mubr.bf16.vlgmr.msra.gmra.mrb[100].mxu0 %v3207_v16  ;;  %v3202_v55 = vld [vmem:[#allocation5 + $0x30] sm:$0xff]  ;;  %v6009_v48 = vld [vmem:[%s7381_s5 + $0x220] sm:$0xff]  }
 0x30a   : > { %5643 = vmatpush3.bf16.msra.mxu1 %v5978_v40  ;;  %v3212_v33 = vpack.c.bf16 %v3203_v56, %v3203_v56  ;;  %3909 = vmatprep.mubr.bf16.mxu1 %v3210_v38  ;;  %v3211_v46 = vpack.c.bf16 %v3202_v55, %v3202_v55  ;;  %v6008_v20 = vld [vmem:[%s7381_s5 + $0x218] sm:$0xff]   ;;  %v6010_v3 = vld [vmem:[%s7381_s5 + $0x228] sm:$0xff]   ;;  %v6011_v60 = vld [vmem:[%s7381_s5 + $0x230] sm:$0xff]  }
 0x30b   : > { %5663 = vmatpush3.bf16.msra.mxu0 %v5976_v37  ;;  %5644 = vmatprep.subr.bf16.mxu1 %v5981_v24  ;;  %v6012_v12 = vld [vmem:[%s7381_s5 + $0x238] sm:$0xff]   ;;  %v3204_v19 = vld [vmem:[#allocation5 + $0x40] sm:$0xff]  ;;  %v6016_v7 = vld [vmem:[%s7383_s7 + $0x8] ss:$12 sps:$4 sm:$0xff]  }
 0x30c   : > { %5664 = vmatprep.subr.bf16.mxu0 %v5979_v17  ;;  %3949 = vmatprep.mubr.bf16.mxu0 %v3212_v33  ;;  %v3213_v51 = vpack.c.bf16 %v3204_v19, %v3204_v19  ;;  %v6015_v52 = vld [vmem:[%s7383_s7 + $0x4] ss:$12 sps:$4 sm:$0xff]   ;;  %v6013_v58 = vld [vmem:[%s7383_s7] ss:$12 sps:$4 sm:$0xff]   ;;  %v6019_v21 = vld [vmem:[%s7383_s7 + $0x1c] ss:$12 sps:$4 sm:$0xff]  }
 0x30d   : > { %v6017_v54 = vld [vmem:[%s7383_s7 + $0x18] ss:$12 sps:$4 sm:$0xff]   ;;  %v6020_v57 = vld [vmem:[%s7383_s7 + $0x20] ss:$12 sps:$4 sm:$0xff]   ;;  %v6021_v25 = vld [vmem:[%s7383_s7 + $0x30] ss:$12 sps:$4 sm:$0xff]  }
 0x30e   : > { %5645 = vmatpush3.bf16.msra.mxu1 %v5982_v6  ;;  %v6023_v0 = vld [vmem:[%s7383_s7 + $0x34] ss:$12 sps:$4 sm:$0xff]   ;;  %v6024_v23 = vld [vmem:[%s7383_s7 + $0x38] ss:$12 sps:$4 sm:$0xff]   ;;  %v6028_v2 = vld [vmem:[%s7383_s7 + $0x50] ss:$12 sps:$4 sm:$0xff]  }
 0x30f   : > { %5665 = vmatpush3.bf16.msra.mxu0 %v5980_v5  ;;  %5646 = vmatprep.subr.bf16.mxu1 %v5985_v49  ;;  %v6027_v18 = vld [vmem:[%s7383_s7 + $0x4c] ss:$12 sps:$4 sm:$0xff]   ;;  %v6025_v26 = vld [vmem:[%s7383_s7 + $0x48] ss:$12 sps:$4 sm:$0xff]   ;;  %v6031_v36 = vld [vmem:[%s7383_s7 + $0x64] ss:$12 sps:$4 sm:$0xff]  }
 0x310   : > { %5666 = vmatprep.subr.bf16.mxu0 %v5983_v14  ;;  %v6029_v4 = vld [vmem:[%s7383_s7 + $0x60] ss:$12 sps:$4 sm:$0xff]   ;;  %v6032_v31 = vld [vmem:[%s7383_s7 + $0x68] ss:$12 sps:$4 sm:$0xff]   ;;  %v6033_v9 = vld [vmem:[%s7383_s7 + $0x78] ss:$12 sps:$4 sm:$0xff]  }
 0x311   : > { %v6035_v40 = vld [vmem:[%s7383_s7 + $0x7c] ss:$12 sps:$4 sm:$0xff]   ;;  %v6036_v37 = vld [vmem:[%s7383_s7 + $0x80] ss:$12 sps:$4 sm:$0xff]   ;;  %v6040_v17 = vld [vmem:[%s7383_s7 + $0x98] ss:$12 sps:$4 sm:$0xff]  }
 0x312   : > { %5647 = vmatpush3.bf16.msra.mxu1 %v5986_v22  ;;  %v6039_v10 = vld [vmem:[%s7383_s7 + $0x94] ss:$12 sps:$4 sm:$0xff]   ;;  %v6037_v16 = vld [vmem:[%s7383_s7 + $0x90] ss:$12 sps:$4 sm:$0xff]   ;;  %v6043_v38 = vld [vmem:[%s7383_s7 + $0xac] ss:$12 sps:$4 sm:$0xff]  }
 0x313   : > { %5667 = vmatpush3.bf16.msra.mxu0 %v5984_v50  ;;  %5648 = vmatprep.subr.bf16.mxu1 %v5989_v43  ;;  %v6041_v24 = vld [vmem:[%s7383_s7 + $0xa8] ss:$12 sps:$4 sm:$0xff]   ;;  %v6044_v56 = vld [vmem:[%s7383_s7 + $0xb0] ss:$12 sps:$4 sm:$0xff]   ;;  %v6128_v33 = vmov 0  }
 0x314   : > { %5668 = vmatprep.subr.bf16.mxu0 %v5987_v27  ;;  %v6047_v6 = vld [vmem:[%s7385_s9 + $0x4] ss:$8 sps:$4 sm:$0xff]   ;;  %5804 = vset.pattern.permute.xlu0 %v6128_v33  ;;  %v6056_v19 = vld [vmem:[%s7385_s9 + $0x34] ss:$8 sps:$4 sm:$0xff]  }
 0x316   : > { %5649 = vmatpush3.bf16.msra.mxu1 %v5990_v45 }
 0x317   : > { %5669 = vmatpush3.bf16.msra.mxu0 %v5988_v62  ;;  %5650 = vmatprep.subr.bf16.mxu1 %v5993_v59 }
 0x318   : > { %5670 = vmatprep.subr.bf16.mxu0 %v5991_v28 }
 0x31a   : > { %5651 = vmatpush3.bf16.msra.mxu1 %v5994_v29 }
 0x31b   : > { %5671 = vmatpush3.bf16.msra.mxu0 %v5992_v35  ;;  %5652 = vmatprep.subr.bf16.mxu1 %v5997_v61 }
 0x31c   : > { %5672 = vmatprep.subr.bf16.mxu0 %v5995_v30 }
 0x31e   : > { %5653 = vmatpush3.bf16.msra.mxu1 %v5998_v32 }
 0x31f   : > { %5673 = vmatpush3.bf16.msra.mxu0 %v5996_v39  ;;  %5654 = vmatprep.subr.bf16.mxu1 %v6001_v8 }
 0x320   : > { %5674 = vmatprep.subr.bf16.mxu0 %v5999_v34 }
 0x322   : > { %5655 = vmatpush3.bf16.msra.mxu1 %v6002_v41 }
 0x323   : > { %5675 = vmatpush3.bf16.msra.mxu0 %v6000_v42  ;;  %5730 = vmatprep.subr.bf16.mxu1 %v6842_v63 }
 0x324   : > { %5676 = vmatprep.subr.bf16.mxu0 %v6003_v11 }
 0x325   : > { %3910 = vmatmul.mubr.bf16.vlgmr.msra.gmra.mrb[140].mxu1 %v3209_v53 }
 0x326   : > { %5731 = vmatpush3.bf16.msra.mxu1 %v6005_v13  ;;  %5746 = vmatprep.mubr.msk.bf16.mxu1 %vm6127_vm0, %v6842_v63 }
 0x327   : > { %5677 = vmatpush3.bf16.msra.mxu0 %v6004_v44  ;;  %5732 = vmatprep.subr.bf16.mxu1 %v6842_v63 }
 0x328   : > { %4175 = vmatprep.subr.bf16.mxu0 %v6015_v52  ;;  %v6059_v52 = vld [vmem:[%s7385_s9 + $0x44] ss:$8 sps:$4 sm:$0xff]  }
 0x32a   : > { %3950 = vmatmul.mubr.bf16.vlgmr.msra.gmra.mrb[104].mxu0 %v3211_v46  ;;  %5733 = vmatpush3.bf16.msra.mxu1 %v6006_v1  ;;  %v6045_v46 = vld [vmem:[%s7385_s9] ss:$8 sps:$4 sm:$0xff]  }
 0x32b   : > { %5734 = vmatprep.subr.bf16.mxu1 %v6842_v63  ;;  %4176 = vmatpush1.bf16.msra.mxu0 %v6013_v58  ;;  %v6057_v58 = vld [vmem:[%s7385_s9 + $0x40] ss:$8 sps:$4 sm:$0xff]  }
 0x32c   : > { %4177 = vmatprep.subr.bf16.mxu0 %v6019_v21  ;;  %4207 = vmatprep.mubr.bf16.mxu0 %v6128_v33  ;;  %v6060_v21 = vld [vmem:[%s7385_s9 + $0x50] ss:$8 sps:$4 sm:$0xff]  }
 0x32e   : > { %5735 = vmatpush3.bf16.msra.mxu1 %v6007_v47 }
 0x32f   : > { %5736 = vmatprep.subr.bf16.mxu1 %v6842_v63  ;;  %4178 = vmatpush1.bf16.msra.mxu0 %v6017_v54  ;;  %v6065_v54 = vld [vmem:[%s7385_s9 + $0x64] ss:$8 sps:$4 sm:$0xff]  }
 0x330   : > { %4179 = vmatprep.subr.bf16.mxu0 %v6023_v0  ;;  %v6068_v0 = vld [vmem:[%s7385_s9 + $0x74] ss:$8 sps:$4 sm:$0xff]  }
 0x332   : > { %5737 = vmatpush3.bf16.msra.mxu1 %v6008_v20 }
 0x333   : > { %5738 = vmatprep.subr.bf16.mxu1 %v6842_v63  ;;  %4180 = vmatpush1.bf16.msra.mxu0 %v6021_v25  ;;  %v6066_v25 = vld [vmem:[%s7385_s9 + $0x70] ss:$8 sps:$4 sm:$0xff]  }
 0x334   : > { %4181 = vmatprep.subr.bf16.mxu0 %v6027_v18  ;;  %v6069_v18 = vld [vmem:[%s7385_s9 + $0x80] ss:$8 sps:$4 sm:$0xff]  }
 0x336   : > { %5739 = vmatpush3.bf16.msra.mxu1 %v6009_v48  ;;  %v6050_v48 = vld [vmem:[%s7385_s9 + $0x14] ss:$8 sps:$4 sm:$0xff]  }
 0x337   : > { %5740 = vmatprep.subr.bf16.mxu1 %v6842_v63  ;;  %4182 = vmatpush1.bf16.msra.mxu0 %v6025_v26  ;;  %v6074_v26 = vld [vmem:[%s7385_s9 + $0x94] ss:$8 sps:$4 sm:$0xff]  }
 0x338   : > { %4183 = vmatprep.subr.bf16.mxu0 %v6031_v36  ;;  %v6077_v36 = vld [vmem:[%s7385_s9 + $0xa4] ss:$8 sps:$4 sm:$0xff]  }
 0x33a   : > { %5741 = vmatpush3.bf16.msra.mxu1 %v6010_v3  ;;  %v6048_v3 = vld [vmem:[%s7385_s9 + $0x10] ss:$8 sps:$4 sm:$0xff]  }
 0x33b   : > { %5742 = vmatprep.subr.bf16.mxu1 %v6842_v63  ;;  %4184 = vmatpush1.bf16.msra.mxu0 %v6029_v4  ;;  %v6075_v4 = vld [vmem:[%s7385_s9 + $0xa0] ss:$8 sps:$4 sm:$0xff]  }
 0x33c   : > { %4185 = vmatprep.subr.bf16.mxu0 %v6035_v40  ;;  %v6078_v40 = vld [vmem:[%s7385_s9 + $0xb0] ss:$8 sps:$4 sm:$0xff]  }
 0x33e   : > { %5743 = vmatpush3.bf16.msra.mxu1 %v6011_v60  ;;  %v6053_v60 = vld [vmem:[%s7385_s9 + $0x24] ss:$8 sps:$4 sm:$0xff]  }
 0x33f   : > { %5744 = vmatprep.subr.bf16.mxu1 %v6842_v63  ;;  %4186 = vmatpush1.bf16.msra.mxu0 %v6033_v9  ;;  %v6083_v9 = vld [vmem:[%s7385_s9 + $0xc4] ss:$8 sps:$4 sm:$0xff]  }
 0x340   : > { %4187 = vmatprep.subr.bf16.mxu0 %v6039_v10  ;;  %v6086_v10 = vld [vmem:[%s7385_s9 + $0xd4] ss:$8 sps:$4 sm:$0xff]  }
 0x342   : > { %5745 = vmatpush3.bf16.msra.mxu1 %v6012_v12  ;;  %v6051_v12 = vld [vmem:[%s7385_s9 + $0x20] ss:$8 sps:$4 sm:$0xff]  }
 0x343   : > { %5750 = vmatprep.subr.bf16.mxu1 %v6842_v63  ;;  %4188 = vmatpush1.bf16.msra.mxu0 %v6037_v16  ;;  %v6084_v16 = vld [vmem:[%s7385_s9 + $0xd0] ss:$8 sps:$4 sm:$0xff]  }
 0x344   : > { %4189 = vmatprep.subr.bf16.mxu0 %v6043_v38  ;;  %v6090_v38 = vld [vmem:[%s7385_s9 + $0xf0] ss:$8 sps:$4 sm:$0xff]  }
 0x345   : > { %5747 = vmatmul.mubr.bf16.vlgmr.msra.gmra.mrb[144].mxu1 %v3213_v51  ;;  %v6054_v51 = vld [vmem:[%s7385_s9 + $0x30] ss:$8 sps:$4 sm:$0xff]  }
 0x346   : > { %5766 = vmatprep.mubr.msk.bf16.mxu1 %vm6127_vm0, %v6842_v63  ;;  %5751 = vmatpush3.bf16.msra.mxu1 %v6016_v7  ;;  %v6062_v7 = vld [vmem:[%s7385_s9 + $0x54] ss:$8 sps:$4 sm:$0xff]  }
 0x347   : > { %5752 = vmatprep.subr.bf16.mxu1 %v6842_v63  ;;  %4190 = vmatpush1.bf16.msra.mxu0 %v6041_v24  ;;  %v6087_v24 = vld [vmem:[%s7385_s9 + $0xe0] ss:$8 sps:$4 sm:$0xff]  }
 0x348   : > { %4568 = vmatprep.subr.bf16.mxu0 %v6047_v6  ;;  %v6095_v6 = vld [vmem:[%s7385_s9 + $0x104] ss:$8 sps:$4 sm:$0xff]  }
 0x34a   : > { %5753 = vmatpush3.bf16.msra.mxu1 %v6020_v57  ;;  %v6063_v57 = vld [vmem:[%s7385_s9 + $0x60] ss:$8 sps:$4 sm:$0xff]  }
 0x34b   : > { %5754 = vmatprep.subr.bf16.mxu1 %v6842_v63 }
 0x34e   : > { %5755 = vmatpush3.bf16.msra.mxu1 %v6024_v23  ;;  %v6071_v23 = vld [vmem:[%s7385_s9 + $0x84] ss:$8 sps:$4 sm:$0xff]  }
 0x34f   : > { %5756 = vmatprep.subr.bf16.mxu1 %v6842_v63 }
 0x352   : > { %5757 = vmatpush3.bf16.msra.mxu1 %v6028_v2  ;;  %v6072_v2 = vld [vmem:[%s7385_s9 + $0x90] ss:$8 sps:$4 sm:$0xff]  }
 0x353   : > { %5758 = vmatprep.subr.bf16.mxu1 %v6842_v63 }
 0x356   : > { %5759 = vmatpush3.bf16.msra.mxu1 %v6032_v31  ;;  %v6080_v31 = vld [vmem:[%s7385_s9 + $0xb4] ss:$8 sps:$4 sm:$0xff]  }
 0x357   : > { %5760 = vmatprep.subr.bf16.mxu1 %v6842_v63 }
 0x35a   : > { %5761 = vmatpush3.bf16.msra.mxu1 %v6036_v37  ;;  %v6081_v37 = vld [vmem:[%s7385_s9 + $0xc0] ss:$8 sps:$4 sm:$0xff]  }
 0x35b   : > { %5762 = vmatprep.subr.bf16.mxu1 %v6842_v63 }
 0x35e   : > { %5763 = vmatpush3.bf16.msra.mxu1 %v6040_v17  ;;  %v6089_v17 = vld [vmem:[%s7385_s9 + $0xe4] ss:$8 sps:$4 sm:$0xff]  }
 0x35f   : > { %5764 = vmatprep.subr.bf16.mxu1 %v6842_v63  ;;  %v4973_v63 = vld [vmem:[%s7382_s6] ss:$0 sm:$0xff] }
 0x362   : > { %5765 = vmatpush3.bf16.msra.mxu1 %v6044_v56  ;;  %v6092_v56 = vld [vmem:[%s7385_s9 + $0xf4] ss:$8 sps:$4 sm:$0xff]  }
 0x3d8   : > { %v5612_v5 = vpop.f32.mrb[136].mxu1 }
 0x3d9   : > { %v5613_v49 = vpop.f32.mrb[137].mxu1 }
 0x3da   : > { %v5614_v14 = vadd.f32 %v5613_v49, %v5612_v5  ;;  %v5615_v22 = vpop.f32.mrb[138].mxu1  ;;  %v4032_v5 = vlaneseq }
 0x3db   : > { %v5616_v50 = vpop.f32.mrb[139].mxu1 }
 0x3dc   : > { %v3832_v43 = vadd.f32 %v5614_v14, %v4973_v63  ;;  %v5634_v27 = vpop.f32.mrb[100].mxu0  ;;  %v4033_v49 = vshrl.u32 %v4032_v5, 7  ;;  %v4030_v14 = vld [vmem:[%s7384_s8] sm:$0x7] }
 0x3dd   : > { %v5635_v45 = vpop.f32.mrb[101].mxu0 }
 0x3de   : > { %v5636_v62 = vadd.f32 %v5635_v45, %v5634_v27  ;;  %v5637_v59 = vpop.f32.mrb[102].mxu0  ;;  %v7304_v63 = vsub.s32 0, %v4033_v49  ;;  %v7309_v22 = vsub.s32 1, %v4033_v49 }
 0x3df   : > { %v5638_v28 = vpop.f32.mrb[103].mxu0 }
 0x3e0   : > { %v3872_v29 = vadd.f32 %v5636_v62, %v3832_v43  ;;  %v4035_v50 = vrot.slane %v4030_v14, %v7304_v63  ;;  %v4039_v43 = vrot.slane %v4030_v14, %v7309_v22 }
 0x3f8   : > { %v5656_v35 = vpop.f32.mrb[140].mxu1 }
 0x3f9   : > { %v5657_v61 = vpop.f32.mrb[141].mxu1 }
 0x3fa   : > { %v5658_v30 = vadd.f32 %v5657_v61, %v5656_v35  ;;  %v5659_v32 = vpop.f32.mrb[142].mxu1 }
 0x3fb   : > { %v5660_v39 = vpop.f32.mrb[143].mxu1 }
 0x3fc   : > { %v3912_v8 = vadd.f32 %v5658_v30, %v3872_v29 }
 0x3fd   : > { %v5678_v34 = vpop.f32.mrb[104].mxu0 }
 0x3fe   : > { %v5679_v41 = vpop.f32.mrb[105].mxu0 }
 0x3ff   : > { %v5680_v42 = vadd.f32 %v5679_v41, %v5678_v34  ;;  %v5681_v11 = vpop.f32.mrb[106].mxu0 }
 0x400   : > { %v5682_v15 = vpop.f32.mrb[107].mxu0  ;;  %v6093_v11 = vld [vmem:[%s7385_s9 + $0x100] ss:$8 sps:$4 sm:$0xff]  }
 0x401   : > { %v3952_v13 = vadd.f32 %v5680_v42, %v3912_v8 }
 0x418   : > { %v3991_v44 = vpop.f32.mrb[144].mxu1 }
 0x419   : > { %v3992_v53 = vadd.f32 %v3991_v44, %v3952_v13  ;;  %v5748_v55 = vpop.f32.mrb[145].mxu1  ;;  %v6098_v13 = vld [vmem:[%s7385_s9 + $0x114] ss:$8 sps:$4 sm:$0xff]   ;;  %v6096_v44 = vld [vmem:[%s7385_s9 + $0x110] ss:$8 sps:$4 sm:$0xff]  }
 0x41a   : > { %v3994_v1 = vpop.f32.mrb[146].mxu1  ;;  %v6099_v55 = vld [vmem:[%s7385_s9 + $0x120] ss:$8 sps:$4 sm:$0xff]  }
 0x41b   : > { %v3997_v47 = vpack.c.bf16 %v3992_v53, %v3992_v53  ;;  %v5749_v20 = vpop.f32.mrb[147].mxu1  ;;  %v6101_v53 = vld [vmem:[%s7385_s9 + $0x124] ss:$8 sps:$4 sm:$0xff]   ;;  %v6104_v1 = vld [vmem:[%s7385_s9 + $0x134] ss:$8 sps:$4 sm:$0xff]  }
 0x41c   : > { %v6105_v20 = vld [vmem:[%s7385_s9 + $0x140] ss:$8 sps:$4 sm:$0xff]  }
 0x41d   : > { %4208 = vmatmul.mubr.bf16.vlgmr.msra.gmra.mrb[108].mxu0 %v3997_v47  ;;  %5767 = vmatmul.mubr.bf16.vlgmr.msra.gmra.mrb[148].mxu1 %v3997_v47  ;;  %v4042_v47 = vsub.s32 2, %v4033_v49 }
 0x41e   : > { %4569 = vmatpush1.bf16.msra.mxu0 %v6045_v46  ;;  %v6107_v46 = vld [vmem:[%s7385_s9 + $0x144] ss:$8 sps:$4 sm:$0xff]  }
 0x41f   : > { %4570 = vmatprep.subr.bf16.mxu0 %v6050_v48  ;;  %v6110_v48 = vld [vmem:[%s7385_s9 + $0x154] ss:$8 sps:$4 sm:$0xff]  }
 0x422   : > { %4571 = vmatpush1.bf16.msra.mxu0 %v6048_v3  ;;  %v4043_v3 = vrot.slane %v4030_v14, %v4042_v47 }
 0x423   : > { %4572 = vmatprep.subr.bf16.mxu0 %v6053_v60  ;;  %v6108_v60 = vld [vmem:[%s7385_s9 + $0x150] ss:$8 sps:$4 sm:$0xff]  }
 0x426   : > { %4573 = vmatpush1.bf16.msra.mxu0 %v6051_v12  ;;  %v6113_v12 = vld [vmem:[%s7385_s9 + $0x164] ss:$8 sps:$4 sm:$0xff]  }
 0x427   : > { %4574 = vmatprep.subr.bf16.mxu0 %v6056_v19 }
 0x42a   : > { %4575 = vmatpush1.bf16.msra.mxu0 %v6054_v51  ;;  %v6111_v51 = vld [vmem:[%s7385_s9 + $0x160] ss:$8 sps:$4 sm:$0xff]  }
 0x42b   : > { %4576 = vmatprep.subr.bf16.mxu0 %v6059_v52  ;;  %v6116_v52 = vld [vmem:[%s7385_s9 + $0x174] ss:$8 sps:$4 sm:$0xff]  }
 0x42e   : > { %4577 = vmatpush1.bf16.msra.mxu0 %v6057_v58 }
 0x42f   : > { %4578 = vmatprep.subr.bf16.mxu0 %v6062_v7  ;;  %v6114_v7 = vld [vmem:[%s7385_s9 + $0x170] ss:$8 sps:$4 sm:$0xff]  }
 0x432   : > { %4579 = vmatpush1.bf16.msra.mxu0 %v6060_v21 }
 0x433   : > { %4580 = vmatprep.subr.bf16.mxu0 %v6065_v54 }
 0x436   : > { %4581 = vmatpush1.bf16.msra.mxu0 %v6063_v57  ;;  %v4316_v57 = vld [vmem:[%s7386_s10] sm:$0x3] }
 0x437   : > { %4582 = vmatprep.subr.bf16.mxu0 %v6068_v0  ;;  %v4321_v0 = vrot.slane %v4316_v57, %v7304_v63 }
 0x43a   : > { %4583 = vmatpush1.bf16.msra.mxu0 %v6066_v25  ;;  %v4325_v25 = vrot.slane %v4316_v57, %v7309_v22 }
 0x43b   : > { %4584 = vmatprep.subr.bf16.mxu0 %v6071_v23  ;;  %v4656_v23 = vld [vmem:[%s7387_s11] sm:$0x3] }
 0x43e   : > { %4585 = vmatpush1.bf16.msra.mxu0 %v6069_v18 }
 0x43f   : > { %4586 = vmatprep.subr.bf16.mxu0 %v6074_v26 }
 0x442   : > { %4587 = vmatpush1.bf16.msra.mxu0 %v6072_v2 }
 0x443   : > { %4588 = vmatprep.subr.bf16.mxu0 %v6077_v36 }
 0x446   : > { %4589 = vmatpush1.bf16.msra.mxu0 %v6075_v4 }
 0x447   : > { %4590 = vmatprep.subr.bf16.mxu0 %v6080_v31  ;;  %v4661_v31 = vrot.slane %v4656_v23, %v7304_v63 }
 0x44a   : > { %4591 = vmatpush1.bf16.msra.mxu0 %v6078_v40 }
 0x44b   : > { %4592 = vmatprep.subr.bf16.mxu0 %v6083_v9 }
 0x44e   : > { %4593 = vmatpush1.bf16.msra.mxu0 %v6081_v37  ;;  %v4665_v37 = vrot.slane %v4656_v23, %v7309_v22 }
 0x44f   : > { %4594 = vmatprep.subr.bf16.mxu0 %v6086_v10 }
 0x452   : > { %4595 = vmatpush1.bf16.msra.mxu0 %v6084_v16 }
 0x453   : > { %4596 = vmatprep.subr.bf16.mxu0 %v6089_v17 }
 0x456   : > { %4597 = vmatpush1.bf16.msra.mxu0 %v6087_v24 }
 0x457   : > { %4598 = vmatprep.subr.bf16.mxu0 %v6092_v56 }
 0x45a   : > { %4599 = vmatpush1.bf16.msra.mxu0 %v6090_v38 }
 0x45b   : > { %4609 = vmatprep.subr.bf16.mxu0 %v6095_v6  ;;  %v5118_v6 = vld [vmem:[#allocation6] ss:$0 sm:$0xff] }
 0x4f0   : > { %v4209_v27 = vpop.f32.mrb[108].mxu0  ;;  %v4250_v45 = vpop.f32.mrb[148].mxu1 }
 0x4f1   : > { %v4210_v62 = vadd.f32 %v4209_v27, %v4035_v50  ;;  %v4211_v59 = vpop.f32.mrb[109].mxu0  ;;  %v5768_v28 = vpop.f32.mrb[149].mxu1  ;;  %v4251_v19 = vadd.f32 %v4250_v45, %v4043_v3 }
 0x4f2   : > { %v4212_v29 = vadd.f32 %v4211_v59, %v4039_v43  ;;  %v4213_v35 = vpop.f32.mrb[110].mxu0  ;;  %v4253_v61 = vpop.f32.mrb[150].mxu1 }
 0x4f3   : > { %vm4256_vm1 = vcmp.gt.f32.partialorder %v4210_v62, 0.0  ;;  %v4259_v30 = vmul.f32 0.2, %v4210_v62  ;;  %v4214_v39 = vpop.f32.mrb[111].mxu0  ;;  %v5769_v8 = vpop.f32.mrb[151].mxu1  ;;  %vm4258_vm3 = vcmp.gt.f32.partialorder %v4251_v19, 0.0 }
 0x4f4   : > { %vm4257_vm2 = vcmp.gt.f32.partialorder %v4212_v29, 0.0  ;;  %v4260_v32 = vmul.f32 0.2, %v4212_v29  ;;  %v4261_v58 = vmul.f32 0.2, %v4251_v19 }
 0x4f5   : > { %v4262_v34 = vsel %vm4256_vm1, %v4210_v62, %v4259_v30 }
 0x4f6   : > { %v4263_v41 = vsel %vm4257_vm2, %v4212_v29, %v4260_v32  ;;  %v4265_v15 = vpack.c.bf16 %v4262_v34, %v4262_v34  ;;  %v4264_v21 = vsel %vm4258_vm3, %v4251_v19, %v4261_v58 }
 0x4f7   : > { %v4266_v42 = vpack.c.bf16 %v4263_v41, %v4263_v41  ;;  %v4267_v54 = vpack.c.bf16 %v4264_v21, %v4264_v21 }
 0x4f9   : > { %4600 = vmatprep.mubr.bf16.mxu0 %v4266_v42 }
 0x4fa   : > { %4601 = vmatmul.mubr.bf16.vlgmr.msra.gmra.mrb[112].mxu0 %v4265_v15 }
 0x4fb   : > { %4610 = vmatpush1.bf16.msra.mxu0 %v6093_v11  ;;  %4641 = vmatprep.mubr.bf16.mxu0 %v6128_v33  ;;  %v6102_v33 = vld [vmem:[%s7385_s9 + $0x130] ss:$8 sps:$4 sm:$0xff]  }
 0x4fc   : > { %4611 = vmatprep.subr.bf16.mxu0 %v6098_v13 }
 0x4ff   : > { %4612 = vmatpush1.bf16.msra.mxu0 %v6096_v44 }
 0x500   : > { %4613 = vmatprep.subr.bf16.mxu0 %v6101_v53 }
 0x503   : > { %4614 = vmatpush1.bf16.msra.mxu0 %v6099_v55 }
 0x504   : > { %4615 = vmatprep.subr.bf16.mxu0 %v6104_v1 }
 0x507   : > { %4616 = vmatpush1.bf16.msra.mxu0 %v6102_v33 }
 0x508   : > { %4617 = vmatprep.subr.bf16.mxu0 %v6107_v46 }
 0x50b   : > { %4618 = vmatpush1.bf16.msra.mxu0 %v6105_v20 }
 0x50c   : > { %4619 = vmatprep.subr.bf16.mxu0 %v6110_v48 }
 0x50f   : > { %4620 = vmatpush1.bf16.msra.mxu0 %v6108_v60 }
 0x510   : > { %4621 = vmatprep.subr.bf16.mxu0 %v6113_v12 }
 0x513   : > { %4622 = vmatpush1.bf16.msra.mxu0 %v6111_v51 }
 0x514   : > { %4623 = vmatprep.subr.bf16.mxu0 %v6116_v52 }
 0x517   : > { %4624 = vmatpush1.bf16.msra.mxu0 %v6114_v7 }
 0x51a   : > { %4642 = vmatmul.mubr.bf16.vlgmr.msra.gmra.mrb[112].mxu0 %v4267_v54 }
 0x5ed   : > { %v4643_v18 = vpop.f32.mrb[112].mxu0 }
 0x5ee   : > { %v5786_v26 = vadd.f32 %v4643_v18, %v4321_v0  ;;  %v4645_v2 = vpop.f32.mrb[113].mxu0 }
 0x5ef   : > { %v5787_v36 = vadd.f32 %v4645_v2, %v4325_v25  ;;  %v4647_v4 = vpop.f32.mrb[114].mxu0 }
 0x5f0   : > { %vm4650_vm4 = vcmp.gt.f32.partialorder %v5786_v26, 0.0  ;;  %v4652_v40 = vmul.f32 0.2, %v5786_v26  ;;  %v4648_v9 = vpop.f32.mrb[115].mxu0 }
 0x5f1   : > { %vm4651_vm5 = vcmp.gt.f32.partialorder %v5787_v36, 0.0  ;;  %v4653_v10 = vmul.f32 0.2, %v5787_v36 }
 0x5f2   : > { %v4654_v16 = vsel %vm4650_vm4, %v5786_v26, %v4652_v40 }
 0x5f3   : > { %v4655_v17 = vsel %vm4651_vm5, %v5787_v36, %v4653_v10  ;;  %v4668_v24 = vmul.f32 %v4661_v31, %v4654_v16 }
 0x5f4   : > { %v4669_v38 = vmul.f32 %v4665_v37, %v4655_v17 }
 0x5f6   : > { %v4670_v56 = vadd.f32 %v4669_v38, %v4668_v24 }
 0x5f8   : > { %4671 = vadd.xlane.f32.xlu0 %v4670_v56 }
 0x685   : > { %v4672_v5 = vpop.xlane.xlu0 %4671 }
 0x686   : > { %v4680_v49 = vadd.f32 %v5118_v6, %v4672_v5 }
 0x688   : > { %4683 = vperm.xlu0 %5804, %v4680_v49  }
 0x707   : > { %v4684_v63 = vpop.permute.xlu0 %4683 }
 0x708   : > { %4686 = vst [vmem:[%s440_s21] sm:$0xff] %v4684_v63 }
 0x709 PF: > { %s25_s27 = sadd.s32 1, %s6124_s27  }
 0x70a   : > { %p22_p4 = scmp.ge.s32.totalorder %s25_s27, 4  }
 0x70c   :  { %24 = sbr.rel (!%p22_p4) target bundleno = 3 (0x3), region = 102 }

</bundles_post_ra>
